<compile_context>
chip_gen: v5e
topology: v5e:2x2
jax: 0.10.0
libtpu: 0.0.40
codegen_flags: <defaults>
</compile_context>

<pallas_src>
import functools
import math

import jax
import jax.numpy as jnp
from jax import lax
from jax.experimental import pallas as pl
from jax.experimental.pallas import tpu as pltpu

EPS = 1e-3     # BatchNorm2d(eps=0.001) in the module
LANE = 128     # lane width / channel padding quantum


def _round_up(x, m):
    return (x + m - 1) // m * m


def _nbytes(shape, dtype):
    return math.prod([int(d) for d in shape]) * jnp.dtype(dtype).itemsize


def _vmem_limit_bytes(need):
    """Generation-aware VMEM limit: just above the computed footprint."""
    cap = 128 * 1024 * 1024
    try:
        cap = int(pltpu.get_tpu_info().vmem_capacity_bytes)
    except Exception:      # info query unavailable -> conservative default
        pass
    return int(min(max(need + (8 << 20), 32 << 20), cap * 3 // 4))


# ----------------------------------------------------------------------------
# Pallas kernel: direct 3x3 conv + residual + folded-BN affine + ReLU (+extras)
# ----------------------------------------------------------------------------
def conv3x3_bn_relu(phases, w9, scale, bias, *, stride, out_hw,
                    residual=None, emit_preact=False, ds_w=None,
                    final=False, out_dtype=jnp.bfloat16):
    """Fused 3x3 conv (padding=1, `stride`) + residual + BN affine + ReLU.

    phases : list of stride*stride arrays (B, Hph*P, Cin_p) bf16 -- polyphase
             views of the spatially zero-padded input, flattened with row
             pitch P = Wo + 2 (for stride 1 this is just the padded layout).
    w9     : (9, Cin_p, Cp) bf16, tap-major (dy*3+dx) conv weight.
    scale, bias : (Cp,) f32 folded BatchNorm affine.
    residual    : optional (B, rows>= (Ho+1)*P+1, Cp) tensor in padded layout,
                  added to the conv output before the affine.
    emit_preact : also return the pre-affine sum (f32, padded layout).
    ds_w        : optional (Cin_p, Cp) bf16 -> also return the 1x1 stride-s
                  downsample of the input (f32, padded layout).
    final       : main output returned unpadded as (B, Ho*P, Cp) (row = oy*P+ox)
                  instead of the padded layout (no mask / zero border needed).
    Returns a tuple: (out[, preact][, downsample]).
    """
    s = stride
    Ho, Wo = out_hw
    P = Wo + 2
    Hg = Ho + 3
    Npg = Hg * P            # rows of a padded-layout activation
    M = Ho * P              # rows actually computed per image (incl. garbage cols)
    B, _, Cin_p = phases[0].shape
    Cp = w9.shape[-1]
    n_ph = s * s
    assert len(phases) == n_ph
    has_res = residual is not None
    has_ds = ds_w is not None

    # validity mask over the M computed rows: column index (r mod P) < Wo
    mask = ((jnp.arange(M, dtype=jnp.int32) % P) < Wo)
    mask = mask.astype(jnp.float32).reshape(M, 1)

    def kernel(*refs):
        it = iter(refs)
        ph_refs = [next(it) for _ in range(n_ph)]
        w_ref = next(it)
        sc_ref = next(it)
        bi_ref = next(it)
        mask_ref = None if final else next(it)
        res_ref = next(it) if has_res else None
        dsw_ref = next(it) if has_ds else None
        out_ref = next(it)
        pre_ref = next(it) if emit_preact else None
        ds_ref = next(it) if has_ds else None

        # 9 MXU dots (one per tap), f32 accumulation.  Each tap's LHS is a
        # constant-row-shift slab of the flattened (rows, Cin_p) input.
        acc = jnp.zeros((M, Cp), jnp.float32)
        for dy in range(3):
            for dx in range(3):
                ph = ph_refs[(dy % s) * s + (dx % s)]
                shift = (dy // s) * P + (dx // s)
                lhs = ph[0, pl.ds(shift, M), :]                 # (M, Cin_p)
                acc = acc + jnp.dot(lhs, w_ref[dy * 3 + dx],
                                    preferred_element_type=jnp.float32)

        if has_res:
            acc = acc + res_ref[0, pl.ds(P + 1, M), :].astype(jnp.float32)
        if emit_preact:
            pre_ref[0, pl.ds(P + 1, M), :] = acc.astype(pre_ref.dtype)

        y = jnp.maximum(acc * sc_ref[...] + bi_ref[...], 0.0)
        if final:
            out_ref[0, :, :] = y.astype(out_ref.dtype)
        else:
            y = y * mask_ref[...]                               # zero garbage cols
            out_ref[...] = jnp.zeros(out_ref.shape, out_ref.dtype)
            out_ref[0, pl.ds(P + 1, M), :] = y.astype(out_ref.dtype)

        if has_ds:
            # 1x1 stride-s downsample == centre tap slab @ ds weight
            shift = (1 // s) * (P + 1)
            ctr = ph_refs[(1 % s) * s + (1 % s)][0, pl.ds(shift, M), :]
            ds = jnp.dot(ctr, dsw_ref[...], preferred_element_type=jnp.float32)
            ds_ref[0, pl.ds(P + 1, M), :] = ds.astype(ds_ref.dtype)

    # ---- specs / inputs --------------------------------------------------
    vmem = 0
    in_specs, inputs = [], []
    for ph in phases:
        blk = (1,) + tuple(ph.shape[1:])
        in_specs.append(pl.BlockSpec(blk, lambda b: (b, 0, 0)))
        inputs.append(ph)
        vmem += 2 * _nbytes(blk, ph.dtype)
    in_specs.append(pl.BlockSpec(tuple(w9.shape), lambda b: (0, 0, 0)))
    inputs.append(w9)
    vmem += _nbytes(w9.shape, w9.dtype)
    for vec in (scale, bias):
        in_specs.append(pl.BlockSpec((1, Cp), lambda b: (0, 0)))
        inputs.append(vec.reshape(1, Cp).astype(jnp.float32))
        vmem += _nbytes((1, Cp), jnp.float32)
    if not final:
        in_specs.append(pl.BlockSpec((M, 1), lambda b: (0, 0)))
        inputs.append(mask)
        vmem += _nbytes((M, 1), jnp.float32)
    if has_res:
        blk = (1,) + tuple(residual.shape[1:])
        in_specs.append(pl.BlockSpec(blk, lambda b: (b, 0, 0)))
        inputs.append(residual)
        vmem += 2 * _nbytes(blk, residual.dtype)
    if has_ds:
        in_specs.append(pl.BlockSpec(tuple(ds_w.shape), lambda b: (0, 0)))
        inputs.append(ds_w)
        vmem += _nbytes(ds_w.shape, ds_w.dtype)

    out_specs, out_shapes = [], []
    main_rows = M if final else Npg
    out_shapes.append(jax.ShapeDtypeStruct((B, main_rows, Cp), out_dtype))
    out_specs.append(pl.BlockSpec((1, main_rows, Cp), lambda b: (b, 0, 0)))
    vmem += 2 * _nbytes((1, main_rows, Cp), out_dtype)
    if emit_preact:
        out_shapes.append(jax.ShapeDtypeStruct((B, Npg, Cp), jnp.float32))
        out_specs.append(pl.BlockSpec((1, Npg, Cp), lambda b: (b, 0, 0)))
        vmem += 2 * _nbytes((1, Npg, Cp), jnp.float32)
    if has_ds:
        out_shapes.append(jax.ShapeDtypeStruct((B, Npg, Cp), jnp.float32))
        out_specs.append(pl.BlockSpec((1, Npg, Cp), lambda b: (b, 0, 0)))
        vmem += 2 * _nbytes((1, Npg, Cp), jnp.float32)

    # in-kernel live values: f32 accumulator/result + a couple of tap slabs
    vmem += 2 * _nbytes((M, Cp), jnp.float32) + 2 * _nbytes((M, Cin_p), jnp.bfloat16)

    flops = 2.0 * B * M * 9 * Cin_p * Cp
    if has_ds:
        flops += 2.0 * B * M * Cin_p * Cp
    bytes_acc = sum(int(a.size) * jnp.dtype(a.dtype).itemsize for a in inputs)
    bytes_acc += sum(_nbytes(o.shape, o.dtype) for o in out_shapes)

    return pl.pallas_call(
        kernel,
        out_shape=tuple(out_shapes),
        grid=(B,),
        in_specs=in_specs,
        out_specs=tuple(out_specs),
        compiler_params=pltpu.CompilerParams(
            dimension_semantics=("parallel",),
            vmem_limit_bytes=_vmem_limit_bytes(vmem)),
        cost_estimate=pl.CostEstimate(flops=int(flops), transcendentals=0,
                                      bytes_accessed=int(bytes_acc)),
    )(*inputs)


# ----------------------------------------------------------------------------
# Glue: BN folding, parameter init
# ----------------------------------------------------------------------------
def fold_bn(gamma, beta, mean, var):
    s = gamma / jnp.sqrt(var + EPS)
    return s, beta - mean * s


def init_params(key, inplanes, outplanes):
    ks = jax.random.split(key, 16)

    def conv_w(k, kh, kw, cin, cout):
        std = (2.0 / (kh * kw * cin)) ** 0.5
        return jax.random.normal(k, (kh, kw, cin, cout), jnp.float32) * std

    def bn_p(k, c):
        k1, k2, k3, k4 = jax.random.split(k, 4)
        gamma = jax.random.uniform(k1, (c,), jnp.float32, 0.5, 1.5)
        beta = jax.random.normal(k2, (c,), jnp.float32) * 0.1
        mean = jax.random.normal(k3, (c,), jnp.float32) * 0.1
        var = jax.random.uniform(k4, (c,), jnp.float32, 0.5, 1.5)
        return (gamma, beta, mean, var)

    return dict(
        w1a=conv_w(ks[0], 3, 3, inplanes, outplanes),
        w2a=conv_w(ks[1], 3, 3, outplanes, outplanes),
        wds=conv_w(ks[2], 1, 1, inplanes, outplanes),
        w1b=conv_w(ks[3], 3, 3, outplanes, outplanes),
        w2b=conv_w(ks[4], 3, 3, outplanes, outplanes),
        bn1a=bn_p(ks[5], outplanes),
        outbna=bn_p(ks[6], outplanes),
        bn1b=bn_p(ks[7], outplanes),
        outbnb=bn_p(ks[8], outplanes),
    )


# ----------------------------------------------------------------------------
# ResNetLayer forward (Pallas)
# ----------------------------------------------------------------------------
def resnet_layer_pallas(x_nchw, p, stride):
    s = stride
    x = jnp.transpose(x_nchw, (0, 2, 3, 1))           # NHWC, f32
    B, H, W, Cin = x.shape
    Cout = p["w1a"].shape[-1]
    Cp = _round_up(Cout, LANE)
    if s == 1:
        # module semantics: identity residual requires inplanes == outplanes
        assert Cin == Cout, "stride==1 path requires inplanes == outplanes"
        Cin_p = Cp
    else:
        Cin_p = _round_up(Cin, LANE)

    Ho = (H - 1) // s + 1
    Wo = (W - 1) // s + 1
    P = Wo + 2

    def prep_bn(bnp):
        sc, bi = fold_bn(*bnp)
        return jnp.pad(sc, (0, Cp - Cout)), jnp.pad(bi, (0, Cp - Cout))

    s1a, b1a = prep_bn(p["bn1a"])
    sOa, bOa = prep_bn(p["outbna"])
    s1b, b1b = prep_bn(p["bn1b"])
    sOb, bOb = prep_bn(p["outbnb"])

    def prep_w(w, cin_p):
        kh, kw, ci, co = w.shape
        w = jnp.pad(w, ((0, 0), (0, 0), (0, cin_p - ci), (0, Cp - co)))
        return w.reshape(kh * kw, cin_p, Cp).astype(jnp.bfloat16)

    w1a = prep_w(p["w1a"], Cin_p)
    w2a = prep_w(p["w2a"], Cp)
    w1b = prep_w(p["w1b"], Cp)
    w2b = prep_w(p["w2b"], Cp)

    # conv1a input: zero-pad spatially + channel-pad, build the s*s polyphase
    # views and flatten them to (B, rows, Cin_p) with row pitch P.
    Hph = Ho + (2 // s) + 1
    xb = jnp.pad(x, ((0, 0), (0, 0), (0, 0), (0, Cin_p - Cin))).astype(jnp.bfloat16)
    xpad = jnp.pad(xb, ((0, 0), (1, s * Hph - H - 1), (1, s * P - W - 1), (0, 0)))
    phases = []
    for py in range(s):
        for px in range(s):
            ph = xpad[:, py::s, px::s, :][:, :Hph, :P, :]
            phases.append(ph.reshape(B, Hph * P, Cin_p))

    # --- conv1a (stride s) -> bn1a -> relu  [+ fused 1x1 downsample] ---------
    if s == 1:
        (y1,) = conv3x3_bn_relu(phases, w1a, s1a, b1a, stride=1, out_hw=(Ho, Wo))
        res = phases[0]                 # identity residual: x in padded layout
    else:
        wds = jnp.pad(p["wds"].reshape(Cin, Cout),
                      ((0, Cin_p - Cin), (0, Cp - Cout))).astype(jnp.bfloat16)
        y1, res = conv3x3_bn_relu(phases, w1a, s1a, b1a, stride=s,
                                  out_hw=(Ho, Wo), ds_w=wds)

    # --- conv2a + residual ; y2 = preact (f32), y3 = relu(outbna(y2)) --------
    y3, y2 = conv3x3_bn_relu([y1], w2a, sOa, bOa, stride=1, out_hw=(Ho, Wo),
                             residual=res, emit_preact=True)

    # --- conv1b -> bn1b -> relu ----------------------------------------------
    (y4,) = conv3x3_bn_relu([y3], w1b, s1b, b1b, stride=1, out_hw=(Ho, Wo))

    # --- conv2b + y2 -> outbnb -> relu  (final, f32) --------------------------
    (out,) = conv3x3_bn_relu([y4], w2b, sOb, bOb, stride=1, out_hw=(Ho, Wo),
                             residual=y2, final=True, out_dtype=jnp.float32)

    out = out.reshape(B, Ho, P, Cp)[:, :, :Wo, :Cout]
    # TODO(synk): if the consumer accepts NHWC, return `out` here and skip this
    #             slice + transpose round trip through HBM.
    return jnp.transpose(out, (0, 3, 1, 2))           # back to NCHW


# ----------------------------------------------------------------------------
# Pure-JAX reference (lax.conv, f32) for correctness checking
# ----------------------------------------------------------------------------
def resnet_layer_ref(x_nchw, p, stride):
    x = jnp.transpose(x_nchw, (0, 2, 3, 1)).astype(jnp.float32)

    def conv(xx, w, st, pad):
        return lax.conv_general_dilated(
            xx, w, (st, st), [(pad, pad), (pad, pad)],
            dimension_numbers=("NHWC", "HWIO", "NHWC"),
            precision=lax.Precision.HIGHEST)

    def bn(xx, bnp):
        s, b = fold_bn(*bnp)
        return xx * s + b

    y = jnp.maximum(bn(conv(x, p["w1a"], stride, 1), p["bn1a"]), 0.0)
    y = conv(y, p["w2a"], 1, 1)
    res = x if stride == 1 else conv(x, p["wds"], stride, 0)
    y = y + res
    inter = y
    y = jnp.maximum(bn(y, p["outbna"]), 0.0)
    y = jnp.maximum(bn(conv(y, p["w1b"], 1, 1), p["bn1b"]), 0.0)
    y = conv(y, p["w2b"], 1, 1)
    y = y + inter
    y = jnp.maximum(bn(y, p["outbnb"]), 0.0)
    return jnp.transpose(y, (0, 3, 1, 2))


if __name__ == "__main__":
    key = jax.random.PRNGKey(0)
    k_x1, k_p1, k_x2, k_p2 = jax.random.split(key, 4)

    # case 1: stride-2 block with channel expansion (fused downsample path)
    B, inplanes, outplanes, H, W, stride = 2, 4, 8, 16, 16, 2
    x = jax.random.normal(k_x1, (B, inplanes, H, W), jnp.float32)
    params = init_params(k_p1, inplanes, outplanes)
    fwd2 = jax.jit(functools.partial(resnet_layer_pallas, stride=stride))
    out = jax.block_until_ready(fwd2(x, params))
    ref = resnet_layer_ref(x, params, stride)
    assert out.shape == (B, outplanes, H // stride, W // stride), out.shape
    err = float(jnp.max(jnp.abs(out - ref)))
    assert jnp.allclose(out, ref, rtol=3e-2, atol=3e-2), f"max abs err {err}"

    # case 2: stride-1 block (identity residual path)
    planes = 8
    x2 = jax.random.normal(k_x2, (B, planes, H, W), jnp.float32)
    params2 = init_params(k_p2, planes, planes)
    fwd1 = jax.jit(functools.partial(resnet_layer_pallas, stride=1))
    out2 = jax.block_until_ready(fwd1(x2, params2))
    ref2 = resnet_layer_ref(x2, params2, 1)
    assert out2.shape == (B, planes, H, W), out2.shape
    err2 = float(jnp.max(jnp.abs(out2 - ref2)))
    assert jnp.allclose(out2, ref2, rtol=3e-2, atol=3e-2), f"max abs err {err2}"

    print("KERNEL_OK")
</pallas_src>

<mosaic_0001>
module attributes {stable_mosaic.version = 11 : i64} {
  func.func @kernel(%arg0: i32, %arg1: memref<1x100x128xbf16, #tpu.memory_space<vmem>>, %arg2: memref<1x100x128xbf16, #tpu.memory_space<vmem>>, %arg3: memref<1x100x128xbf16, #tpu.memory_space<vmem>>, %arg4: memref<1x100x128xbf16, #tpu.memory_space<vmem>>, %arg5: memref<9x128x128xbf16, #tpu.memory_space<vmem>>, %arg6: memref<1x128xf32, #tpu.memory_space<vmem>>, %arg7: memref<1x128xf32, #tpu.memory_space<vmem>>, %arg8: memref<80x1xf32, #tpu.memory_space<vmem>>, %arg9: memref<128x128xbf16, #tpu.memory_space<vmem>>, %arg10: memref<1x110x128xbf16, #tpu.memory_space<vmem>>, %arg11: memref<1x110x128xf32, #tpu.memory_space<vmem>>) attributes {dimension_semantics = [#tpu.dimension_semantics<parallel>], iteration_bounds = array<i64: 2>, scalar_prefetch = 0 : i64, scratch_operands = 0 : i64, tpu.core_type = #tpu.core_type<tc>, window_params = [{transform_indices = @transform_0, window_bounds = array<i64: 1, 100, 128>}, {transform_indices = @transform_1, window_bounds = array<i64: 1, 100, 128>}, {transform_indices = @transform_2, window_bounds = array<i64: 1, 100, 128>}, {transform_indices = @transform_3, window_bounds = array<i64: 1, 100, 128>}, {pipeline_mode = #tpu.pipeline_mode<synchronous>, transform_indices = @transform_4, window_bounds = array<i64: 9, 128, 128>}, {pipeline_mode = #tpu.pipeline_mode<synchronous>, transform_indices = @transform_5, window_bounds = array<i64: 1, 128>}, {pipeline_mode = #tpu.pipeline_mode<synchronous>, transform_indices = @transform_6, window_bounds = array<i64: 1, 128>}, {pipeline_mode = #tpu.pipeline_mode<synchronous>, transform_indices = @transform_7, window_bounds = array<i64: 80, 1>}, {pipeline_mode = #tpu.pipeline_mode<synchronous>, transform_indices = @transform_8, window_bounds = array<i64: 128, 128>}, {transform_indices = @transform_9, window_bounds = array<i64: 1, 110, 128>}, {transform_indices = @transform_10, window_bounds = array<i64: 1, 110, 128>}]} {
    %cst = arith.constant 0.000000e+00 : f32
    %0 = vector.broadcast %cst : f32 to vector<80x128xf32>
    %c0 = arith.constant 0 : index
    %c0_0 = arith.constant 0 : index
    %c0_1 = arith.constant 0 : index
    %1 = vector.load %arg1[%c0, %c0_0, %c0_1] : memref<1x100x128xbf16, #tpu.memory_space<vmem>>, vector<1x80x128xbf16>
    %2 = vector.shape_cast %1 : vector<1x80x128xbf16> to vector<80x128xbf16>
    %c0_2 = arith.constant 0 : index
    %c0_3 = arith.constant 0 : index
    %c0_4 = arith.constant 0 : index
    %3 = vector.load %arg5[%c0_2, %c0_3, %c0_4] : memref<9x128x128xbf16, #tpu.memory_space<vmem>>, vector<1x128x128xbf16>
    %4 = vector.shape_cast %3 : vector<1x128x128xbf16> to vector<128x128xbf16>
    %cst_5 = arith.constant dense<0.000000e+00> : vector<80x128xf32>
    %5 = tpu.matmul %2, %4, %cst_5 {dimension_numbers = #tpu.dot_dimension_numbers<[1], [0], [0], [1], [0, 0, 1, 1], [], []>} : vector<80x128xbf16>, vector<128x128xbf16>, vector<80x128xf32> -> vector<80x128xf32>
    %6 = arith.addf %0, %5 : vector<80x128xf32>
    %c0_6 = arith.constant 0 : index
    %c0_7 = arith.constant 0 : index
    %c0_8 = arith.constant 0 : index
    %7 = vector.load %arg2[%c0_6, %c0_7, %c0_8] : memref<1x100x128xbf16, #tpu.memory_space<vmem>>, vector<1x80x128xbf16>
    %8 = vector.shape_cast %7 : vector<1x80x128xbf16> to vector<80x128xbf16>
    %c1 = arith.constant 1 : index
    %c0_9 = arith.constant 0 : index
    %c0_10 = arith.constant 0 : index
    %9 = vector.load %arg5[%c1, %c0_9, %c0_10] : memref<9x128x128xbf16, #tpu.memory_space<vmem>>, vector<1x128x128xbf16>
    %10 = vector.shape_cast %9 : vector<1x128x128xbf16> to vector<128x128xbf16>
    %cst_11 = arith.constant dense<0.000000e+00> : vector<80x128xf32>
    %11 = tpu.matmul %8, %10, %cst_11 {dimension_numbers = #tpu.dot_dimension_numbers<[1], [0], [0], [1], [0, 0, 1, 1], [], []>} : vector<80x128xbf16>, vector<128x128xbf16>, vector<80x128xf32> -> vector<80x128xf32>
    %12 = arith.addf %6, %11 : vector<80x128xf32>
    %c0_12 = arith.constant 0 : index
    %c1_13 = arith.constant 1 : index
    %c0_14 = arith.constant 0 : index
    %13 = vector.load %arg1[%c0_12, %c1_13, %c0_14] : memref<1x100x128xbf16, #tpu.memory_space<vmem>>, vector<1x80x128xbf16>
    %14 = vector.shape_cast %13 : vector<1x80x128xbf16> to vector<80x128xbf16>
    %c2 = arith.constant 2 : index
    %c0_15 = arith.constant 0 : index
    %c0_16 = arith.constant 0 : index
    %15 = vector.load %arg5[%c2, %c0_15, %c0_16] : memref<9x128x128xbf16, #tpu.memory_space<vmem>>, vector<1x128x128xbf16>
    %16 = vector.shape_cast %15 : vector<1x128x128xbf16> to vector<128x128xbf16>
    %cst_17 = arith.constant dense<0.000000e+00> : vector<80x128xf32>
    %17 = tpu.matmul %14, %16, %cst_17 {dimension_numbers = #tpu.dot_dimension_numbers<[1], [0], [0], [1], [0, 0, 1, 1], [], []>} : vector<80x128xbf16>, vector<128x128xbf16>, vector<80x128xf32> -> vector<80x128xf32>
    %18 = arith.addf %12, %17 : vector<80x128xf32>
    %c0_18 = arith.constant 0 : index
    %c0_19 = arith.constant 0 : index
    %c0_20 = arith.constant 0 : index
    %19 = vector.load %arg3[%c0_18, %c0_19, %c0_20] : memref<1x100x128xbf16, #tpu.memory_space<vmem>>, vector<1x80x128xbf16>
    %20 = vector.shape_cast %19 : vector<1x80x128xbf16> to vector<80x128xbf16>
    %c3 = arith.constant 3 : index
    %c0_21 = arith.constant 0 : index
    %c0_22 = arith.constant 0 : index
    %21 = vector.load %arg5[%c3, %c0_21, %c0_22] : memref<9x128x128xbf16, #tpu.memory_space<vmem>>, vector<1x128x128xbf16>
    %22 = vector.shape_cast %21 : vector<1x128x128xbf16> to vector<128x128xbf16>
    %cst_23 = arith.constant dense<0.000000e+00> : vector<80x128xf32>
    %23 = tpu.matmul %20, %22, %cst_23 {dimension_numbers = #tpu.dot_dimension_numbers<[1], [0], [0], [1], [0, 0, 1, 1], [], []>} : vector<80x128xbf16>, vector<128x128xbf16>, vector<80x128xf32> -> vector<80x128xf32>
    %24 = arith.addf %18, %23 : vector<80x128xf32>
    %c0_24 = arith.constant 0 : index
    %c0_25 = arith.constant 0 : index
    %c0_26 = arith.constant 0 : index
    %25 = vector.load %arg4[%c0_24, %c0_25, %c0_26] : memref<1x100x128xbf16, #tpu.memory_space<vmem>>, vector<1x80x128xbf16>
    %26 = vector.shape_cast %25 : vector<1x80x128xbf16> to vector<80x128xbf16>
    %c4 = arith.constant 4 : index
    %c0_27 = arith.constant 0 : index
    %c0_28 = arith.constant 0 : index
    %27 = vector.load %arg5[%c4, %c0_27, %c0_28] : memref<9x128x128xbf16, #tpu.memory_space<vmem>>, vector<1x128x128xbf16>
    %28 = vector.shape_cast %27 : vector<1x128x128xbf16> to vector<128x128xbf16>
    %cst_29 = arith.constant dense<0.000000e+00> : vector<80x128xf32>
    %29 = tpu.matmul %26, %28, %cst_29 {dimension_numbers = #tpu.dot_dimension_numbers<[1], [0], [0], [1], [0, 0, 1, 1], [], []>} : vector<80x128xbf16>, vector<128x128xbf16>, vector<80x128xf32> -> vector<80x128xf32>
    %30 = arith.addf %24, %29 : vector<80x128xf32>
    %c0_30 = arith.constant 0 : index
    %c1_31 = arith.constant 1 : index
    %c0_32 = arith.constant 0 : index
    %31 = vector.load %arg3[%c0_30, %c1_31, %c0_32] : memref<1x100x128xbf16, #tpu.memory_space<vmem>>, vector<1x80x128xbf16>
    %32 = vector.shape_cast %31 : vector<1x80x128xbf16> to vector<80x128xbf16>
    %c5 = arith.constant 5 : index
    %c0_33 = arith.constant 0 : index
    %c0_34 = arith.constant 0 : index
    %33 = vector.load %arg5[%c5, %c0_33, %c0_34] : memref<9x128x128xbf16, #tpu.memory_space<vmem>>, vector<1x128x128xbf16>
    %34 = vector.shape_cast %33 : vector<1x128x128xbf16> to vector<128x128xbf16>
    %cst_35 = arith.constant dense<0.000000e+00> : vector<80x128xf32>
    %35 = tpu.matmul %32, %34, %cst_35 {dimension_numbers = #tpu.dot_dimension_numbers<[1], [0], [0], [1], [0, 0, 1, 1], [], []>} : vector<80x128xbf16>, vector<128x128xbf16>, vector<80x128xf32> -> vector<80x128xf32>
    %36 = arith.addf %30, %35 : vector<80x128xf32>
    %c0_36 = arith.constant 0 : index
    %c10 = arith.constant 10 : index
    %c0_37 = arith.constant 0 : index
    %37 = vector.load %arg1[%c0_36, %c10, %c0_37] : memref<1x100x128xbf16, #tpu.memory_space<vmem>>, vector<1x80x128xbf16>
    %38 = vector.shape_cast %37 : vector<1x80x128xbf16> to vector<80x128xbf16>
    %c6 = arith.constant 6 : index
    %c0_38 = arith.constant 0 : index
    %c0_39 = arith.constant 0 : index
    %39 = vector.load %arg5[%c6, %c0_38, %c0_39] : memref<9x128x128xbf16, #tpu.memory_space<vmem>>, vector<1x128x128xbf16>
    %40 = vector.shape_cast %39 : vector<1x128x128xbf16> to vector<128x128xbf16>
    %cst_40 = arith.constant dense<0.000000e+00> : vector<80x128xf32>
    %41 = tpu.matmul %38, %40, %cst_40 {dimension_numbers = #tpu.dot_dimension_numbers<[1], [0], [0], [1], [0, 0, 1, 1], [], []>} : vector<80x128xbf16>, vector<128x128xbf16>, vector<80x128xf32> -> vector<80x128xf32>
    %42 = arith.addf %36, %41 : vector<80x128xf32>
    %c0_41 = arith.constant 0 : index
    %c10_42 = arith.constant 10 : index
    %c0_43 = arith.constant 0 : index
    %43 = vector.load %arg2[%c0_41, %c10_42, %c0_43] : memref<1x100x128xbf16, #tpu.memory_space<vmem>>, vector<1x80x128xbf16>
    %44 = vector.shape_cast %43 : vector<1x80x128xbf16> to vector<80x128xbf16>
    %c7 = arith.constant 7 : index
    %c0_44 = arith.constant 0 : index
    %c0_45 = arith.constant 0 : index
    %45 = vector.load %arg5[%c7, %c0_44, %c0_45] : memref<9x128x128xbf16, #tpu.memory_space<vmem>>, vector<1x128x128xbf16>
    %46 = vector.shape_cast %45 : vector<1x128x128xbf16> to vector<128x128xbf16>
    %cst_46 = arith.constant dense<0.000000e+00> : vector<80x128xf32>
    %47 = tpu.matmul %44, %46, %cst_46 {dimension_numbers = #tpu.dot_dimension_numbers<[1], [0], [0], [1], [0, 0, 1, 1], [], []>} : vector<80x128xbf16>, vector<128x128xbf16>, vector<80x128xf32> -> vector<80x128xf32>
    %48 = arith.addf %42, %47 : vector<80x128xf32>
    %c0_47 = arith.constant 0 : index
    %c11 = arith.constant 11 : index
    %c0_48 = arith.constant 0 : index
    %49 = vector.load %arg1[%c0_47, %c11, %c0_48] : memref<1x100x128xbf16, #tpu.memory_space<vmem>>, vector<1x80x128xbf16>
    %50 = vector.shape_cast %49 : vector<1x80x128xbf16> to vector<80x128xbf16>
    %c8 = arith.constant 8 : index
    %c0_49 = arith.constant 0 : index
    %c0_50 = arith.constant 0 : index
    %51 = vector.load %arg5[%c8, %c0_49, %c0_50] : memref<9x128x128xbf16, #tpu.memory_space<vmem>>, vector<1x128x128xbf16>
    %52 = vector.shape_cast %51 : vector<1x128x128xbf16> to vector<128x128xbf16>
    %cst_51 = arith.constant dense<0.000000e+00> : vector<80x128xf32>
    %53 = tpu.matmul %50, %52, %cst_51 {dimension_numbers = #tpu.dot_dimension_numbers<[1], [0], [0], [1], [0, 0, 1, 1], [], []>} : vector<80x128xbf16>, vector<128x128xbf16>, vector<80x128xf32> -> vector<80x128xf32>
    %54 = arith.addf %48, %53 : vector<80x128xf32>
    %c0_52 = arith.constant 0 : index
    %c0_53 = arith.constant 0 : index
    %55 = vector.load %arg6[%c0_52, %c0_53] : memref<1x128xf32, #tpu.memory_space<vmem>>, vector<1x128xf32>
    %56 = vector.broadcast %55 : vector<1x128xf32> to vector<80x128xf32>
    %57 = arith.mulf %54, %56 : vector<80x128xf32>
    %c0_54 = arith.constant 0 : index
    %c0_55 = arith.constant 0 : index
    %58 = vector.load %arg7[%c0_54, %c0_55] : memref<1x128xf32, #tpu.memory_space<vmem>>, vector<1x128xf32>
    %59 = vector.broadcast %58 : vector<1x128xf32> to vector<80x128xf32>
    %60 = arith.addf %57, %59 : vector<80x128xf32>
    %cst_56 = arith.constant 0.000000e+00 : f32
    %61 = vector.broadcast %cst_56 : f32 to vector<80x128xf32>
    %62 = arith.maximumf %60, %61 : vector<80x128xf32>
    %c0_57 = arith.constant 0 : index
    %c0_58 = arith.constant 0 : index
    %63 = vector.load %arg8[%c0_57, %c0_58] : memref<80x1xf32, #tpu.memory_space<vmem>>, vector<80x1xf32>
    %64 = vector.broadcast %63 : vector<80x1xf32> to vector<80x128xf32>
    %65 = arith.mulf %62, %64 : vector<80x128xf32>
    %cst_59 = arith.constant 0.000000e+00 : bf16
    %66 = vector.broadcast %cst_59 : bf16 to vector<1x110x128xbf16>
    %c0_60 = arith.constant 0 : index
    %c0_61 = arith.constant 0 : index
    %c0_62 = arith.constant 0 : index
    %67 = vector.load %arg10[%c0_60, %c0_61, %c0_62] : memref<1x110x128xbf16, #tpu.memory_space<vmem>>, vector<1x110x128xbf16>
    tpu.vector_store %arg10[%c0_60, %c0_61, %c0_62], %66 {strides = array<i32>} : memref<1x110x128xbf16, #tpu.memory_space<vmem>>, vector<1x110x128xbf16>,
    %68 = arith.truncf %65 : vector<80x128xf32> to vector<80x128xbf16>
    %c0_63 = arith.constant 0 : index
    %c11_64 = arith.constant 11 : index
    %c0_65 = arith.constant 0 : index
    %69 = vector.load %arg10[%c0_63, %c11_64, %c0_65] : memref<1x110x128xbf16, #tpu.memory_space<vmem>>, vector<1x80x128xbf16>
    %70 = vector.shape_cast %69 : vector<1x80x128xbf16> to vector<80x128xbf16>
    %71 = vector.shape_cast %68 : vector<80x128xbf16> to vector<1x80x128xbf16>
    tpu.vector_store %arg10[%c0_63, %c11_64, %c0_65], %71 {strides = array<i32>} : memref<1x110x128xbf16, #tpu.memory_space<vmem>>, vector<1x80x128xbf16>,
    %c0_66 = arith.constant 0 : index
    %c0_67 = arith.constant 0 : index
    %c0_68 = arith.constant 0 : index
    %72 = vector.load %arg4[%c0_66, %c0_67, %c0_68] : memref<1x100x128xbf16, #tpu.memory_space<vmem>>, vector<1x80x128xbf16>
    %73 = vector.shape_cast %72 : vector<1x80x128xbf16> to vector<80x128xbf16>
    %c0_69 = arith.constant 0 : index
    %c0_70 = arith.constant 0 : index
    %74 = vector.load %arg9[%c0_69, %c0_70] : memref<128x128xbf16, #tpu.memory_space<vmem>>, vector<128x128xbf16>
    %cst_71 = arith.constant dense<0.000000e+00> : vector<80x128xf32>
    %75 = tpu.matmul %73, %74, %cst_71 {dimension_numbers = #tpu.dot_dimension_numbers<[1], [0], [0], [1], [0, 0, 1, 1], [], []>} : vector<80x128xbf16>, vector<128x128xbf16>, vector<80x128xf32> -> vector<80x128xf32>
    %c0_72 = arith.constant 0 : index
    %c11_73 = arith.constant 11 : index
    %c0_74 = arith.constant 0 : index
    %76 = vector.load %arg11[%c0_72, %c11_73, %c0_74] : memref<1x110x128xf32, #tpu.memory_space<vmem>>, vector<1x80x128xf32>
    %77 = vector.shape_cast %76 : vector<1x80x128xf32> to vector<80x128xf32>
    %78 = vector.shape_cast %75 : vector<80x128xf32> to vector<1x80x128xf32>
    tpu.vector_store %arg11[%c0_72, %c11_73, %c0_74], %78 {strides = array<i32>} : memref<1x110x128xf32, #tpu.memory_space<vmem>>, vector<1x80x128xf32>,
    return
  }
  func.func @transform_0(%arg0: i32) -> (i32, i32, i32) {
    %c0_i32 = arith.constant 0 : i32
    %c0_i32_0 = arith.constant 0 : i32
    %c0_i32_1 = arith.constant 0 : i32
    return %arg0, %c0_i32, %c0_i32_0 : i32, i32, i32
  }
  func.func @transform_1(%arg0: i32) -> (i32, i32, i32) {
    %c0_i32 = arith.constant 0 : i32
    %c0_i32_0 = arith.constant 0 : i32
    %c0_i32_1 = arith.constant 0 : i32
    return %arg0, %c0_i32, %c0_i32_0 : i32, i32, i32
  }
  func.func @transform_2(%arg0: i32) -> (i32, i32, i32) {
    %c0_i32 = arith.constant 0 : i32
    %c0_i32_0 = arith.constant 0 : i32
    %c0_i32_1 = arith.constant 0 : i32
    return %arg0, %c0_i32, %c0_i32_0 : i32, i32, i32
  }
  func.func @transform_3(%arg0: i32) -> (i32, i32, i32) {
    %c0_i32 = arith.constant 0 : i32
    %c0_i32_0 = arith.constant 0 : i32
    %c0_i32_1 = arith.constant 0 : i32
    return %arg0, %c0_i32, %c0_i32_0 : i32, i32, i32
  }
  func.func @transform_4(%arg0: i32) -> (i32, i32, i32) {
    %c0_i32 = arith.constant 0 : i32
    %c0_i32_0 = arith.constant 0 : i32
    %c0_i32_1 = arith.constant 0 : i32
    %c0_i32_2 = arith.constant 0 : i32
    return %c0_i32, %c0_i32_0, %c0_i32_1 : i32, i32, i32
  }
  func.func @transform_5(%arg0: i32) -> (i32, i32) {
    %c0_i32 = arith.constant 0 : i32
    %c0_i32_0 = arith.constant 0 : i32
    %c0_i32_1 = arith.constant 0 : i32
    return %c0_i32, %c0_i32_0 : i32, i32
  }
  func.func @transform_6(%arg0: i32) -> (i32, i32) {
    %c0_i32 = arith.constant 0 : i32
    %c0_i32_0 = arith.constant 0 : i32
    %c0_i32_1 = arith.constant 0 : i32
    return %c0_i32, %c0_i32_0 : i32, i32
  }
  func.func @transform_7(%arg0: i32) -> (i32, i32) {
    %c0_i32 = arith.constant 0 : i32
    %c0_i32_0 = arith.constant 0 : i32
    %c0_i32_1 = arith.constant 0 : i32
    return %c0_i32, %c0_i32_0 : i32, i32
  }
  func.func @transform_8(%arg0: i32) -> (i32, i32) {
    %c0_i32 = arith.constant 0 : i32
    %c0_i32_0 = arith.constant 0 : i32
    %c0_i32_1 = arith.constant 0 : i32
    return %c0_i32, %c0_i32_0 : i32, i32
  }
  func.func @transform_9(%arg0: i32) -> (i32, i32, i32) {
    %c0_i32 = arith.constant 0 : i32
    %c0_i32_0 = arith.constant 0 : i32
    %c0_i32_1 = arith.constant 0 : i32
    return %arg0, %c0_i32, %c0_i32_0 : i32, i32, i32
  }
  func.func @transform_10(%arg0: i32) -> (i32, i32, i32) {
    %c0_i32 = arith.constant 0 : i32
    %c0_i32_0 = arith.constant 0 : i32
    %c0_i32_1 = arith.constant 0 : i32
    return %arg0, %c0_i32, %c0_i32_0 : i32, i32, i32
  }
}

module attributes {stable_mosaic.version = 11 : i64} {
  func.func @kernel(%arg0: i32, %arg1: memref<1x110x128xbf16, #tpu.memory_space<vmem>>, %arg2: memref<9x128x128xbf16, #tpu.memory_space<vmem>>, %arg3: memref<1x128xf32, #tpu.memory_space<vmem>>, %arg4: memref<1x128xf32, #tpu.memory_space<vmem>>, %arg5: memref<80x1xf32, #tpu.memory_space<vmem>>, %arg6: memref<1x110x128xf32, #tpu.memory_space<vmem>>, %arg7: memref<1x110x128xbf16, #tpu.memory_space<vmem>>, %arg8: memref<1x110x128xf32, #tpu.memory_space<vmem>>) attributes {dimension_semantics = [#tpu.dimension_semantics<parallel>], iteration_bounds = array<i64: 2>, scalar_prefetch = 0 : i64, scratch_operands = 0 : i64, tpu.core_type = #tpu.core_type<tc>, window_params = [{transform_indices = @transform_0, window_bounds = array<i64: 1, 110, 128>}, {pipeline_mode = #tpu.pipeline_mode<synchronous>, transform_indices = @transform_1, window_bounds = array<i64: 9, 128, 128>}, {pipeline_mode = #tpu.pipeline_mode<synchronous>, transform_indices = @transform_2, window_bounds = array<i64: 1, 128>}, {pipeline_mode = #tpu.pipeline_mode<synchronous>, transform_indices = @transform_3, window_bounds = array<i64: 1, 128>}, {pipeline_mode = #tpu.pipeline_mode<synchronous>, transform_indices = @transform_4, window_bounds = array<i64: 80, 1>}, {transform_indices = @transform_5, window_bounds = array<i64: 1, 110, 128>}, {transform_indices = @transform_6, window_bounds = array<i64: 1, 110, 128>}, {transform_indices = @transform_7, window_bounds = array<i64: 1, 110, 128>}]} {
    %cst = arith.constant 0.000000e+00 : f32
    %0 = vector.broadcast %cst : f32 to vector<80x128xf32>
    %c0 = arith.constant 0 : index
    %c0_0 = arith.constant 0 : index
    %c0_1 = arith.constant 0 : index
    %1 = vector.load %arg1[%c0, %c0_0, %c0_1] : memref<1x110x128xbf16, #tpu.memory_space<vmem>>, vector<1x80x128xbf16>
    %2 = vector.shape_cast %1 : vector<1x80x128xbf16> to vector<80x128xbf16>
    %c0_2 = arith.constant 0 : index
    %c0_3 = arith.constant 0 : index
    %c0_4 = arith.constant 0 : index
    %3 = vector.load %arg2[%c0_2, %c0_3, %c0_4] : memref<9x128x128xbf16, #tpu.memory_space<vmem>>, vector<1x128x128xbf16>
    %4 = vector.shape_cast %3 : vector<1x128x128xbf16> to vector<128x128xbf16>
    %cst_5 = arith.constant dense<0.000000e+00> : vector<80x128xf32>
    %5 = tpu.matmul %2, %4, %cst_5 {dimension_numbers = #tpu.dot_dimension_numbers<[1], [0], [0], [1], [0, 0, 1, 1], [], []>} : vector<80x128xbf16>, vector<128x128xbf16>, vector<80x128xf32> -> vector<80x128xf32>
    %6 = arith.addf %0, %5 : vector<80x128xf32>
    %c0_6 = arith.constant 0 : index
    %c1 = arith.constant 1 : index
    %c0_7 = arith.constant 0 : index
    %7 = vector.load %arg1[%c0_6, %c1, %c0_7] : memref<1x110x128xbf16, #tpu.memory_space<vmem>>, vector<1x80x128xbf16>
    %8 = vector.shape_cast %7 : vector<1x80x128xbf16> to vector<80x128xbf16>
    %c1_8 = arith.constant 1 : index
    %c0_9 = arith.constant 0 : index
    %c0_10 = arith.constant 0 : index
    %9 = vector.load %arg2[%c1_8, %c0_9, %c0_10] : memref<9x128x128xbf16, #tpu.memory_space<vmem>>, vector<1x128x128xbf16>
    %10 = vector.shape_cast %9 : vector<1x128x128xbf16> to vector<128x128xbf16>
    %cst_11 = arith.constant dense<0.000000e+00> : vector<80x128xf32>
    %11 = tpu.matmul %8, %10, %cst_11 {dimension_numbers = #tpu.dot_dimension_numbers<[1], [0], [0], [1], [0, 0, 1, 1], [], []>} : vector<80x128xbf16>, vector<128x128xbf16>, vector<80x128xf32> -> vector<80x128xf32>
    %12 = arith.addf %6, %11 : vector<80x128xf32>
    %c0_12 = arith.constant 0 : index
    %c2 = arith.constant 2 : index
    %c0_13 = arith.constant 0 : index
    %13 = vector.load %arg1[%c0_12, %c2, %c0_13] : memref<1x110x128xbf16, #tpu.memory_space<vmem>>, vector<1x80x128xbf16>
    %14 = vector.shape_cast %13 : vector<1x80x128xbf16> to vector<80x128xbf16>
    %c2_14 = arith.constant 2 : index
    %c0_15 = arith.constant 0 : index
    %c0_16 = arith.constant 0 : index
    %15 = vector.load %arg2[%c2_14, %c0_15, %c0_16] : memref<9x128x128xbf16, #tpu.memory_space<vmem>>, vector<1x128x128xbf16>
    %16 = vector.shape_cast %15 : vector<1x128x128xbf16> to vector<128x128xbf16>
    %cst_17 = arith.constant dense<0.000000e+00> : vector<80x128xf32>
    %17 = tpu.matmul %14, %16, %cst_17 {dimension_numbers = #tpu.dot_dimension_numbers<[1], [0], [0], [1], [0, 0, 1, 1], [], []>} : vector<80x128xbf16>, vector<128x128xbf16>, vector<80x128xf32> -> vector<80x128xf32>
    %18 = arith.addf %12, %17 : vector<80x128xf32>
    %c0_18 = arith.constant 0 : index
    %c10 = arith.constant 10 : index
    %c0_19 = arith.constant 0 : index
    %19 = vector.load %arg1[%c0_18, %c10, %c0_19] : memref<1x110x128xbf16, #tpu.memory_space<vmem>>, vector<1x80x128xbf16>
    %20 = vector.shape_cast %19 : vector<1x80x128xbf16> to vector<80x128xbf16>
    %c3 = arith.constant 3 : index
    %c0_20 = arith.constant 0 : index
    %c0_21 = arith.constant 0 : index
    %21 = vector.load %arg2[%c3, %c0_20, %c0_21] : memref<9x128x128xbf16, #tpu.memory_space<vmem>>, vector<1x128x128xbf16>
    %22 = vector.shape_cast %21 : vector<1x128x128xbf16> to vector<128x128xbf16>
    %cst_22 = arith.constant dense<0.000000e+00> : vector<80x128xf32>
    %23 = tpu.matmul %20, %22, %cst_22 {dimension_numbers = #tpu.dot_dimension_numbers<[1], [0], [0], [1], [0, 0, 1, 1], [], []>} : vector<80x128xbf16>, vector<128x128xbf16>, vector<80x128xf32> -> vector<80x128xf32>
    %24 = arith.addf %18, %23 : vector<80x128xf32>
    %c0_23 = arith.constant 0 : index
    %c11 = arith.constant 11 : index
    %c0_24 = arith.constant 0 : index
    %25 = vector.load %arg1[%c0_23, %c11, %c0_24] : memref<1x110x128xbf16, #tpu.memory_space<vmem>>, vector<1x80x128xbf16>
    %26 = vector.shape_cast %25 : vector<1x80x128xbf16> to vector<80x128xbf16>
    %c4 = arith.constant 4 : index
    %c0_25 = arith.constant 0 : index
    %c0_26 = arith.constant 0 : index
    %27 = vector.load %arg2[%c4, %c0_25, %c0_26] : memref<9x128x128xbf16, #tpu.memory_space<vmem>>, vector<1x128x128xbf16>
    %28 = vector.shape_cast %27 : vector<1x128x128xbf16> to vector<128x128xbf16>
    %cst_27 = arith.constant dense<0.000000e+00> : vector<80x128xf32>
    %29 = tpu.matmul %26, %28, %cst_27 {dimension_numbers = #tpu.dot_dimension_numbers<[1], [0], [0], [1], [0, 0, 1, 1], [], []>} : vector<80x128xbf16>, vector<128x128xbf16>, vector<80x128xf32> -> vector<80x128xf32>
    %30 = arith.addf %24, %29 : vector<80x128xf32>
    %c0_28 = arith.constant 0 : index
    %c12 = arith.constant 12 : index
    %c0_29 = arith.constant 0 : index
    %31 = vector.load %arg1[%c0_28, %c12, %c0_29] : memref<1x110x128xbf16, #tpu.memory_space<vmem>>, vector<1x80x128xbf16>
    %32 = vector.shape_cast %31 : vector<1x80x128xbf16> to vector<80x128xbf16>
    %c5 = arith.constant 5 : index
    %c0_30 = arith.constant 0 : index
    %c0_31 = arith.constant 0 : index
    %33 = vector.load %arg2[%c5, %c0_30, %c0_31] : memref<9x128x128xbf16, #tpu.memory_space<vmem>>, vector<1x128x128xbf16>
    %34 = vector.shape_cast %33 : vector<1x128x128xbf16> to vector<128x128xbf16>
    %cst_32 = arith.constant dense<0.000000e+00> : vector<80x128xf32>
    %35 = tpu.matmul %32, %34, %cst_32 {dimension_numbers = #tpu.dot_dimension_numbers<[1], [0], [0], [1], [0, 0, 1, 1], [], []>} : vector<80x128xbf16>, vector<128x128xbf16>, vector<80x128xf32> -> vector<80x128xf32>
    %36 = arith.addf %30, %35 : vector<80x128xf32>
    %c0_33 = arith.constant 0 : index
    %c20 = arith.constant 20 : index
    %c0_34 = arith.constant 0 : index
    %37 = vector.load %arg1[%c0_33, %c20, %c0_34] : memref<1x110x128xbf16, #tpu.memory_space<vmem>>, vector<1x80x128xbf16>
    %38 = vector.shape_cast %37 : vector<1x80x128xbf16> to vector<80x128xbf16>
    %c6 = arith.constant 6 : index
    %c0_35 = arith.constant 0 : index
    %c0_36 = arith.constant 0 : index
    %39 = vector.load %arg2[%c6, %c0_35, %c0_36] : memref<9x128x128xbf16, #tpu.memory_space<vmem>>, vector<1x128x128xbf16>
    %40 = vector.shape_cast %39 : vector<1x128x128xbf16> to vector<128x128xbf16>
    %cst_37 = arith.constant dense<0.000000e+00> : vector<80x128xf32>
    %41 = tpu.matmul %38, %40, %cst_37 {dimension_numbers = #tpu.dot_dimension_numbers<[1], [0], [0], [1], [0, 0, 1, 1], [], []>} : vector<80x128xbf16>, vector<128x128xbf16>, vector<80x128xf32> -> vector<80x128xf32>
    %42 = arith.addf %36, %41 : vector<80x128xf32>
    %c0_38 = arith.constant 0 : index
    %c21 = arith.constant 21 : index
    %c0_39 = arith.constant 0 : index
    %43 = vector.load %arg1[%c0_38, %c21, %c0_39] : memref<1x110x128xbf16, #tpu.memory_space<vmem>>, vector<1x80x128xbf16>
    %44 = vector.shape_cast %43 : vector<1x80x128xbf16> to vector<80x128xbf16>
    %c7 = arith.constant 7 : index
    %c0_40 = arith.constant 0 : index
    %c0_41 = arith.constant 0 : index
    %45 = vector.load %arg2[%c7, %c0_40, %c0_41] : memref<9x128x128xbf16, #tpu.memory_space<vmem>>, vector<1x128x128xbf16>
    %46 = vector.shape_cast %45 : vector<1x128x128xbf16> to vector<128x128xbf16>
    %cst_42 = arith.constant dense<0.000000e+00> : vector<80x128xf32>
    %47 = tpu.matmul %44, %46, %cst_42 {dimension_numbers = #tpu.dot_dimension_numbers<[1], [0], [0], [1], [0, 0, 1, 1], [], []>} : vector<80x128xbf16>, vector<128x128xbf16>, vector<80x128xf32> -> vector<80x128xf32>
    %48 = arith.addf %42, %47 : vector<80x128xf32>
    %c0_43 = arith.constant 0 : index
    %c22 = arith.constant 22 : index
    %c0_44 = arith.constant 0 : index
    %49 = vector.load %arg1[%c0_43, %c22, %c0_44] : memref<1x110x128xbf16, #tpu.memory_space<vmem>>, vector<1x80x128xbf16>
    %50 = vector.shape_cast %49 : vector<1x80x128xbf16> to vector<80x128xbf16>
    %c8 = arith.constant 8 : index
    %c0_45 = arith.constant 0 : index
    %c0_46 = arith.constant 0 : index
    %51 = vector.load %arg2[%c8, %c0_45, %c0_46] : memref<9x128x128xbf16, #tpu.memory_space<vmem>>, vector<1x128x128xbf16>
    %52 = vector.shape_cast %51 : vector<1x128x128xbf16> to vector<128x128xbf16>
    %cst_47 = arith.constant dense<0.000000e+00> : vector<80x128xf32>
    %53 = tpu.matmul %50, %52, %cst_47 {dimension_numbers = #tpu.dot_dimension_numbers<[1], [0], [0], [1], [0, 0, 1, 1], [], []>} : vector<80x128xbf16>, vector<128x128xbf16>, vector<80x128xf32> -> vector<80x128xf32>
    %54 = arith.addf %48, %53 : vector<80x128xf32>
    %c0_48 = arith.constant 0 : index
    %c11_49 = arith.constant 11 : index
    %c0_50 = arith.constant 0 : index
    %55 = vector.load %arg6[%c0_48, %c11_49, %c0_50] : memref<1x110x128xf32, #tpu.memory_space<vmem>>, vector<1x80x128xf32>
    %56 = vector.shape_cast %55 : vector<1x80x128xf32> to vector<80x128xf32>
    %57 = arith.addf %54, %56 : vector<80x128xf32>
    %c0_51 = arith.constant 0 : index
    %c11_52 = arith.constant 11 : index
    %c0_53 = arith.constant 0 : index
    %58 = vector.load %arg8[%c0_51, %c11_52, %c0_53] : memref<1x110x128xf32, #tpu.memory_space<vmem>>, vector<1x80x128xf32>
    %59 = vector.shape_cast %58 : vector<1x80x128xf32> to vector<80x128xf32>
    %60 = vector.shape_cast %57 : vector<80x128xf32> to vector<1x80x128xf32>
    tpu.vector_store %arg8[%c0_51, %c11_52, %c0_53], %60 {strides = array<i32>} : memref<1x110x128xf32, #tpu.memory_space<vmem>>, vector<1x80x128xf32>,
    %c0_54 = arith.constant 0 : index
    %c0_55 = arith.constant 0 : index
    %61 = vector.load %arg3[%c0_54, %c0_55] : memref<1x128xf32, #tpu.memory_space<vmem>>, vector<1x128xf32>
    %62 = vector.broadcast %61 : vector<1x128xf32> to vector<80x128xf32>
    %63 = arith.mulf %57, %62 : vector<80x128xf32>
    %c0_56 = arith.constant 0 : index
    %c0_57 = arith.constant 0 : index
    %64 = vector.load %arg4[%c0_56, %c0_57] : memref<1x128xf32, #tpu.memory_space<vmem>>, vector<1x128xf32>
    %65 = vector.broadcast %64 : vector<1x128xf32> to vector<80x128xf32>
    %66 = arith.addf %63, %65 : vector<80x128xf32>
    %cst_58 = arith.constant 0.000000e+00 : f32
    %67 = vector.broadcast %cst_58 : f32 to vector<80x128xf32>
    %68 = arith.maximumf %66, %67 : vector<80x128xf32>
    %c0_59 = arith.constant 0 : index
    %c0_60 = arith.constant 0 : index
    %69 = vector.load %arg5[%c0_59, %c0_60] : memref<80x1xf32, #tpu.memory_space<vmem>>, vector<80x1xf32>
    %70 = vector.broadcast %69 : vector<80x1xf32> to vector<80x128xf32>
    %71 = arith.mulf %68, %70 : vector<80x128xf32>
    %cst_61 = arith.constant 0.000000e+00 : bf16
    %72 = vector.broadcast %cst_61 : bf16 to vector<1x110x128xbf16>
    %c0_62 = arith.constant 0 : index
    %c0_63 = arith.constant 0 : index
    %c0_64 = arith.constant 0 : index
    %73 = vector.load %arg7[%c0_62, %c0_63, %c0_64] : memref<1x110x128xbf16, #tpu.memory_space<vmem>>, vector<1x110x128xbf16>
    tpu.vector_store %arg7[%c0_62, %c0_63, %c0_64], %72 {strides = array<i32>} : memref<1x110x128xbf16, #tpu.memory_space<vmem>>, vector<1x110x128xbf16>,
    %74 = arith.truncf %71 : vector<80x128xf32> to vector<80x128xbf16>
    %c0_65 = arith.constant 0 : index
    %c11_66 = arith.constant 11 : index
    %c0_67 = arith.constant 0 : index
    %75 = vector.load %arg7[%c0_65, %c11_66, %c0_67] : memref<1x110x128xbf16, #tpu.memory_space<vmem>>, vector<1x80x128xbf16>
    %76 = vector.shape_cast %75 : vector<1x80x128xbf16> to vector<80x128xbf16>
    %77 = vector.shape_cast %74 : vector<80x128xbf16> to vector<1x80x128xbf16>
    tpu.vector_store %arg7[%c0_65, %c11_66, %c0_67], %77 {strides = array<i32>} : memref<1x110x128xbf16, #tpu.memory_space<vmem>>, vector<1x80x128xbf16>,
    return
  }
  func.func @transform_0(%arg0: i32) -> (i32, i32, i32) {
    %c0_i32 = arith.constant 0 : i32
    %c0_i32_0 = arith.constant 0 : i32
    %c0_i32_1 = arith.constant 0 : i32
    return %arg0, %c0_i32, %c0_i32_0 : i32, i32, i32
  }
  func.func @transform_1(%arg0: i32) -> (i32, i32, i32) {
    %c0_i32 = arith.constant 0 : i32
    %c0_i32_0 = arith.constant 0 : i32
    %c0_i32_1 = arith.constant 0 : i32
    %c0_i32_2 = arith.constant 0 : i32
    return %c0_i32, %c0_i32_0, %c0_i32_1 : i32, i32, i32
  }
  func.func @transform_2(%arg0: i32) -> (i32, i32) {
    %c0_i32 = arith.constant 0 : i32
    %c0_i32_0 = arith.constant 0 : i32
    %c0_i32_1 = arith.constant 0 : i32
    return %c0_i32, %c0_i32_0 : i32, i32
  }
  func.func @transform_3(%arg0: i32) -> (i32, i32) {
    %c0_i32 = arith.constant 0 : i32
    %c0_i32_0 = arith.constant 0 : i32
    %c0_i32_1 = arith.constant 0 : i32
    return %c0_i32, %c0_i32_0 : i32, i32
  }
  func.func @transform_4(%arg0: i32) -> (i32, i32) {
    %c0_i32 = arith.constant 0 : i32
    %c0_i32_0 = arith.constant 0 : i32
    %c0_i32_1 = arith.constant 0 : i32
    return %c0_i32, %c0_i32_0 : i32, i32
  }
  func.func @transform_5(%arg0: i32) -> (i32, i32, i32) {
    %c0_i32 = arith.constant 0 : i32
    %c0_i32_0 = arith.constant 0 : i32
    %c0_i32_1 = arith.constant 0 : i32
    return %arg0, %c0_i32, %c0_i32_0 : i32, i32, i32
  }
  func.func @transform_6(%arg0: i32) -> (i32, i32, i32) {
    %c0_i32 = arith.constant 0 : i32
    %c0_i32_0 = arith.constant 0 : i32
    %c0_i32_1 = arith.constant 0 : i32
    return %arg0, %c0_i32, %c0_i32_0 : i32, i32, i32
  }
  func.func @transform_7(%arg0: i32) -> (i32, i32, i32) {
    %c0_i32 = arith.constant 0 : i32
    %c0_i32_0 = arith.constant 0 : i32
    %c0_i32_1 = arith.constant 0 : i32
    return %arg0, %c0_i32, %c0_i32_0 : i32, i32, i32
  }
}

module attributes {stable_mosaic.version = 11 : i64} {
  func.func @kernel(%arg0: i32, %arg1: memref<1x110x128xbf16, #tpu.memory_space<vmem>>, %arg2: memref<9x128x128xbf16, #tpu.memory_space<vmem>>, %arg3: memref<1x128xf32, #tpu.memory_space<vmem>>, %arg4: memref<1x128xf32, #tpu.memory_space<vmem>>, %arg5: memref<80x1xf32, #tpu.memory_space<vmem>>, %arg6: memref<1x110x128xbf16, #tpu.memory_space<vmem>>) attributes {dimension_semantics = [#tpu.dimension_semantics<parallel>], iteration_bounds = array<i64: 2>, scalar_prefetch = 0 : i64, scratch_operands = 0 : i64, tpu.core_type = #tpu.core_type<tc>, window_params = [{transform_indices = @transform_0, window_bounds = array<i64: 1, 110, 128>}, {pipeline_mode = #tpu.pipeline_mode<synchronous>, transform_indices = @transform_1, window_bounds = array<i64: 9, 128, 128>}, {pipeline_mode = #tpu.pipeline_mode<synchronous>, transform_indices = @transform_2, window_bounds = array<i64: 1, 128>}, {pipeline_mode = #tpu.pipeline_mode<synchronous>, transform_indices = @transform_3, window_bounds = array<i64: 1, 128>}, {pipeline_mode = #tpu.pipeline_mode<synchronous>, transform_indices = @transform_4, window_bounds = array<i64: 80, 1>}, {transform_indices = @transform_5, window_bounds = array<i64: 1, 110, 128>}]} {
    %cst = arith.constant 0.000000e+00 : f32
    %0 = vector.broadcast %cst : f32 to vector<80x128xf32>
    %c0 = arith.constant 0 : index
    %c0_0 = arith.constant 0 : index
    %c0_1 = arith.constant 0 : index
    %1 = vector.load %arg1[%c0, %c0_0, %c0_1] : memref<1x110x128xbf16, #tpu.memory_space<vmem>>, vector<1x80x128xbf16>
    %2 = vector.shape_cast %1 : vector<1x80x128xbf16> to vector<80x128xbf16>
    %c0_2 = arith.constant 0 : index
    %c0_3 = arith.constant 0 : index
    %c0_4 = arith.constant 0 : index
    %3 = vector.load %arg2[%c0_2, %c0_3, %c0_4] : memref<9x128x128xbf16, #tpu.memory_space<vmem>>, vector<1x128x128xbf16>
    %4 = vector.shape_cast %3 : vector<1x128x128xbf16> to vector<128x128xbf16>
    %cst_5 = arith.constant dense<0.000000e+00> : vector<80x128xf32>
    %5 = tpu.matmul %2, %4, %cst_5 {dimension_numbers = #tpu.dot_dimension_numbers<[1], [0], [0], [1], [0, 0, 1, 1], [], []>} : vector<80x128xbf16>, vector<128x128xbf16>, vector<80x128xf32> -> vector<80x128xf32>
    %6 = arith.addf %0, %5 : vector<80x128xf32>
    %c0_6 = arith.constant 0 : index
    %c1 = arith.constant 1 : index
    %c0_7 = arith.constant 0 : index
    %7 = vector.load %arg1[%c0_6, %c1, %c0_7] : memref<1x110x128xbf16, #tpu.memory_space<vmem>>, vector<1x80x128xbf16>
    %8 = vector.shape_cast %7 : vector<1x80x128xbf16> to vector<80x128xbf16>
    %c1_8 = arith.constant 1 : index
    %c0_9 = arith.constant 0 : index
    %c0_10 = arith.constant 0 : index
    %9 = vector.load %arg2[%c1_8, %c0_9, %c0_10] : memref<9x128x128xbf16, #tpu.memory_space<vmem>>, vector<1x128x128xbf16>
    %10 = vector.shape_cast %9 : vector<1x128x128xbf16> to vector<128x128xbf16>
    %cst_11 = arith.constant dense<0.000000e+00> : vector<80x128xf32>
    %11 = tpu.matmul %8, %10, %cst_11 {dimension_numbers = #tpu.dot_dimension_numbers<[1], [0], [0], [1], [0, 0, 1, 1], [], []>} : vector<80x128xbf16>, vector<128x128xbf16>, vector<80x128xf32> -> vector<80x128xf32>
    %12 = arith.addf %6, %11 : vector<80x128xf32>
    %c0_12 = arith.constant 0 : index
    %c2 = arith.constant 2 : index
    %c0_13 = arith.constant 0 : index
    %13 = vector.load %arg1[%c0_12, %c2, %c0_13] : memref<1x110x128xbf16, #tpu.memory_space<vmem>>, vector<1x80x128xbf16>
    %14 = vector.shape_cast %13 : vector<1x80x128xbf16> to vector<80x128xbf16>
    %c2_14 = arith.constant 2 : index
    %c0_15 = arith.constant 0 : index
    %c0_16 = arith.constant 0 : index
    %15 = vector.load %arg2[%c2_14, %c0_15, %c0_16] : memref<9x128x128xbf16, #tpu.memory_space<vmem>>, vector<1x128x128xbf16>
    %16 = vector.shape_cast %15 : vector<1x128x128xbf16> to vector<128x128xbf16>
    %cst_17 = arith.constant dense<0.000000e+00> : vector<80x128xf32>
    %17 = tpu.matmul %14, %16, %cst_17 {dimension_numbers = #tpu.dot_dimension_numbers<[1], [0], [0], [1], [0, 0, 1, 1], [], []>} : vector<80x128xbf16>, vector<128x128xbf16>, vector<80x128xf32> -> vector<80x128xf32>
    %18 = arith.addf %12, %17 : vector<80x128xf32>
    %c0_18 = arith.constant 0 : index
    %c10 = arith.constant 10 : index
    %c0_19 = arith.constant 0 : index
    %19 = vector.load %arg1[%c0_18, %c10, %c0_19] : memref<1x110x128xbf16, #tpu.memory_space<vmem>>, vector<1x80x128xbf16>
    %20 = vector.shape_cast %19 : vector<1x80x128xbf16> to vector<80x128xbf16>
    %c3 = arith.constant 3 : index
    %c0_20 = arith.constant 0 : index
    %c0_21 = arith.constant 0 : index
    %21 = vector.load %arg2[%c3, %c0_20, %c0_21] : memref<9x128x128xbf16, #tpu.memory_space<vmem>>, vector<1x128x128xbf16>
    %22 = vector.shape_cast %21 : vector<1x128x128xbf16> to vector<128x128xbf16>
    %cst_22 = arith.constant dense<0.000000e+00> : vector<80x128xf32>
    %23 = tpu.matmul %20, %22, %cst_22 {dimension_numbers = #tpu.dot_dimension_numbers<[1], [0], [0], [1], [0, 0, 1, 1], [], []>} : vector<80x128xbf16>, vector<128x128xbf16>, vector<80x128xf32> -> vector<80x128xf32>
    %24 = arith.addf %18, %23 : vector<80x128xf32>
    %c0_23 = arith.constant 0 : index
    %c11 = arith.constant 11 : index
    %c0_24 = arith.constant 0 : index
    %25 = vector.load %arg1[%c0_23, %c11, %c0_24] : memref<1x110x128xbf16, #tpu.memory_space<vmem>>, vector<1x80x128xbf16>
    %26 = vector.shape_cast %25 : vector<1x80x128xbf16> to vector<80x128xbf16>
    %c4 = arith.constant 4 : index
    %c0_25 = arith.constant 0 : index
    %c0_26 = arith.constant 0 : index
    %27 = vector.load %arg2[%c4, %c0_25, %c0_26] : memref<9x128x128xbf16, #tpu.memory_space<vmem>>, vector<1x128x128xbf16>
    %28 = vector.shape_cast %27 : vector<1x128x128xbf16> to vector<128x128xbf16>
    %cst_27 = arith.constant dense<0.000000e+00> : vector<80x128xf32>
    %29 = tpu.matmul %26, %28, %cst_27 {dimension_numbers = #tpu.dot_dimension_numbers<[1], [0], [0], [1], [0, 0, 1, 1], [], []>} : vector<80x128xbf16>, vector<128x128xbf16>, vector<80x128xf32> -> vector<80x128xf32>
    %30 = arith.addf %24, %29 : vector<80x128xf32>
    %c0_28 = arith.constant 0 : index
    %c12 = arith.constant 12 : index
    %c0_29 = arith.constant 0 : index
    %31 = vector.load %arg1[%c0_28, %c12, %c0_29] : memref<1x110x128xbf16, #tpu.memory_space<vmem>>, vector<1x80x128xbf16>
    %32 = vector.shape_cast %31 : vector<1x80x128xbf16> to vector<80x128xbf16>
    %c5 = arith.constant 5 : index
    %c0_30 = arith.constant 0 : index
    %c0_31 = arith.constant 0 : index
    %33 = vector.load %arg2[%c5, %c0_30, %c0_31] : memref<9x128x128xbf16, #tpu.memory_space<vmem>>, vector<1x128x128xbf16>
    %34 = vector.shape_cast %33 : vector<1x128x128xbf16> to vector<128x128xbf16>
    %cst_32 = arith.constant dense<0.000000e+00> : vector<80x128xf32>
    %35 = tpu.matmul %32, %34, %cst_32 {dimension_numbers = #tpu.dot_dimension_numbers<[1], [0], [0], [1], [0, 0, 1, 1], [], []>} : vector<80x128xbf16>, vector<128x128xbf16>, vector<80x128xf32> -> vector<80x128xf32>
    %36 = arith.addf %30, %35 : vector<80x128xf32>
    %c0_33 = arith.constant 0 : index
    %c20 = arith.constant 20 : index
    %c0_34 = arith.constant 0 : index
    %37 = vector.load %arg1[%c0_33, %c20, %c0_34] : memref<1x110x128xbf16, #tpu.memory_space<vmem>>, vector<1x80x128xbf16>
    %38 = vector.shape_cast %37 : vector<1x80x128xbf16> to vector<80x128xbf16>
    %c6 = arith.constant 6 : index
    %c0_35 = arith.constant 0 : index
    %c0_36 = arith.constant 0 : index
    %39 = vector.load %arg2[%c6, %c0_35, %c0_36] : memref<9x128x128xbf16, #tpu.memory_space<vmem>>, vector<1x128x128xbf16>
    %40 = vector.shape_cast %39 : vector<1x128x128xbf16> to vector<128x128xbf16>
    %cst_37 = arith.constant dense<0.000000e+00> : vector<80x128xf32>
    %41 = tpu.matmul %38, %40, %cst_37 {dimension_numbers = #tpu.dot_dimension_numbers<[1], [0], [0], [1], [0, 0, 1, 1], [], []>} : vector<80x128xbf16>, vector<128x128xbf16>, vector<80x128xf32> -> vector<80x128xf32>
    %42 = arith.addf %36, %41 : vector<80x128xf32>
    %c0_38 = arith.constant 0 : index
    %c21 = arith.constant 21 : index
    %c0_39 = arith.constant 0 : index
    %43 = vector.load %arg1[%c0_38, %c21, %c0_39] : memref<1x110x128xbf16, #tpu.memory_space<vmem>>, vector<1x80x128xbf16>
    %44 = vector.shape_cast %43 : vector<1x80x128xbf16> to vector<80x128xbf16>
    %c7 = arith.constant 7 : index
    %c0_40 = arith.constant 0 : index
    %c0_41 = arith.constant 0 : index
    %45 = vector.load %arg2[%c7, %c0_40, %c0_41] : memref<9x128x128xbf16, #tpu.memory_space<vmem>>, vector<1x128x128xbf16>
    %46 = vector.shape_cast %45 : vector<1x128x128xbf16> to vector<128x128xbf16>
    %cst_42 = arith.constant dense<0.000000e+00> : vector<80x128xf32>
    %47 = tpu.matmul %44, %46, %cst_42 {dimension_numbers = #tpu.dot_dimension_numbers<[1], [0], [0], [1], [0, 0, 1, 1], [], []>} : vector<80x128xbf16>, vector<128x128xbf16>, vector<80x128xf32> -> vector<80x128xf32>
    %48 = arith.addf %42, %47 : vector<80x128xf32>
    %c0_43 = arith.constant 0 : index
    %c22 = arith.constant 22 : index
    %c0_44 = arith.constant 0 : index
    %49 = vector.load %arg1[%c0_43, %c22, %c0_44] : memref<1x110x128xbf16, #tpu.memory_space<vmem>>, vector<1x80x128xbf16>
    %50 = vector.shape_cast %49 : vector<1x80x128xbf16> to vector<80x128xbf16>
    %c8 = arith.constant 8 : index
    %c0_45 = arith.constant 0 : index
    %c0_46 = arith.constant 0 : index
    %51 = vector.load %arg2[%c8, %c0_45, %c0_46] : memref<9x128x128xbf16, #tpu.memory_space<vmem>>, vector<1x128x128xbf16>
    %52 = vector.shape_cast %51 : vector<1x128x128xbf16> to vector<128x128xbf16>
    %cst_47 = arith.constant dense<0.000000e+00> : vector<80x128xf32>
    %53 = tpu.matmul %50, %52, %cst_47 {dimension_numbers = #tpu.dot_dimension_numbers<[1], [0], [0], [1], [0, 0, 1, 1], [], []>} : vector<80x128xbf16>, vector<128x128xbf16>, vector<80x128xf32> -> vector<80x128xf32>
    %54 = arith.addf %48, %53 : vector<80x128xf32>
    %c0_48 = arith.constant 0 : index
    %c0_49 = arith.constant 0 : index
    %55 = vector.load %arg3[%c0_48, %c0_49] : memref<1x128xf32, #tpu.memory_space<vmem>>, vector<1x128xf32>
    %56 = vector.broadcast %55 : vector<1x128xf32> to vector<80x128xf32>
    %57 = arith.mulf %54, %56 : vector<80x128xf32>
    %c0_50 = arith.constant 0 : index
    %c0_51 = arith.constant 0 : index
    %58 = vector.load %arg4[%c0_50, %c0_51] : memref<1x128xf32, #tpu.memory_space<vmem>>, vector<1x128xf32>
    %59 = vector.broadcast %58 : vector<1x128xf32> to vector<80x128xf32>
    %60 = arith.addf %57, %59 : vector<80x128xf32>
    %cst_52 = arith.constant 0.000000e+00 : f32
    %61 = vector.broadcast %cst_52 : f32 to vector<80x128xf32>
    %62 = arith.maximumf %60, %61 : vector<80x128xf32>
    %c0_53 = arith.constant 0 : index
    %c0_54 = arith.constant 0 : index
    %63 = vector.load %arg5[%c0_53, %c0_54] : memref<80x1xf32, #tpu.memory_space<vmem>>, vector<80x1xf32>
    %64 = vector.broadcast %63 : vector<80x1xf32> to vector<80x128xf32>
    %65 = arith.mulf %62, %64 : vector<80x128xf32>
    %cst_55 = arith.constant 0.000000e+00 : bf16
    %66 = vector.broadcast %cst_55 : bf16 to vector<1x110x128xbf16>
    %c0_56 = arith.constant 0 : index
    %c0_57 = arith.constant 0 : index
    %c0_58 = arith.constant 0 : index
    %67 = vector.load %arg6[%c0_56, %c0_57, %c0_58] : memref<1x110x128xbf16, #tpu.memory_space<vmem>>, vector<1x110x128xbf16>
    tpu.vector_store %arg6[%c0_56, %c0_57, %c0_58], %66 {strides = array<i32>} : memref<1x110x128xbf16, #tpu.memory_space<vmem>>, vector<1x110x128xbf16>,
    %68 = arith.truncf %65 : vector<80x128xf32> to vector<80x128xbf16>
    %c0_59 = arith.constant 0 : index
    %c11_60 = arith.constant 11 : index
    %c0_61 = arith.constant 0 : index
    %69 = vector.load %arg6[%c0_59, %c11_60, %c0_61] : memref<1x110x128xbf16, #tpu.memory_space<vmem>>, vector<1x80x128xbf16>
    %70 = vector.shape_cast %69 : vector<1x80x128xbf16> to vector<80x128xbf16>
    %71 = vector.shape_cast %68 : vector<80x128xbf16> to vector<1x80x128xbf16>
    tpu.vector_store %arg6[%c0_59, %c11_60, %c0_61], %71 {strides = array<i32>} : memref<1x110x128xbf16, #tpu.memory_space<vmem>>, vector<1x80x128xbf16>,
    return
  }
  func.func @transform_0(%arg0: i32) -> (i32, i32, i32) {
    %c0_i32 = arith.constant 0 : i32
    %c0_i32_0 = arith.constant 0 : i32
    %c0_i32_1 = arith.constant 0 : i32
    return %arg0, %c0_i32, %c0_i32_0 : i32, i32, i32
  }
  func.func @transform_1(%arg0: i32) -> (i32, i32, i32) {
    %c0_i32 = arith.constant 0 : i32
    %c0_i32_0 = arith.constant 0 : i32
    %c0_i32_1 = arith.constant 0 : i32
    %c0_i32_2 = arith.constant 0 : i32
    return %c0_i32, %c0_i32_0, %c0_i32_1 : i32, i32, i32
  }
  func.func @transform_2(%arg0: i32) -> (i32, i32) {
    %c0_i32 = arith.constant 0 : i32
    %c0_i32_0 = arith.constant 0 : i32
    %c0_i32_1 = arith.constant 0 : i32
    return %c0_i32, %c0_i32_0 : i32, i32
  }
  func.func @transform_3(%arg0: i32) -> (i32, i32) {
    %c0_i32 = arith.constant 0 : i32
    %c0_i32_0 = arith.constant 0 : i32
    %c0_i32_1 = arith.constant 0 : i32
    return %c0_i32, %c0_i32_0 : i32, i32
  }
  func.func @transform_4(%arg0: i32) -> (i32, i32) {
    %c0_i32 = arith.constant 0 : i32
    %c0_i32_0 = arith.constant 0 : i32
    %c0_i32_1 = arith.constant 0 : i32
    return %c0_i32, %c0_i32_0 : i32, i32
  }
  func.func @transform_5(%arg0: i32) -> (i32, i32, i32) {
    %c0_i32 = arith.constant 0 : i32
    %c0_i32_0 = arith.constant 0 : i32
    %c0_i32_1 = arith.constant 0 : i32
    return %arg0, %c0_i32, %c0_i32_0 : i32, i32, i32
  }
}

module attributes {stable_mosaic.version = 11 : i64} {
  func.func @kernel(%arg0: i32, %arg1: memref<1x110x128xbf16, #tpu.memory_space<vmem>>, %arg2: memref<9x128x128xbf16, #tpu.memory_space<vmem>>, %arg3: memref<1x128xf32, #tpu.memory_space<vmem>>, %arg4: memref<1x128xf32, #tpu.memory_space<vmem>>, %arg5: memref<1x110x128xf32, #tpu.memory_space<vmem>>, %arg6: memref<1x80x128xf32, #tpu.memory_space<vmem>>) attributes {dimension_semantics = [#tpu.dimension_semantics<parallel>], iteration_bounds = array<i64: 2>, scalar_prefetch = 0 : i64, scratch_operands = 0 : i64, tpu.core_type = #tpu.core_type<tc>, window_params = [{transform_indices = @transform_0, window_bounds = array<i64: 1, 110, 128>}, {pipeline_mode = #tpu.pipeline_mode<synchronous>, transform_indices = @transform_1, window_bounds = array<i64: 9, 128, 128>}, {pipeline_mode = #tpu.pipeline_mode<synchronous>, transform_indices = @transform_2, window_bounds = array<i64: 1, 128>}, {pipeline_mode = #tpu.pipeline_mode<synchronous>, transform_indices = @transform_3, window_bounds = array<i64: 1, 128>}, {transform_indices = @transform_4, window_bounds = array<i64: 1, 110, 128>}, {transform_indices = @transform_5, window_bounds = array<i64: 1, 80, 128>}]} {
    %cst = arith.constant 0.000000e+00 : f32
    %0 = vector.broadcast %cst : f32 to vector<80x128xf32>
    %c0 = arith.constant 0 : index
    %c0_0 = arith.constant 0 : index
    %c0_1 = arith.constant 0 : index
    %1 = vector.load %arg1[%c0, %c0_0, %c0_1] : memref<1x110x128xbf16, #tpu.memory_space<vmem>>, vector<1x80x128xbf16>
    %2 = vector.shape_cast %1 : vector<1x80x128xbf16> to vector<80x128xbf16>
    %c0_2 = arith.constant 0 : index
    %c0_3 = arith.constant 0 : index
    %c0_4 = arith.constant 0 : index
    %3 = vector.load %arg2[%c0_2, %c0_3, %c0_4] : memref<9x128x128xbf16, #tpu.memory_space<vmem>>, vector<1x128x128xbf16>
    %4 = vector.shape_cast %3 : vector<1x128x128xbf16> to vector<128x128xbf16>
    %cst_5 = arith.constant dense<0.000000e+00> : vector<80x128xf32>
    %5 = tpu.matmul %2, %4, %cst_5 {dimension_numbers = #tpu.dot_dimension_numbers<[1], [0], [0], [1], [0, 0, 1, 1], [], []>} : vector<80x128xbf16>, vector<128x128xbf16>, vector<80x128xf32> -> vector<80x128xf32>
    %6 = arith.addf %0, %5 : vector<80x128xf32>
    %c0_6 = arith.constant 0 : index
    %c1 = arith.constant 1 : index
    %c0_7 = arith.constant 0 : index
    %7 = vector.load %arg1[%c0_6, %c1, %c0_7] : memref<1x110x128xbf16, #tpu.memory_space<vmem>>, vector<1x80x128xbf16>
    %8 = vector.shape_cast %7 : vector<1x80x128xbf16> to vector<80x128xbf16>
    %c1_8 = arith.constant 1 : index
    %c0_9 = arith.constant 0 : index
    %c0_10 = arith.constant 0 : index
    %9 = vector.load %arg2[%c1_8, %c0_9, %c0_10] : memref<9x128x128xbf16, #tpu.memory_space<vmem>>, vector<1x128x128xbf16>
    %10 = vector.shape_cast %9 : vector<1x128x128xbf16> to vector<128x128xbf16>
    %cst_11 = arith.constant dense<0.000000e+00> : vector<80x128xf32>
    %11 = tpu.matmul %8, %10, %cst_11 {dimension_numbers = #tpu.dot_dimension_numbers<[1], [0], [0], [1], [0, 0, 1, 1], [], []>} : vector<80x128xbf16>, vector<128x128xbf16>, vector<80x128xf32> -> vector<80x128xf32>
    %12 = arith.addf %6, %11 : vector<80x128xf32>
    %c0_12 = arith.constant 0 : index
    %c2 = arith.constant 2 : index
    %c0_13 = arith.constant 0 : index
    %13 = vector.load %arg1[%c0_12, %c2, %c0_13] : memref<1x110x128xbf16, #tpu.memory_space<vmem>>, vector<1x80x128xbf16>
    %14 = vector.shape_cast %13 : vector<1x80x128xbf16> to vector<80x128xbf16>
    %c2_14 = arith.constant 2 : index
    %c0_15 = arith.constant 0 : index
    %c0_16 = arith.constant 0 : index
    %15 = vector.load %arg2[%c2_14, %c0_15, %c0_16] : memref<9x128x128xbf16, #tpu.memory_space<vmem>>, vector<1x128x128xbf16>
    %16 = vector.shape_cast %15 : vector<1x128x128xbf16> to vector<128x128xbf16>
    %cst_17 = arith.constant dense<0.000000e+00> : vector<80x128xf32>
    %17 = tpu.matmul %14, %16, %cst_17 {dimension_numbers = #tpu.dot_dimension_numbers<[1], [0], [0], [1], [0, 0, 1, 1], [], []>} : vector<80x128xbf16>, vector<128x128xbf16>, vector<80x128xf32> -> vector<80x128xf32>
    %18 = arith.addf %12, %17 : vector<80x128xf32>
    %c0_18 = arith.constant 0 : index
    %c10 = arith.constant 10 : index
    %c0_19 = arith.constant 0 : index
    %19 = vector.load %arg1[%c0_18, %c10, %c0_19] : memref<1x110x128xbf16, #tpu.memory_space<vmem>>, vector<1x80x128xbf16>
    %20 = vector.shape_cast %19 : vector<1x80x128xbf16> to vector<80x128xbf16>
    %c3 = arith.constant 3 : index
    %c0_20 = arith.constant 0 : index
    %c0_21 = arith.constant 0 : index
    %21 = vector.load %arg2[%c3, %c0_20, %c0_21] : memref<9x128x128xbf16, #tpu.memory_space<vmem>>, vector<1x128x128xbf16>
    %22 = vector.shape_cast %21 : vector<1x128x128xbf16> to vector<128x128xbf16>
    %cst_22 = arith.constant dense<0.000000e+00> : vector<80x128xf32>
    %23 = tpu.matmul %20, %22, %cst_22 {dimension_numbers = #tpu.dot_dimension_numbers<[1], [0], [0], [1], [0, 0, 1, 1], [], []>} : vector<80x128xbf16>, vector<128x128xbf16>, vector<80x128xf32> -> vector<80x128xf32>
    %24 = arith.addf %18, %23 : vector<80x128xf32>
    %c0_23 = arith.constant 0 : index
    %c11 = arith.constant 11 : index
    %c0_24 = arith.constant 0 : index
    %25 = vector.load %arg1[%c0_23, %c11, %c0_24] : memref<1x110x128xbf16, #tpu.memory_space<vmem>>, vector<1x80x128xbf16>
    %26 = vector.shape_cast %25 : vector<1x80x128xbf16> to vector<80x128xbf16>
    %c4 = arith.constant 4 : index
    %c0_25 = arith.constant 0 : index
    %c0_26 = arith.constant 0 : index
    %27 = vector.load %arg2[%c4, %c0_25, %c0_26] : memref<9x128x128xbf16, #tpu.memory_space<vmem>>, vector<1x128x128xbf16>
    %28 = vector.shape_cast %27 : vector<1x128x128xbf16> to vector<128x128xbf16>
    %cst_27 = arith.constant dense<0.000000e+00> : vector<80x128xf32>
    %29 = tpu.matmul %26, %28, %cst_27 {dimension_numbers = #tpu.dot_dimension_numbers<[1], [0], [0], [1], [0, 0, 1, 1], [], []>} : vector<80x128xbf16>, vector<128x128xbf16>, vector<80x128xf32> -> vector<80x128xf32>
    %30 = arith.addf %24, %29 : vector<80x128xf32>
    %c0_28 = arith.constant 0 : index
    %c12 = arith.constant 12 : index
    %c0_29 = arith.constant 0 : index
    %31 = vector.load %arg1[%c0_28, %c12, %c0_29] : memref<1x110x128xbf16, #tpu.memory_space<vmem>>, vector<1x80x128xbf16>
    %32 = vector.shape_cast %31 : vector<1x80x128xbf16> to vector<80x128xbf16>
    %c5 = arith.constant 5 : index
    %c0_30 = arith.constant 0 : index
    %c0_31 = arith.constant 0 : index
    %33 = vector.load %arg2[%c5, %c0_30, %c0_31] : memref<9x128x128xbf16, #tpu.memory_space<vmem>>, vector<1x128x128xbf16>
    %34 = vector.shape_cast %33 : vector<1x128x128xbf16> to vector<128x128xbf16>
    %cst_32 = arith.constant dense<0.000000e+00> : vector<80x128xf32>
    %35 = tpu.matmul %32, %34, %cst_32 {dimension_numbers = #tpu.dot_dimension_numbers<[1], [0], [0], [1], [0, 0, 1, 1], [], []>} : vector<80x128xbf16>, vector<128x128xbf16>, vector<80x128xf32> -> vector<80x128xf32>
    %36 = arith.addf %30, %35 : vector<80x128xf32>
    %c0_33 = arith.constant 0 : index
    %c20 = arith.constant 20 : index
    %c0_34 = arith.constant 0 : index
    %37 = vector.load %arg1[%c0_33, %c20, %c0_34] : memref<1x110x128xbf16, #tpu.memory_space<vmem>>, vector<1x80x128xbf16>
    %38 = vector.shape_cast %37 : vector<1x80x128xbf16> to vector<80x128xbf16>
    %c6 = arith.constant 6 : index
    %c0_35 = arith.constant 0 : index
    %c0_36 = arith.constant 0 : index
    %39 = vector.load %arg2[%c6, %c0_35, %c0_36] : memref<9x128x128xbf16, #tpu.memory_space<vmem>>, vector<1x128x128xbf16>
    %40 = vector.shape_cast %39 : vector<1x128x128xbf16> to vector<128x128xbf16>
    %cst_37 = arith.constant dense<0.000000e+00> : vector<80x128xf32>
    %41 = tpu.matmul %38, %40, %cst_37 {dimension_numbers = #tpu.dot_dimension_numbers<[1], [0], [0], [1], [0, 0, 1, 1], [], []>} : vector<80x128xbf16>, vector<128x128xbf16>, vector<80x128xf32> -> vector<80x128xf32>
    %42 = arith.addf %36, %41 : vector<80x128xf32>
    %c0_38 = arith.constant 0 : index
    %c21 = arith.constant 21 : index
    %c0_39 = arith.constant 0 : index
    %43 = vector.load %arg1[%c0_38, %c21, %c0_39] : memref<1x110x128xbf16, #tpu.memory_space<vmem>>, vector<1x80x128xbf16>
    %44 = vector.shape_cast %43 : vector<1x80x128xbf16> to vector<80x128xbf16>
    %c7 = arith.constant 7 : index
    %c0_40 = arith.constant 0 : index
    %c0_41 = arith.constant 0 : index
    %45 = vector.load %arg2[%c7, %c0_40, %c0_41] : memref<9x128x128xbf16, #tpu.memory_space<vmem>>, vector<1x128x128xbf16>
    %46 = vector.shape_cast %45 : vector<1x128x128xbf16> to vector<128x128xbf16>
    %cst_42 = arith.constant dense<0.000000e+00> : vector<80x128xf32>
    %47 = tpu.matmul %44, %46, %cst_42 {dimension_numbers = #tpu.dot_dimension_numbers<[1], [0], [0], [1], [0, 0, 1, 1], [], []>} : vector<80x128xbf16>, vector<128x128xbf16>, vector<80x128xf32> -> vector<80x128xf32>
    %48 = arith.addf %42, %47 : vector<80x128xf32>
    %c0_43 = arith.constant 0 : index
    %c22 = arith.constant 22 : index
    %c0_44 = arith.constant 0 : index
    %49 = vector.load %arg1[%c0_43, %c22, %c0_44] : memref<1x110x128xbf16, #tpu.memory_space<vmem>>, vector<1x80x128xbf16>
    %50 = vector.shape_cast %49 : vector<1x80x128xbf16> to vector<80x128xbf16>
    %c8 = arith.constant 8 : index
    %c0_45 = arith.constant 0 : index
    %c0_46 = arith.constant 0 : index
    %51 = vector.load %arg2[%c8, %c0_45, %c0_46] : memref<9x128x128xbf16, #tpu.memory_space<vmem>>, vector<1x128x128xbf16>
    %52 = vector.shape_cast %51 : vector<1x128x128xbf16> to vector<128x128xbf16>
    %cst_47 = arith.constant dense<0.000000e+00> : vector<80x128xf32>
    %53 = tpu.matmul %50, %52, %cst_47 {dimension_numbers = #tpu.dot_dimension_numbers<[1], [0], [0], [1], [0, 0, 1, 1], [], []>} : vector<80x128xbf16>, vector<128x128xbf16>, vector<80x128xf32> -> vector<80x128xf32>
    %54 = arith.addf %48, %53 : vector<80x128xf32>
    %c0_48 = arith.constant 0 : index
    %c11_49 = arith.constant 11 : index
    %c0_50 = arith.constant 0 : index
    %55 = vector.load %arg5[%c0_48, %c11_49, %c0_50] : memref<1x110x128xf32, #tpu.memory_space<vmem>>, vector<1x80x128xf32>
    %56 = vector.shape_cast %55 : vector<1x80x128xf32> to vector<80x128xf32>
    %57 = arith.addf %54, %56 : vector<80x128xf32>
    %c0_51 = arith.constant 0 : index
    %c0_52 = arith.constant 0 : index
    %58 = vector.load %arg3[%c0_51, %c0_52] : memref<1x128xf32, #tpu.memory_space<vmem>>, vector<1x128xf32>
    %59 = vector.broadcast %58 : vector<1x128xf32> to vector<80x128xf32>
    %60 = arith.mulf %57, %59 : vector<80x128xf32>
    %c0_53 = arith.constant 0 : index
    %c0_54 = arith.constant 0 : index
    %61 = vector.load %arg4[%c0_53, %c0_54] : memref<1x128xf32, #tpu.memory_space<vmem>>, vector<1x128xf32>
    %62 = vector.broadcast %61 : vector<1x128xf32> to vector<80x128xf32>
    %63 = arith.addf %60, %62 : vector<80x128xf32>
    %cst_55 = arith.constant 0.000000e+00 : f32
    %64 = vector.broadcast %cst_55 : f32 to vector<80x128xf32>
    %65 = arith.maximumf %63, %64 : vector<80x128xf32>
    %c0_56 = arith.constant 0 : index
    %c0_57 = arith.constant 0 : index
    %c0_58 = arith.constant 0 : index
    %66 = vector.load %arg6[%c0_56, %c0_57, %c0_58] : memref<1x80x128xf32, #tpu.memory_space<vmem>>, vector<1x80x128xf32>
    %67 = vector.shape_cast %66 : vector<1x80x128xf32> to vector<80x128xf32>
    %68 = vector.shape_cast %65 : vector<80x128xf32> to vector<1x80x128xf32>
    tpu.vector_store %arg6[%c0_56, %c0_57, %c0_58], %68 {strides = array<i32>} : memref<1x80x128xf32, #tpu.memory_space<vmem>>, vector<1x80x128xf32>,
    return
  }
  func.func @transform_0(%arg0: i32) -> (i32, i32, i32) {
    %c0_i32 = arith.constant 0 : i32
    %c0_i32_0 = arith.constant 0 : i32
    %c0_i32_1 = arith.constant 0 : i32
    return %arg0, %c0_i32, %c0_i32_0 : i32, i32, i32
  }
  func.func @transform_1(%arg0: i32) -> (i32, i32, i32) {
    %c0_i32 = arith.constant 0 : i32
    %c0_i32_0 = arith.constant 0 : i32
    %c0_i32_1 = arith.constant 0 : i32
    %c0_i32_2 = arith.constant 0 : i32
    return %c0_i32, %c0_i32_0, %c0_i32_1 : i32, i32, i32
  }
  func.func @transform_2(%arg0: i32) -> (i32, i32) {
    %c0_i32 = arith.constant 0 : i32
    %c0_i32_0 = arith.constant 0 : i32
    %c0_i32_1 = arith.constant 0 : i32
    return %c0_i32, %c0_i32_0 : i32, i32
  }
  func.func @transform_3(%arg0: i32) -> (i32, i32) {
    %c0_i32 = arith.constant 0 : i32
    %c0_i32_0 = arith.constant 0 : i32
    %c0_i32_1 = arith.constant 0 : i32
    return %c0_i32, %c0_i32_0 : i32, i32
  }
  func.func @transform_4(%arg0: i32) -> (i32, i32, i32) {
    %c0_i32 = arith.constant 0 : i32
    %c0_i32_0 = arith.constant 0 : i32
    %c0_i32_1 = arith.constant 0 : i32
    return %arg0, %c0_i32, %c0_i32_0 : i32, i32, i32
  }
  func.func @transform_5(%arg0: i32) -> (i32, i32, i32) {
    %c0_i32 = arith.constant 0 : i32
    %c0_i32_0 = arith.constant 0 : i32
    %c0_i32_1 = arith.constant 0 : i32
    return %arg0, %c0_i32, %c0_i32_0 : i32, i32, i32
  }
}

</mosaic_0001>

<bundles_post_ra>
// kernel: resnet_layer_pallas.5
= control target key start
LH: loop header
LB: loop body
LE: loop exit
PB: predicated region body
PF: predicated region fallthrough
CT: control target
= control target key end

     0   :  { %s2708_s24 = smov 0   ;;  %s3332_s0 = inlined_call_operand.vmem [shape: bf16[2,110,128], index: 0, kind: input, shape index: {}]   ;;  %s3333_s1 = inlined_call_operand.vmem [shape: bf16[9,128,128], index: 1, kind: input, shape index: {}]   ;;  %s3334_s2 = inlined_call_operand.vmem [shape: f32[1,128], index: 2, kind: input, shape index: {}]   ;;  %s3335_s3 = inlined_call_operand.vmem [shape: f32[1,128], index: 3, kind: input, shape index: {}]   ;;  %s3336_s4 = inlined_call_operand.vmem [shape: f32[80,1], index: 4, kind: input, shape index: {}]   ;;  %s3337_s5 = inlined_call_operand.vmem [shape: f32[2,110,128], index: 5, kind: input, shape index: {}]   ;;  %s3338_s6 = inlined_call_operand.vmem [shape: bf16[2,110,128], index: 6, kind: output, shape index: {0}]   ;;  %s3339_s7 = inlined_call_operand.vmem [shape: f32[2,110,128], index: 7, kind: output, shape index: {1}]  }
   0x1 LB: > { %s2061_s25 = sadd.s32 4294967295, %s2665_s24   ;;  %p2065_p0 = scmp.ge.s32.totalorder %s2665_s24, 1  ;;  %s2665_s24 = sphi %s2708_s24, %s18_s24  }
   0x2   : > { %p250_p1 = scmp.lt.s32.totalorder %s2665_s24, 3 }
   0x4   : > { %p251_p2 = pnand %p2065_p0, %p250_p1 }
   0x5   : > { %p292_p3 = scmp.lt.s32.totalorder (!%p251_p2), %s2061_s25, 1 }
   0x6   : > { %254 = sbr.rel (%p251_p2) target bundleno = 390 (0x186), region = 44 }
   0xb   : > { %v2555_v0 = vld [vmem:[%s3333_s1 + $0x78] sm:$0xff]  ;;  %v2554_v1 = vld [vmem:[%s3333_s1 + $0x70] sm:$0xff]  ;;  %s3343_s25 = smov (!%p292_p3, %s2061_s25), 1  ;;  %v2553_v4 = vld [vmem:[%s3333_s1 + $0x68] sm:$0xff]  ;;  %vm385_vm0 = vsmask.f32 7424 }
   0xc   : > { %483 = vmatpush.bf16.msra.mxu0 %v2555_v0  ;;  %2627 = vmatpush.bf16.msra.mxu1 %v2555_v0  ;;  %v2575_v2 = vld [vmem:[%s3333_s1 + $0xf8] sm:$0xff]  ;;  %v2574_v3 = vld [vmem:[%s3333_s1 + $0xf0] sm:$0xff]  ;;  %s2643_s13 = smul.u32 56, %s3343_s25  ;;  %v2573_v5 = vld [vmem:[%s3333_s1 + $0xe8] sm:$0xff]  ;;  %vm625_vm1 = vcmask 1046528   ;;  %vm1091_vm4 = vcmask 1045504  }
   0xd   : > { %2628 = vmatpush.bf16.msra.mxu2 %v2555_v0  ;;  %854 = vmatpush.bf16.msra.mxu3 %v2575_v2  ;;  %v2552_v6 = vld [vmem:[%s3333_s1 + $0x60] sm:$0xff]  ;;  %v2551_v9 = vld [vmem:[%s3333_s1 + $0x58] sm:$0xff]  ;;  %v2550_v17 = vld [vmem:[%s3333_s1 + $0x50] sm:$0xff]  ;;  %vm919_vm2 = vsmask.f32 6400  ;;  %vm1557_vm5 = vcmask 1044480  }
   0xe   : > { %s2745_s20 = scalar_lea.vmem %s3332_s0, %s2643_s13  ;;  %v2572_v7 = vld [vmem:[%s3333_s1 + $0xe0] sm:$0xff]  ;;  %v2571_v14 = vld [vmem:[%s3333_s1 + $0xd8] sm:$0xff]  ;;  %v2570_v24 = vld [vmem:[%s3333_s1 + $0xd0] sm:$0xff]  ;;  %vm1385_vm3 = vsmask.f32 5376  ;;  %s3093_s19 = scalar_lea.vmem %s3338_s6, %s2643_s13  ;;  %vm1941_vm6 = vcmask 1043457  }
   0xf   : > { %v339_v8 = vld [vmem:[%s2745_s20 + $0x28] sm:$0x1]  ;;  %v2755_v10 = vld [vmem:[%s2745_s20] sm:$0xff]   ;;  %v2758_v11 = vld [vmem:[%s2745_s20 + $0x10] sm:$0xff]  ;;  %s2644_s21 = smul.u32 112, %s3343_s25  ;;  %vm1956_vm12 = vcmask 1041408  }
  0x10   : > { %484 = vmatpush.bf16.msra.mxu0 %v2554_v1  ;;  %2629 = vmatpush.bf16.msra.mxu1 %v2554_v1  ;;  %v2761_v12 = vld [vmem:[%s2745_s20 + $0x20] sm:$0xff]  ;;  %v378_v13 = vunpack.c.l.b16 %v339_v8  ;;  %v2767_v15 = vld [vmem:[%s2745_s20 + $0x8] sm:$0xff]  ;;  %v389_v16 = vshll.u32 %v2755_v10, 16  ;;  %v2774_v18 = vld [vmem:[%s2745_s20 + $0x18] sm:$0xff]  ;;  %v402_v19 = vshll.u32 %v2758_v11, 16  ;;  %v387_v25 = vshrl.u32 %v2755_v10, 16 }
  0x11   : > { %2630 = vmatpush.bf16.msra.mxu2 %v2554_v1  ;;  %855 = vmatpush.bf16.msra.mxu3 %v2574_v3  ;;  %v418_v21 = vshll.u32 %v2761_v12, 16  ;;  %v734_v22 = vld [vmem:[%s2745_s20 + $0x4] sm:$0xe]  ;;  %v2782_v23 = vld [vmem:[%s2745_s20 + $0x8] sm:$0xff]   ;;  %v394_v27 = vshll.u32 %v2767_v15, 16  ;;  %v406_v28 = vshrl.u32 %v2758_v11, 16  ;;  %s3226_s23 = scalar_lea.vmem %s3337_s5, %s2644_s21  ;;  %s3238_s29 = scalar_lea.vmem %s3339_s7, %s2644_s21 }
  0x12   : > { %v2777_v20 = vpack.c.b16 %v378_v13, %v378_v13  ;;  %v391_v26 = vrot.slane %v389_v16, 1  ;;  %v2549_v29 = vld [vmem:[%s3333_s1 + $0x48] sm:$0xff]  ;;  %v2793_v30 = vrot.slane %v402_v19, 1  ;;  %v410_v31 = vshll.u32 %v2774_v18, 16  ;;  %v2548_v39 = vld [vmem:[%s3333_s1 + $0x40] sm:$0xff]  ;;  %v2547_v45 = vld [vmem:[%s3333_s1 + $0x38] sm:$0xff] }
  0x13   : > { %v773_v32 = vunpack.c.l.b16 %v734_v22  ;;  %v774_v33 = vunpack.c.l.b16 %v2782_v23  ;;  %v2797_v34 = vrot.slane %v418_v21, 1  ;;  %v422_v35 = vshrl.u32 %v2761_v12, 16  ;;  %v2569_v37 = vld [vmem:[%s3333_s1 + $0xc8] sm:$0xff]  ;;  %v2563_v48 = vld [vmem:[%s3333_s1 + $0xb8] sm:$0xff]  ;;  %v2568_v52 = vld [vmem:[%s3333_s1 + $0xc0] sm:$0xff] }
  0x14   : > { %485 = vmatpush.bf16.msra.mxu0 %v2553_v4  ;;  %2631 = vmatpush.bf16.msra.mxu1 %v2553_v4  ;;  %v426_v36 = vshll.u32 %v2777_v20, 16  ;;  %v396_v38 = vrot.slane %v394_v27, 1  ;;  %v392_v40 = vor.u32 %v391_v26, %v387_v25  ;;  %v408_v41 = vor.u32 %v406_v28, %v2793_v30  ;;  %v2809_v43 = vld [vmem:[%s2745_s20 + $0xc] sm:$0xff]  ;;  %v2583_v49 = vld [vmem:[%s3333_s1 + $0x138] sm:$0xff]  ;;  %v2544_v3 = vld [vmem:[%s3333_s1 + $0x20] sm:$0xff] }
  0x15   : > { %2632 = vmatpush.bf16.msra.mxu2 %v2553_v4  ;;  %856 = vmatpush.bf16.msra.mxu3 %v2573_v5  ;;  %v412_v42 = vrot.slane %v410_v31, 1  ;;  %v2813_v44 = vpack.c.b16 %v774_v33, %v773_v32  ;;  %v424_v46 = vor.u32 %v422_v35, %v2797_v34  ;;  %v791_v54 = vrot.slane %v2809_v43, 1  ;;  %v2546_v56 = vld [vmem:[%s3333_s1 + $0x30] sm:$0xff]  ;;  %v2611_v57 = vld [vmem:[%s3333_s1 + $0x1f8] sm:$0xff]  ;;  %v2545_v61 = vld [vmem:[%s3333_s1 + $0x28] sm:$0xff] }
  0x16   : > { %v428_v47 = vrot.slane %v426_v36, 1  ;;  %v397_v50 = vsel %vm385_vm0, %v392_v40, %v396_v38  ;;  %v2562_v58 = vld [vmem:[%s3333_s1 + $0xb0] sm:$0xff]  ;;  %v2561_v63 = vld [vmem:[%s3333_s1 + $0xa8] sm:$0xff]  ;;  %v398_v1 = vshrl.u32 %v2767_v15, 16  ;;  %v414_v2 = vshrl.u32 %v2774_v18, 16  ;;  %v2560_v4 = vld [vmem:[%s3333_s1 + $0xa0] sm:$0xff] }
  0x17   : > { %v413_v51 = vsel %vm385_vm0, %v408_v41, %v412_v42  ;;  %v790_v53 = vrot.slane %v2813_v44, 1  ;;  %v2582_v59 = vld [vmem:[%s3333_s1 + $0x130] sm:$0xff]  ;;  %v2581_v0 = vld [vmem:[%s3333_s1 + $0x128] sm:$0xff]  ;;  %v2580_v5 = vld [vmem:[%s3333_s1 + $0x120] sm:$0xff]  ;;  %v921_v27 = vshrl.u32 %v2813_v44, 16  ;;  %v932_v31 = vshll.u32 %v2809_v43, 16 }
  0x18   : > { %486 = vmatpush.bf16.msra.mxu0 %v2552_v6  ;;  %2633 = vmatpush.bf16.msra.mxu1 %v2552_v6  ;;  %v429_v55 = vsel %vm385_vm0, %v424_v46, %v428_v47  ;;  %v2610_v62 = vld [vmem:[%s3333_s1 + $0x1f0] sm:$0xff]  ;;  %v2559_v13 = vld [vmem:[%s3333_s1 + $0x98] sm:$0xff]  ;;  %v2624_v25 = vld [vmem:[%s2745_s20] sm:$0xf0]  ;;  %v627_v46 = vrot.slane %v2767_v15, 1 }
  0x19   : > { %2634 = vmatpush.bf16.msra.mxu2 %v2552_v6  ;;  %857 = vmatpush.bf16.msra.mxu3 %v2572_v7  ;;  %v792_v60 = vsel %vm625_vm1, %v790_v53, %v791_v54  ;;  %v400_v6 = vor.u32 %v398_v1, %v396_v38  ;;  %v416_v7 = vor.u32 %v414_v2, %v412_v42  ;;  %v2870_v8 = vld [vmem:[%s2745_s20 + $0x14] sm:$0xff]  ;;  %v2625_v26 = vld [vmem:[%s2745_s20] sm:$0xe]  ;;  %v2609_v28 = vld [vmem:[%s3333_s1 + $0x1e8] sm:$0xff]  ;;  %v923_v38 = vrot.slane %v921_v27, 1 }
  0x1a   : > { %v793_v19 = vrot.slane %v2870_v8, 1  ;;  %v2542_v21 = vld [vmem:[%s3333_s1 + $0x10] sm:$0xff]  ;;  %v2557_v35 = vld [vmem:[%s3333_s1 + $0x88] sm:$0xff]  ;;  %v934_v41 = vrot.slane %v932_v31, 2  ;;  %v2540_v42 = vld [vmem:[%s3333_s1] sm:$0xff] }
  0x1b   : > { %v405_v16 = vsel %vm385_vm0, %v400_v6, %v2793_v30  ;;  %v2558_v22 = vld [vmem:[%s3333_s1 + $0x90] sm:$0xff]  ;;  %v929_v30 = vshrl.u32 %v2809_v43, 16  ;;  %v2577_v36 = vld [vmem:[%s3333_s1 + $0x108] sm:$0xff]  ;;  %v2576_v47 = vld [vmem:[%s3333_s1 + $0x100] sm:$0xff]  ;;  %vm1942_vm7 = vsmask.f32 7942 }
  0x1c   : > { %487 = vmatpush.bf16.msra.mxu0 %v2551_v9  ;;  %2635 = vmatpush.bf16.msra.mxu1 %v2551_v9  ;;  %v794_v32 = vsel %vm625_vm1, %v791_v54, %v793_v19  ;;  %v2936_v53 = vld [vmem:[%s2745_s20 + $0x1c] sm:$0xff]  ;;  %v2586_v27 = vld [vmem:[%s3333_s1 + $0x150] sm:$0xff]  ;;  %vm1943_vm8 = vmand %vm1941_vm6, %vm1942_vm7  ;;  %vm1828_vm9 = vsmask.f32 1280  ;;  %vm1829_vm10 = vsmask.f32 5392 }
  0x1d   : > { %2636 = vmatpush.bf16.msra.mxu2 %v2551_v9  ;;  %858 = vmatpush.bf16.msra.mxu3 %v2571_v14  ;;  %v2543_v9 = vld [vmem:[%s3333_s1 + $0x18] sm:$0xff]  ;;  %v931_v40 = vrot.slane %v929_v30, 1  ;;  %v2588_v6 = vld [vmem:[%s3333_s1 + $0x160] sm:$0xff]  ;;  %v2614_v31 = vld [vmem:[%s3333_s1 + $0x210] sm:$0xff] }
  0x1e   : > { %v2579_v14 = vld [vmem:[%s3333_s1 + $0x118] sm:$0xff]  ;;  %vm3263_vm11 = vmor %vm1828_vm9, %vm1829_vm10 }
  0x1f   : > { %v2607_v2 = vld [vmem:[%s3333_s1 + $0x1d8] sm:$0xff]  ;;  %vm1957_vm13 = vmand %vm1956_vm12, %vm1828_vm9 }
  0x20   : > { %488 = vmatpush.bf16.msra.mxu0 %v2550_v17  ;;  %2637 = vmatpush.bf16.msra.mxu1 %v2550_v17 }
  0x21   : > { %2638 = vmatpush.bf16.msra.mxu2 %v2550_v17  ;;  %859 = vmatpush.bf16.msra.mxu3 %v2570_v24  ;;  %v421_v17 = vsel %vm385_vm0, %v416_v7, %v2797_v34  ;;  %v2578_v24 = vld [vmem:[%s3333_s1 + $0x110] sm:$0xff]  ;;  %v2541_v34 = vld [vmem:[%s3333_s1 + $0x8] sm:$0xff]  ;;  %v2616_v7 = vld [vmem:[%s3333_s1 + $0x220] sm:$0xff] }
  0x24   : > { %489 = vmatpush.bf16.msra.mxu0 %v2549_v29  ;;  %2639 = vmatpush.bf16.msra.mxu1 %v2549_v29 }
  0x25   : > { %2640 = vmatpush.bf16.msra.mxu2 %v2549_v29  ;;  %860 = vmatpush.bf16.msra.mxu3 %v2569_v37  ;;  %v924_v29 = vshll.u32 %v2813_v44, 16  ;;  %v2626_v37 = vor.u32 %v2625_v26, %v2624_v25  ;;  %v2556_v44 = vld [vmem:[%s3333_s1 + $0x80] sm:$0xff]  ;;  %v2615_v25 = vld [vmem:[%s3333_s1 + $0x218] sm:$0xff]  ;;  %v2606_v26 = vld [vmem:[%s3333_s1 + $0x1d0] sm:$0xff] }
  0x28   : > { %490 = vmatpush.bf16.msra.mxu0 %v2548_v39  ;;  %2641 = vmatpush.bf16.msra.mxu1 %v2548_v39 }
  0x29   : > { %2642 = vmatpush.bf16.msra.mxu2 %v2548_v39  ;;  %861 = vmatpush.bf16.msra.mxu3 %v2568_v52  ;;  %v926_v39 = vrot.slane %v924_v29, 2  ;;  %v2619_v52 = vld [vmem:[%s3333_s1 + $0x238] sm:$0xff]  ;;  %v950_v29 = vshll.u32 %v2936_v53, 16 }
  0x2b   : > { %491 = vmatmul.bf16.vlgmr.msra.gmra.mxu0 %v397_v50  ;;  %501 = vmatmul.bf16.vlgmr.msra.gmra.mxu1 %v413_v51  ;;  %v927_v50 = vor.u32 %v926_v39, %v923_v38  ;;  %v935_v51 = vor.u32 %v934_v41, %v931_v40  ;;  %v631_v38 = vrot.slane %v2774_v18, 1 }
  0x2c   : > { %570 = vmatpush.bf16.msrb.mxu1 %v2547_v45  ;;  %1026 = vmatpush.bf16.msrb.mxu0 %v2583_v49  ;;  %v626_v45 = vrot.slane %v2626_v37, 1  ;;  %v2591_v49 = vld [vmem:[%s3333_s1 + $0x178] sm:$0xff] }
  0x2d   : > { %690 = vmatpush.bf16.msrb.mxu2 %v2563_v48  ;;  %1492 = vmatpush.bf16.msrb.mxu3 %v2611_v57  ;;  %v2603_v48 = vld [vmem:[%s3333_s1 + $0x1b8] sm:$0xff]  ;;  %v2590_v57 = vld [vmem:[%s3333_s1 + $0x170] sm:$0xff] }
  0x2e   : > { %511 = vmatmul.bf16.vlgmr.msra.gmra.mxu2 %v429_v55  ;;  %862 = vmatmul.bf16.vlgmr.msra.gmra.mxu3 %v792_v60  ;;  %v628_v54 = vsel %vm625_vm1, %v626_v45, %v627_v46  ;;  %v936_v55 = vsel %vm919_vm2, %v927_v50, %v935_v51  ;;  %v2608_v60 = vld [vmem:[%s3333_s1 + $0x1e0] sm:$0xff] }
  0x30   : > { %571 = vmatpush.bf16.msrb.mxu1 %v2546_v56  ;;  %1027 = vmatpush.bf16.msrb.mxu0 %v2582_v59  ;;  %v2602_v56 = vld [vmem:[%s3333_s1 + $0x1b0] sm:$0xff] }
  0x31   : > { %691 = vmatpush.bf16.msrb.mxu2 %v2562_v58  ;;  %1493 = vmatpush.bf16.msrb.mxu3 %v2610_v62  ;;  %v795_v58 = vrot.slane %v2936_v53, 1  ;;  %v2618_v59 = vld [vmem:[%s3333_s1 + $0x230] sm:$0xff]  ;;  %v941_v62 = vshll.u32 %v2870_v8, 16 }
  0x33   : > { %v796_v1 = vsel %vm625_vm1, %v793_v19, %v795_v58 }
  0x34   : > { %572 = vmatpush.bf16.msrb.mxu1 %v2545_v61  ;;  %1028 = vmatpush.bf16.msrb.mxu0 %v2581_v0  ;;  %v938_v61 = vshrl.u32 %v2870_v8, 16  ;;  %v2589_v0 = vld [vmem:[%s3333_s1 + $0x168] sm:$0xff] }
  0x35   : > { %692 = vmatpush.bf16.msrb.mxu2 %v2561_v63  ;;  %1494 = vmatpush.bf16.msrb.mxu3 %v2609_v28  ;;  %v2601_v63 = vld [vmem:[%s3333_s1 + $0x1a8] sm:$0xff]  ;;  %v947_v28 = vshrl.u32 %v2936_v53, 16 }
  0x38   : > { %573 = vmatpush.bf16.msrb.mxu1 %v2544_v3  ;;  %1029 = vmatpush.bf16.msrb.mxu0 %v2580_v5  ;;  %v940_v3 = vrot.slane %v938_v61, 1  ;;  %v2600_v5 = vld [vmem:[%s3333_s1 + $0x1a0] sm:$0xff] }
  0x39   : > { %693 = vmatpush.bf16.msrb.mxu2 %v2560_v4  ;;  %1495 = vmatpush.bf16.msrb.mxu3 %v2608_v60  ;;  %v943_v4 = vrot.slane %v941_v62, 2  ;;  %v898_v60 = vld [vmem:[%s2745_s20 + $0x2c] sm:$0x3] }
  0x3b   : > { %496 = vmatmul.bf16.gmra.mxu0 %v405_v16  ;;  %506 = vmatmul.bf16.gmra.mxu1 %v421_v17  ;;  %v2985_v16 = vld [vmem:[%s2745_s20 + $0x24] sm:$0xff]  ;;  %v2587_v17 = vld [vmem:[%s3333_s1 + $0x158] sm:$0xff] }
  0x3c   : > { %574 = vmatpush.bf16.msrb.mxu1 %v2543_v9  ;;  %1030 = vmatpush.bf16.msrb.mxu0 %v2579_v14  ;;  %v629_v9 = vrot.slane %v2758_v11, 1  ;;  %v2599_v14 = vld [vmem:[%s3333_s1 + $0x198] sm:$0xff]  ;;  %v959_v50 = vshll.u32 %v2985_v16, 16 }
  0x3d   : > { %694 = vmatpush.bf16.msrb.mxu2 %v2559_v13  ;;  %1496 = vmatpush.bf16.msrb.mxu3 %v2607_v2  ;;  %v944_v13 = vor.u32 %v943_v4, %v940_v3  ;;  %v917_v2 = vunpack.c.l.b16 %v898_v60 }
  0x3e   : > { %867 = vmatmul.bf16.gmra.mxu3 %v794_v32  ;;  %v630_v19 = vsel %vm625_vm1, %v627_v46, %v629_v9  ;;  %v744_v32 = vld [vmem:[%s2745_s20 + $0x2c] sm:$0x1]  ;;  %v632_v41 = vsel %vm625_vm1, %v629_v9, %v631_v38  ;;  %v2612_v9 = vld [vmem:[%s3333_s1 + $0x200] sm:$0xff] }
  0x3f   : > { %v783_v37 = vunpack.c.l.b16 %v744_v32 }
  0x40   : > { %575 = vmatpush.bf16.msrb.mxu1 %v2542_v21  ;;  %1031 = vmatpush.bf16.msrb.mxu0 %v2578_v24  ;;  %v945_v21 = vsel %vm919_vm2, %v935_v51, %v944_v13  ;;  %v2598_v24 = vld [vmem:[%s3333_s1 + $0x190] sm:$0xff]  ;;  %v2596_v51 = vld [vmem:[%s3333_s1 + $0x180] sm:$0xff] }
  0x41   : > { %695 = vmatpush.bf16.msrb.mxu2 %v2558_v22  ;;  %v797_v22 = vrot.slane %v2985_v16, 1  ;;  %1497 = vmatpush.bf16.msrb.mxu3 %v2606_v26  ;;  %v789_v40 = vpack.c.b16 %v783_v37, %v783_v37  ;;  %v1536_v37 = vld [vmem:[%s2745_s20 + $0x8] sm:$0x8] }
  0x43   : > { %v798_v30 = vsel %vm625_vm1, %v795_v58, %v797_v22  ;;  %v799_v45 = vrot.slane %v789_v40, 1 }
  0x44   : > { %576 = vmatpush.bf16.msrb.mxu1 %v2541_v34  ;;  %1032 = vmatpush.bf16.msrb.mxu0 %v2577_v36  ;;  %v2605_v34 = vld [vmem:[%s3333_s1 + $0x1c8] sm:$0xff]  ;;  %v952_v36 = vrot.slane %v950_v29, 2 }
  0x45   : > { %696 = vmatpush.bf16.msrb.mxu2 %v2557_v35  ;;  %v949_v35 = vrot.slane %v947_v28, 1  ;;  %1498 = vmatpush.bf16.msrb.mxu3 %v2605_v34 }
  0x47   : > { %v953_v39 = vor.u32 %v952_v36, %v949_v35  ;;  %v1070_v35 = vld [vmem:[%s2745_s20 + $0x4] sm:$0xc] }
  0x48   : > { %577 = vmatpush.bf16.msrb.mxu1 %v2540_v42  ;;  %1033 = vmatpush.bf16.msrb.mxu0 %v2576_v47  ;;  %v1200_v42 = vld [vmem:[%s2745_s20 + $0x8] sm:$0xc]  ;;  %v1240_v47 = vunpack.c.h.b16 %v2782_v23 }
  0x49   : > { %697 = vmatpush.bf16.msrb.mxu2 %v2556_v44  ;;  %v954_v44 = vsel %vm919_vm2, %v944_v13, %v953_v39  ;;  %v1239_v46 = vunpack.c.l.b16 %v1200_v42 }
  0x4b   : > { %578 = vmatmul.bf16.vlgmr.msrb.gmra.mxu1 %v2755_v10  ;;  %1034 = vmatmul.bf16.vlgmr.msrb.gmra.mxu0 %v936_v55  ;;  %v2617_v10 = vld [vmem:[%s3333_s1 + $0x228] sm:$0xff]  ;;  %v2584_v55 = vld [vmem:[%s3333_s1 + $0x140] sm:$0xff] }
  0x4c   : > { %1156 = vmatpush.bf16.msra.mxu1 %v2591_v49  ;;  %1622 = vmatpush.bf16.msra.mxu0 %v2619_v52  ;;  %v956_v49 = vshrl.u32 %v2985_v16, 16  ;;  %v2613_v52 = vld [vmem:[%s3333_s1 + $0x208] sm:$0xff] }
  0x4d   : > { %1320 = vmatpush.bf16.msra.mxu2 %v2603_v48  ;;  %v2585_v48 = vld [vmem:[%s3333_s1 + $0x148] sm:$0xff] }
  0x4e   : > { %698 = vmatmul.bf16.vlgmr.msrb.gmra.mxu2 %v628_v54  ;;  %872 = vmatmul.bf16.gmra.mxu3 %v796_v1  ;;  %v2604_v54 = vld [vmem:[%s3333_s1 + $0x1c0] sm:$0xff]  ;;  %v958_v58 = vrot.slane %v956_v49, 1  ;;  %v633_v1 = vrot.slane %v2761_v12, 1 }
  0x4f   : > { %1499 = vmatpush.bf16.msrb.mxu3 %v2604_v54 }
  0x50   : > { %1157 = vmatpush.bf16.msra.mxu1 %v2590_v57  ;;  %1623 = vmatpush.bf16.msra.mxu0 %v2618_v59  ;;  %v3048_v57 = vpack.c.b16 %v1240_v47, %v1239_v46  ;;  %v961_v59 = vrot.slane %v959_v50, 2 }
  0x51   : > { %1321 = vmatpush.bf16.msra.mxu2 %v2602_v56  ;;  %v3044_v56 = vld [vmem:[%s2745_s20 + $0x10] sm:$0xff] }
  0x52   : > { %v1387_v61 = vshrl.u32 %v3048_v57, 16  ;;  %v1390_v62 = vshll.u32 %v3048_v57, 16  ;;  %v1256_v23 = vrot.slane %v3048_v57, 2  ;;  %v1257_v46 = vrot.slane %v3044_v56, 2 }
  0x53   : > { %v1559_v50 = vrot.slane %v3044_v56, 3 }
  0x54   : > { %1158 = vmatpush.bf16.msra.mxu1 %v2589_v0  ;;  %1624 = vmatpush.bf16.msra.mxu0 %v2617_v10  ;;  %v1398_v0 = vshll.u32 %v3044_v56, 16  ;;  %v962_v10 = vor.u32 %v961_v59, %v958_v58  ;;  %v1389_v3 = vrot.slane %v1387_v61, 2  ;;  %v1392_v4 = vrot.slane %v1390_v62, 3  ;;  %v3122_v58 = vld [vmem:[%s2745_s20 + $0x28] sm:$0xff]  ;;  %v1736_v61 = vld [vmem:[%s3336_s4 + $0x10] sm:$0xff] }
  0x55   : > { %1322 = vmatpush.bf16.msra.mxu2 %v2601_v63  ;;  %v1395_v63 = vshrl.u32 %v3044_v56, 16  ;;  %v1258_v54 = vsel %vm1091_vm4, %v1256_v23, %v1257_v46  ;;  %v1735_v56 = vld [vmem:[%s3336_s4 + $0x8] sm:$0xff]  ;;  %v1422_v59 = vshrl.u32 %v3122_v58, 16  ;;  %v1425_v60 = vshll.u32 %v3122_v58, 16  ;;  %v1210_v23 = vld [vmem:[%s2745_s20 + $0x30] sm:$0x3] }
  0x56   : > { %v963_v13 = vsel %vm919_vm2, %v953_v39, %v962_v10  ;;  %v1555_v39 = vunpack.c.l.b16 %v1536_v37 }
  0x58   : > { %1159 = vmatpush.bf16.msra.mxu1 %v2588_v6  ;;  %1625 = vmatpush.bf16.msra.mxu0 %v2616_v7  ;;  %v1400_v6 = vrot.slane %v1398_v0, 3  ;;  %v634_v7 = vsel %vm625_vm1, %v631_v38, %v633_v1  ;;  %v1089_v38 = vunpack.c.l.b16 %v1070_v35  ;;  %v1556_v42 = vpack.c.b16 %v1240_v47, %v1555_v39  ;;  %v1740_v39 = vld [vmem:[%s3336_s4 + $0x30] sm:$0xff] }
  0x59   : > { %1323 = vmatpush.bf16.msra.mxu2 %v2600_v5  ;;  %v1397_v5 = vrot.slane %v1395_v63, 2  ;;  %v1095_v63 = vrot.slane %v2870_v8, 2 }
  0x5a   : > { %v1558_v49 = vrot.slane %v1556_v42, 3 }
  0x5b   : > { %583 = vmatmul.bf16.gmra.mxu1 %v2767_v15  ;;  %1039 = vmatmul.bf16.gmra.mxu0 %v945_v21  ;;  %v2597_v15 = vld [vmem:[%s3333_s1 + $0x188] sm:$0xff] }
  0x5c   : > { %1160 = vmatpush.bf16.msra.mxu1 %v2587_v17  ;;  %1626 = vmatpush.bf16.msra.mxu0 %v2615_v25  ;;  %v1393_v17 = vor.u32 %v1392_v4, %v1389_v3  ;;  %v3068_v25 = vld [vmem:[%s2745_s20 + $0x18] sm:$0xff]  ;;  %v1364_v3 = vld [vmem:[%s2745_s20 + $0x30] sm:$0x7] }
  0x5d   : > { %1324 = vmatpush.bf16.msra.mxu2 %v2599_v14  ;;  %v3061_v14 = vpack.c.b16 %v917_v2, %v917_v2  ;;  %v1404_v28 = vshrl.u32 %v3068_v25, 16  ;;  %v1407_v29 = vshll.u32 %v3068_v25, 16  ;;  %v1259_v62 = vrot.slane %v3068_v25, 2 }
  0x5e   : > { %703 = vmatmul.bf16.gmra.mxu2 %v630_v19  ;;  %877 = vmatmul.bf16.gmra.mxu3 %v798_v30  ;;  %v1401_v19 = vor.u32 %v1400_v6, %v1397_v5  ;;  %v1561_v0 = vrot.slane %v3068_v25, 3 }
  0x5f   : > { %v965_v21 = vshrl.u32 %v3061_v14, 16  ;;  %v1260_v2 = vsel %vm1091_vm4, %v1257_v46, %v1259_v62  ;;  %v1743_v46 = vld [vmem:[%s3336_s4 + $0x48] sm:$0xff] }
  0x60   : > { %1161 = vmatpush.bf16.msra.mxu1 %v2586_v27  ;;  %1627 = vmatpush.bf16.msra.mxu0 %v2614_v31  ;;  %v1409_v31 = vrot.slane %v1407_v29, 3 }
  0x61   : > { %1325 = vmatpush.bf16.msra.mxu2 %v2598_v24  ;;  %v1402_v24 = vsel %vm1385_vm3, %v1393_v17, %v1401_v19  ;;  %v967_v26 = vrot.slane %v965_v21, 1 }
  0x64   : > { %1162 = vmatpush.bf16.msra.mxu1 %v2585_v48  ;;  %1628 = vmatpush.bf16.msra.mxu0 %v2613_v52  ;;  %v1093_v48 = vrot.slane %v2809_v43, 2 }
  0x65   : > { %1326 = vmatpush.bf16.msra.mxu2 %v2597_v15  ;;  %v1406_v15 = vrot.slane %v1404_v28, 2  ;;  %v1097_v28 = vrot.slane %v2936_v53, 2 }
  0x66   : > { %v1096_v6 = vsel %vm1091_vm4, %v1093_v48, %v1095_v63 }
  0x67   : > { %v1410_v36 = vor.u32 %v1409_v31, %v1406_v15 }
  0x68   : > { %1163 = vmatpush.bf16.msra.mxu1 %v2584_v55  ;;  %1629 = vmatpush.bf16.msra.mxu0 %v2612_v9 }
  0x69   : > { %1327 = vmatpush.bf16.msra.mxu2 %v2596_v51  ;;  %v1411_v40 = vsel %vm1385_vm3, %v1401_v19, %v1410_v36  ;;  %v1737_v19 = vld [vmem:[%s3336_s4 + $0x18] sm:$0xff] }
  0x6b   : > { %588 = vmatmul.bf16.gmra.mxu1 %v2758_v11  ;;  %1044 = vmatmul.bf16.gmra.mxu0 %v954_v44  ;;  %v800_v11 = vsel %vm625_vm1, %v797_v22, %v799_v45  ;;  %v968_v22 = vshll.u32 %v3061_v14, 16 }
  0x6d   : > { %v970_v27 = vrot.slane %v968_v22, 2 }
  0x6e   : > { %708 = vmatmul.bf16.gmra.mxu2 %v632_v41  ;;  %882 = vmatmul.bf16.gmra.mxu3 %v800_v11  ;;  %v1090_v41 = vpack.c.b16 %v774_v33, %v1089_v38  ;;  %v2667_v33 = vmov 0   ;;  %v1560_v11 = vsel %vm1557_vm5, %v1558_v49, %v1559_v50 }
  0x6f   : > { %v971_v30 = vor.u32 %v970_v27, %v967_v26  ;;  %2654 = vset.pattern.permute.xlu0 %v2667_v33  ;;  %1804 = vst [vmem:[%s3093_s19] sm:$0xf] %v2667_v33  ;;  %2655 = vset.pattern.permute.xlu1 %v2667_v33 }
  0x70   : > { %1816 = vst [vmem:[%s3093_s19 + $0x30] sm:$0xf] %v2667_v33  ;;  %2656 = vset.pattern.permute.xlu2 %v2667_v33  ;;  %v1092_v47 = vrot.slane %v1090_v41, 2  ;;  %1756 = vperm.xlu1 %2655, %v1736_v61   ;;  %v1263_v41 = vrot.slane %v3122_v58, 2 }
  0x71   : > { %v972_v34 = vsel %vm919_vm2, %v962_v10, %v971_v30  ;;  %1817 = vst [vmem:[%s3093_s19 + $0x34] sm:$0x7] %v2667_v33  ;;  %v1427_v10 = vrot.slane %v1425_v60, 3 }
  0x72   : > { %1805 = vst [vmem:[%s3093_s19 + $0x4] sm:$0xf] %v2667_v33  ;;  %v1094_v43 = vsel %vm1091_vm4, %v1092_v47, %v1093_v48 }
  0x73   : > { %1806 = vst [vmem:[%s3093_s19 + $0x8] sm:$0xf] %v2667_v33 }
  0x74   : > { %1807 = vst [vmem:[%s3093_s19 + $0xc] sm:$0xf] %v2667_v33 }
  0x75   : > { %1808 = vst [vmem:[%s3093_s19 + $0x10] sm:$0xf] %v2667_v33 }
  0x76   : > { %1809 = vst [vmem:[%s3093_s19 + $0x14] sm:$0xf] %v2667_v33 }
  0x77   : > { %1810 = vst [vmem:[%s3093_s19 + $0x18] sm:$0xf] %v2667_v33 }
  0x78   : > { %1811 = vst [vmem:[%s3093_s19 + $0x1c] sm:$0xf] %v2667_v33  ;;  %1761 = vperm.xlu1 %2655, %v1737_v19  }
  0x79   : > { %1812 = vst [vmem:[%s3093_s19 + $0x20] sm:$0xf] %v2667_v33 }
  0x7a   : > { %1813 = vst [vmem:[%s3093_s19 + $0x24] sm:$0xf] %v2667_v33 }
  0x7b   : > { %593 = vmatmul.bf16.gmra.mxu1 %v2774_v18  ;;  %1049 = vmatmul.bf16.gmra.mxu0 %v963_v13  ;;  %v635_v18 = vrot.slane %v2777_v20, 1  ;;  %v3080_v20 = vld [vmem:[%s2745_s20 + $0x20] sm:$0xff]  ;;  %1814 = vst [vmem:[%s3093_s19 + $0x28] sm:$0xf] %v2667_v33  ;;  %v1383_v13 = vunpack.c.l.b16 %v1364_v3 }
  0x7c   : > { %v1413_v44 = vshrl.u32 %v3080_v20, 16  ;;  %v1416_v45 = vshll.u32 %v3080_v20, 16  ;;  %1815 = vst [vmem:[%s3093_s19 + $0x2c] sm:$0xf] %v2667_v33  ;;  %v1261_v26 = vrot.slane %v3080_v20, 2  ;;  %v1563_v29 = vrot.slane %v3080_v20, 3 }
  0x7d   : > { %v636_v32 = vsel %vm625_vm1, %v633_v1, %v635_v18  ;;  %v1424_v1 = vrot.slane %v1422_v59, 2  ;;  %v3141_v17 = vpack.c.b16 %v1383_v13, %v1383_v13 }
  0x7e   : > { %713 = vmatmul.bf16.gmra.mxu2 %v634_v7  ;;  %1500 = vmatmul.bf16.vlgmr.msrb.gmra.mxu3 %v1402_v24  ;;  %v1415_v51 = vrot.slane %v1413_v44, 2  ;;  %v1418_v52 = vrot.slane %v1416_v45, 3  ;;  %v1562_v7 = vsel %vm1557_vm5, %v1559_v50, %v1561_v0  ;;  %v1262_v15 = vsel %vm1091_vm4, %v1259_v62, %v1261_v26 }
  0x7f   : > { %v1428_v9 = vor.u32 %v1427_v10, %v1424_v1  ;;  %v1431_v24 = vshrl.u32 %v3141_v17, 16  ;;  %v1434_v25 = vshll.u32 %v3141_v17, 16  ;;  %v1564_v35 = vsel %vm1557_vm5, %v1561_v0, %v1563_v29 }
  0x80   : > { %v1419_v55 = vor.u32 %v1418_v52, %v1415_v51  ;;  %v1099_v45 = vrot.slane %v2985_v16, 2  ;;  %v1264_v33 = vsel %vm1091_vm4, %v1261_v26, %v1263_v41  ;;  %v1249_v52 = vunpack.c.l.b16 %v1210_v23 }
  0x81   : > { %v1433_v18 = vrot.slane %v1431_v24, 2  ;;  %v1436_v30 = vrot.slane %v1434_v25, 3  ;;  %v1101_v1 = vrot.slane %v3061_v14, 2  ;;  %v1567_v10 = vrot.slane %v3141_v17, 3 }
  0x82   : > { %v1420_v57 = vsel %vm1385_vm3, %v1410_v36, %v1419_v55  ;;  %v1429_v8 = vsel %vm1385_vm3, %v1419_v55, %v1428_v9  ;;  %v1100_v49 = vsel %vm1091_vm4, %v1097_v28, %v1099_v45 }
  0x83   : > { %v1437_v36 = vor.u32 %v1436_v30, %v1433_v18  ;;  %v1102_v13 = vsel %vm1091_vm4, %v1099_v45, %v1101_v1 }
  0x85   : > { %v1438_v53 = vsel %vm1385_vm3, %v1428_v9, %v1437_v36 }
  0x8b   : > { %598 = vmatmul.bf16.gmra.mxu1 %v2761_v12  ;;  %1054 = vmatmul.bf16.gmra.mxu0 %v972_v34  ;;  %v1734_v12 = vld [vmem:[%s3336_s4] sm:$0xff]  ;;  %v1098_v34 = vsel %vm1091_vm4, %v1095_v63, %v1097_v28 }
  0x8c   : > { %1746 = vperm.xlu0 %2654, %v1734_v12   ;;  %v1565_v12 = vrot.slane %v3122_v58, 3 }
  0x8e   : > { %718 = vmatmul.bf16.gmra.mxu2 %v636_v32  ;;  %1505 = vmatmul.bf16.gmra.mxu3 %v1411_v40  ;;  %v1566_v50 = vsel %vm1557_vm5, %v1563_v29, %v1565_v12 }
  0x94   : > { %1751 = vperm.xlu0 %2654, %v1735_v56   ;;  %v1738_v56 = vld [vmem:[%s3336_s4 + $0x20] sm:$0xff] }
  0x95   : > { %1766 = vperm.xlu2 %2656, %v1738_v56  }
  0x9b   : > { %1164 = vmatmul.bf16.vlgmr.msra.gmra.mxu1 %v1094_v43  ;;  %1630 = vmatmul.bf16.vlgmr.msra.gmra.mxu0 %v1560_v11  ;;  %v1255_v11 = vpack.c.b16 %v1249_v52, %v1249_v52 }
  0x9c   : > { %1776 = vperm.xlu0 %2654, %v1740_v39  }
  0x9d   : > { %v1265_v62 = vrot.slane %v1255_v11, 2 }
  0x9e   : > { %1328 = vmatmul.bf16.vlgmr.msra.gmra.mxu2 %v1258_v54  ;;  %1510 = vmatmul.bf16.gmra.mxu3 %v1420_v57  ;;  %v1741_v57 = vld [vmem:[%s3336_s4 + $0x38] sm:$0xff] }
  0x9f   : > { %1781 = vperm.xlu1 %2655, %v1741_v57   ;;  %v1266_v3 = vsel %vm1091_vm4, %v1263_v41, %v1265_v62 }
  0xa4   : > { %1791 = vperm.xlu0 %2654, %v1743_v46  }
  0xa8   : > { %v492_v4 = vpop.f32.mrf.mxu0  ;;  %v3136_v5 = vpop.f32.mrf.mxu1 }
  0xab   : > { %1169 = vmatmul.bf16.gmra.mxu1 %v1096_v6  ;;  %1635 = vmatmul.bf16.gmra.mxu0 %v1562_v7  ;;  %v1739_v6 = vld [vmem:[%s3336_s4 + $0x28] sm:$0xff] }
  0xac   : > { %1771 = vperm.xlu2 %2656, %v1739_v6  }
  0xae   : > { %1333 = vmatmul.bf16.gmra.mxu2 %v1260_v2  ;;  %1515 = vmatmul.bf16.gmra.mxu3 %v1429_v8  ;;  %v1568_v8 = vsel %vm1557_vm5, %v1565_v12, %v1567_v10 }
  0xb0   : > { %v494_v21 = vpop.f32.mrf.mxu0  ;;  %v3146_v22 = vpop.f32.mrf.mxu1 }
  0xb1   : > { %v863_v27 = vpop.f32.mrf.mxu3  ;;  %v3158_v37 = vpop.f32.mrf.mxu2 }
  0xb8   : > { %v497_v31 = vpop.f32.mrf.mxu0  ;;  %v3154_v32 = vpop.f32.mrf.mxu1 }
  0xb9   : > { %v865_v38 = vpop.f32.mrf.mxu3  ;;  %v3167_v44 = vpop.f32.mrf.mxu2 }
  0xbb   : > { %1174 = vmatmul.bf16.gmra.mxu1 %v1098_v34  ;;  %1640 = vmatmul.bf16.gmra.mxu0 %v1564_v35 }
  0xbe   : > { %1338 = vmatmul.bf16.gmra.mxu2 %v1262_v15  ;;  %1520 = vmatmul.bf16.gmra.mxu3 %v1438_v53 }
  0xc0   : > { %v499_v40 = vpop.f32.mrf.mxu0  ;;  %v3164_v20 = vpop.f32.mrf.mxu1 }
  0xc1   : > { %v868_v42 = vpop.f32.mrf.mxu3 }
  0xc8   : > { %v579_v47 = vpop.f32.mrf.mxu1  ;;  %v1035_v48 = vpop.f32.mrf.mxu0 }
  0xc9   : > { %v580_v51 = vadd.f32 %v579_v47, %v492_v4  ;;  %v870_v16 = vpop.f32.mrf.mxu3 }
  0xcb   : > { %1179 = vmatmul.bf16.gmra.mxu1 %v1100_v49  ;;  %1645 = vmatmul.bf16.gmra.mxu0 %v1566_v50 }
  0xce   : > { %1343 = vmatmul.bf16.gmra.mxu2 %v1264_v33 }
  0xd0   : > { %v581_v58 = vpop.f32.mrf.mxu1  ;;  %v1037_v59 = vpop.f32.mrf.mxu0 }
  0xd1   : > { %v699_v54 = vpop.f32.mrf.mxu2  ;;  %v582_v60 = vadd.f32 %v581_v58, %v494_v21  ;;  %v873_v63 = vpop.f32.mrf.mxu3 }
  0xd2   : > { %v724_v43 = vadd.f32 %v699_v54, %v580_v51 }
  0xd4   : > { %v888_v55 = vadd.f32 %v863_v27, %v724_v43 }
  0xd6   : > { %v3184_v61 = vadd.f32 %v1035_v48, %v888_v55 }
  0xd8   : > { %v584_v7 = vpop.f32.mrf.mxu1  ;;  %v1040_v9 = vpop.f32.mrf.mxu0 }
  0xd9   : > { %v701_v0 = vpop.f32.mrf.mxu2  ;;  %v585_v19 = vadd.f32 %v584_v7, %v497_v31  ;;  %v875_v17 = vpop.f32.mrf.mxu3  ;;  %v1742_v31 = vld [vmem:[%s3336_s4 + $0x40] sm:$0xff] }
  0xda   : > { %v725_v2 = vadd.f32 %v701_v0, %v582_v60  ;;  %1786 = vperm.xlu2 %2656, %v1742_v31  }
  0xdb   : > { %1184 = vmatmul.bf16.gmra.mxu1 %v1102_v13  ;;  %1650 = vmatmul.bf16.gmra.mxu0 %v1568_v8 }
  0xdc   : > { %v889_v4 = vadd.f32 %v865_v38, %v725_v2 }
  0xde   : > { %1348 = vmatmul.bf16.gmra.mxu2 %v1266_v3  ;;  %v3194_v14 = vadd.f32 %v1037_v59, %v889_v4 }
  0xe0   : > { %v586_v26 = vpop.f32.mrf.mxu1  ;;  %v1042_v27 = vpop.f32.mrf.mxu0 }
  0xe1   : > { %v704_v21 = vpop.f32.mrf.mxu2  ;;  %v587_v28 = vadd.f32 %v586_v26, %v499_v40  ;;  %v878_v18 = vpop.f32.mrf.mxu3 }
  0xe2   : > { %v726_v24 = vadd.f32 %v704_v21, %v585_v19 }
  0xe4   : > { %v890_v25 = vadd.f32 %v868_v42, %v726_v24 }
  0xe6   : > { %v3196_v29 = vadd.f32 %v1040_v9, %v890_v25 }
  0xe8   : > { %v589_v35 = vpop.f32.mrf.mxu1  ;;  %v1045_v36 = vpop.f32.mrf.mxu0 }
  0xe9   : > { %v706_v30 = vpop.f32.mrf.mxu2  ;;  %v590_v38 = vadd.f32 %v589_v35, %v3136_v5  ;;  %v880_v40 = vpop.f32.mrf.mxu3  ;;  %v3243_v35 = vld [vmem:[%s3335_s3] ss:$0 sm:$0xff] }
  0xea   : > { %v727_v15 = vadd.f32 %v706_v30, %v587_v28  ;;  %v1666_v28 = vld [vmem:[%s3226_s23 + $0xb] sm:$0xff] }
  0xec   : > { %v891_v34 = vadd.f32 %v870_v16, %v727_v15 }
  0xee   : > { %v3202_v53 = vadd.f32 %v1042_v27, %v891_v34  ;;  %v3233_v34 = vld [vmem:[%s3334_s2] ss:$0 sm:$0xff] }
  0xf0   : > { %v591_v45 = vpop.f32.mrf.mxu1  ;;  %v1047_v12 = vpop.f32.mrf.mxu0 }
  0xf1   : > { %v709_v39 = vpop.f32.mrf.mxu2  ;;  %v592_v33 = vadd.f32 %v591_v45, %v3146_v22  ;;  %v883_v49 = vpop.f32.mrf.mxu3 }
  0xf2   : > { %v728_v41 = vadd.f32 %v709_v39, %v590_v38 }
  0xf4   : > { %v892_v42 = vadd.f32 %v873_v63, %v728_v41 }
  0xf6   : > { %v3205_v23 = vadd.f32 %v1045_v36, %v892_v42  ;;  %v1667_v42 = vld [vmem:[%s3226_s23 + $0x13] sm:$0xff] }
  0xf8   : > { %v594_v50 = vpop.f32.mrf.mxu1  ;;  %v1050_v51 = vpop.f32.mrf.mxu0 }
  0xf9   : > { %v711_v46 = vpop.f32.mrf.mxu2  ;;  %v595_v5 = vadd.f32 %v594_v50, %v3154_v32  ;;  %v885_v22 = vpop.f32.mrf.mxu3 }
  0xfa   : > { %v729_v47 = vadd.f32 %v711_v46, %v592_v33 }
  0xfc   : > { %v893_v48 = vadd.f32 %v875_v17, %v729_v47 }
  0xfe   : > { %v3208_v52 = vadd.f32 %v1047_v12, %v893_v48  ;;  %v1747_v41 = vpop.permute.xlu0 %1746 }
 0x100   : > { %v596_v11 = vpop.f32.mrf.mxu1  ;;  %v1052_v55 = vpop.f32.mrf.mxu0 }
 0x101   : > { %v714_v16 = vpop.f32.mrf.mxu2  ;;  %v597_v56 = vadd.f32 %v596_v11, %v3164_v20  ;;  %v1501_v1 = vpop.f32.mrf.mxu3 }
 0x102   : > { %v730_v54 = vadd.f32 %v714_v16, %v595_v5 }
 0x104   : > { %v894_v43 = vadd.f32 %v878_v18, %v730_v54 }
 0x106   : > { %v3211_v57 = vadd.f32 %v1050_v51, %v894_v43 }
 0x108   : > { %v599_v62 = vpop.f32.mrf.mxu1  ;;  %v1055_v63 = vpop.f32.mrf.mxu0 }
 0x109   : > { %v716_v58 = vpop.f32.mrf.mxu2  ;;  %v600_v0 = vadd.f32 %v599_v62, %v3158_v37  ;;  %v1503_v8 = vpop.f32.mrf.mxu3 }
 0x10a   : > { %v731_v59 = vadd.f32 %v716_v58, %v597_v56 }
 0x10c   : > { %v895_v60 = vadd.f32 %v880_v40, %v731_v59 }
 0x10e   : > { %v3214_v32 = vadd.f32 %v1052_v55, %v895_v60 }
 0x110   : > { %v601_v4 = vpop.f32.mrf.mxu1  ;;  %v1057_v6 = vpop.f32.mrf.mxu0 }
 0x111   : > { %v719_v10 = vpop.f32.mrf.mxu2  ;;  %v602_v20 = vadd.f32 %v601_v4, %v3167_v44  ;;  %v1506_v27 = vpop.f32.mrf.mxu3 }
 0x112   : > { %v732_v2 = vadd.f32 %v719_v10, %v600_v0  ;;  %v1752_v0 = vpop.permute.xlu0 %1751 }
 0x114   : > { %v896_v3 = vadd.f32 %v883_v49, %v732_v2 }
 0x116   : > { %v3217_v7 = vadd.f32 %v1055_v63, %v896_v3 }
 0x118   : > { %v1165_v17 = vpop.f32.mrf.mxu1  ;;  %v1631_v21 = vpop.f32.mrf.mxu0 }
 0x119   : > { %v721_v9 = vpop.f32.mrf.mxu2  ;;  %v1190_v37 = vadd.f32 %v1165_v17, %v3184_v61  ;;  %v1508_v48 = vpop.f32.mrf.mxu3 }
 0x11a   : > { %v733_v13 = vadd.f32 %v721_v9, %v602_v20 }
 0x11c   : > { %v897_v19 = vadd.f32 %v885_v22, %v733_v13 }
 0x11e   : > { %v3221_v24 = vadd.f32 %v1057_v6, %v897_v19 }
 0x120   : > { %v1167_v18 = vpop.f32.mrf.mxu1  ;;  %v1633_v30 = vpop.f32.mrf.mxu0 }
 0x121   : > { %v1329_v25 = vpop.f32.mrf.mxu2  ;;  %v1191_v61 = vadd.f32 %v1167_v18, %v3194_v14  ;;  %v1511_v20 = vpop.f32.mrf.mxu3 }
 0x122   : > { %v1354_v44 = vadd.f32 %v1329_v25, %v1190_v37 }
 0x124   : > { %v1526_v26 = vadd.f32 %v1501_v1, %v1354_v44  ;;  %v1944_v1 = vld [vmem:[%s3093_s19 + $0x4] sm:$0xe] }
 0x125   : > { %v1669_v44 = vld [vmem:[%s3226_s23 + $0x23] sm:$0xff] }
 0x126   : > { %v1656_v15 = vadd.f32 %v1631_v21, %v1526_v26 }
 0x128   : > { %v1676_v31 = vadd.f32 %v1666_v28, %v1656_v15  ;;  %v1170_v45 = vpop.f32.mrf.mxu1  ;;  %v1636_v12 = vpop.f32.mrf.mxu0 }
 0x129   : > { %v1331_v36 = vpop.f32.mrf.mxu2  ;;  %v1192_v46 = vadd.f32 %v1170_v45, %v3196_v29  ;;  %v1668_v29 = vld [vmem:[%s3226_s23 + $0x1b] sm:$0xff] }
 0x12a   : > { %1686 = vst [vmem:[%s3238_s29 + $0xb] sm:$0xff] %v1676_v31  ;;  %v1355_v14 = vadd.f32 %v1331_v36, %v1191_v61  ;;  %v1700_v38 = vmul.f32 %v3233_v34, %v1676_v31 }
 0x12c   : > { %v1527_v39 = vadd.f32 %v1503_v8, %v1355_v14  ;;  %v1714_v40 = vadd.f32 %v3243_v35, %v1700_v38 }
 0x12e   : > { %v1657_v33 = vadd.f32 %v1633_v30, %v1527_v39  ;;  %v1724_v47 = vmax.f32 %v1714_v40, 0.0 }
 0x130   : > { %v1677_v49 = vadd.f32 %v1667_v42, %v1657_v33  ;;  %v1794_v50 = vmul.f32 %v1747_v41, %v1724_v47  ;;  %v1172_v22 = vpop.f32.mrf.mxu1  ;;  %v1638_v58 = vpop.f32.mrf.mxu0 }
 0x131   : > { %v1334_v51 = vpop.f32.mrf.mxu2  ;;  %v1193_v63 = vadd.f32 %v1172_v22, %v3202_v53  ;;  %v1757_v53 = vpop.permute.xlu1 %1756 }
 0x132   : > { %1687 = vst [vmem:[%s3238_s29 + $0x13] sm:$0xff] %v1677_v49  ;;  %v1818_v5 = vpack.c.bf16 %v1794_v50, %v1794_v50  ;;  %v1356_v16 = vadd.f32 %v1334_v51, %v1192_v46  ;;  %v1701_v54 = vmul.f32 %v3233_v34, %v1677_v49  ;;  %v1670_v49 = vld [vmem:[%s3226_s23 + $0x2b] sm:$0xff] }
 0x134   : > { %v1832_v43 = vshrl.u32 %v1818_v5, 16  ;;  %v1835_v11 = vshll.u32 %v1818_v5, 16  ;;  %v1528_v55 = vadd.f32 %v1506_v27, %v1356_v16  ;;  %v1715_v56 = vadd.f32 %v3243_v35, %v1701_v54 }
 0x136   : > { %v1834_v59 = vrot.slane %v1832_v43, 6  ;;  %v1837_v60 = vrot.slane %v1835_v11, 7  ;;  %v1658_v62 = vadd.f32 %v1636_v12, %v1528_v55  ;;  %v1725_v10 = vmax.f32 %v1715_v56, 0.0  ;;  %v1513_v12 = vpop.f32.mrf.mxu3 }
 0x138   : > { %v1838_v2 = vor.u32 %v1837_v60, %v1834_v59  ;;  %v1678_v3 = vadd.f32 %v1668_v29, %v1658_v62  ;;  %v1795_v4 = vmul.f32 %v1752_v0, %v1725_v10  ;;  %v1175_v26 = vpop.f32.mrf.mxu1  ;;  %v1641_v27 = vpop.f32.mrf.mxu0 }
 0x139   : > { %v1336_v6 = vpop.f32.mrf.mxu2  ;;  %v1194_v18 = vadd.f32 %v1175_v26, %v3205_v23  ;;  %v1762_v11 = vpop.permute.xlu1 %1761 }
 0x13a   : > { %v1945_v9 = vsel %vm1943_vm8, %v1838_v2, %v1944_v1  ;;  %1688 = vst [vmem:[%s3238_s29 + $0x1b] sm:$0xff] %v1678_v3  ;;  %v1357_v13 = vadd.f32 %v1336_v6, %v1193_v63  ;;  %v1702_v8 = vmul.f32 %v3233_v34, %v1678_v3  ;;  %v1819_v19 = vpack.c.bf16 %v1795_v4, %v1795_v4  ;;  %v1767_v10 = vpop.permute.xlu2 %1766  ;;  %v1671_v4 = vld [vmem:[%s3226_s23 + $0x33] sm:$0xff] }
 0x13b   : > { %1946 = vst [vmem:[%s3093_s19 + $0x4] sm:$0xe] %v1945_v9  ;;  %v1839_v38 = vrot.slane %v1838_v2, 4 }
 0x13c   : > { %v1529_v17 = vadd.f32 %v1508_v48, %v1357_v13  ;;  %v1716_v21 = vadd.f32 %v3243_v35, %v1702_v8  ;;  %v1841_v37 = vshrl.u32 %v1819_v19, 16  ;;  %v1844_v25 = vshll.u32 %v1819_v19, 16 }
 0x13e   : > { %v1659_v28 = vadd.f32 %v1638_v58, %v1529_v17  ;;  %v1726_v30 = vmax.f32 %v1716_v21, 0.0  ;;  %v1843_v15 = vrot.slane %v1841_v37, 6  ;;  %v1846_v61 = vrot.slane %v1844_v25, 7  ;;  %v1516_v6 = vpop.f32.mrf.mxu3 }
 0x140   : > { %v1679_v36 = vadd.f32 %v1669_v44, %v1659_v28  ;;  %v1796_v14 = vmul.f32 %v1757_v53, %v1726_v30  ;;  %v1847_v39 = vor.u32 %v1846_v61, %v1843_v15  ;;  %v1177_v50 = vpop.f32.mrf.mxu1  ;;  %v1643_v51 = vpop.f32.mrf.mxu0 }
 0x141   : > { %v1339_v41 = vpop.f32.mrf.mxu2  ;;  %v1195_v43 = vadd.f32 %v1177_v50, %v3208_v52 }
 0x142   : > { %1689 = vst [vmem:[%s3238_s29 + $0x23] sm:$0xff] %v1679_v36  ;;  %v1820_v40 = vpack.c.bf16 %v1796_v14, %v1796_v14  ;;  %v1358_v42 = vadd.f32 %v1339_v41, %v1194_v18  ;;  %v1703_v23 = vmul.f32 %v3233_v34, %v1679_v36  ;;  %v1848_v45 = vsel %vm3263_vm11, %v1839_v38, %v1847_v39  ;;  %v1672_v14 = vld [vmem:[%s3226_s23 + $0x3b] sm:$0xff] }
 0x143   : > { %1947 = vst [vmem:[%s3093_s19 + $0x8] sm:$0xf] %v1848_v45  ;;  %v1849_v56 = vrot.slane %v1847_v39, 4 }
 0x144   : > { %v1851_v33 = vshrl.u32 %v1820_v40, 16  ;;  %v1854_v46 = vshll.u32 %v1820_v40, 16  ;;  %v1530_v47 = vadd.f32 %v1511_v20, %v1358_v42  ;;  %v1717_v48 = vadd.f32 %v3243_v35, %v1703_v23  ;;  %v1772_v23 = vpop.permute.xlu2 %1771 }
 0x146   : > { %v1853_v5 = vrot.slane %v1851_v33, 6  ;;  %v1856_v16 = vrot.slane %v1854_v46, 7  ;;  %v1660_v54 = vadd.f32 %v1641_v27, %v1530_v47  ;;  %v1727_v55 = vmax.f32 %v1717_v48, 0.0  ;;  %v1518_v45 = vpop.f32.mrf.mxu3 }
 0x148   : > { %v1857_v29 = vor.u32 %v1856_v16, %v1853_v5  ;;  %v1680_v22 = vadd.f32 %v1670_v49, %v1660_v54  ;;  %v1797_v58 = vmul.f32 %v1762_v11, %v1727_v55  ;;  %v1180_v20 = vpop.f32.mrf.mxu1  ;;  %v1646_v53 = vpop.f32.mrf.mxu0 }
 0x149   : > { %v1341_v59 = vpop.f32.mrf.mxu2  ;;  %v1196_v13 = vadd.f32 %v1180_v20, %v3211_v57 }
 0x14a   : > { %v1858_v60 = vsel %vm3263_vm11, %v1849_v56, %v1857_v29  ;;  %1690 = vst [vmem:[%s3238_s29 + $0x2b] sm:$0xff] %v1680_v22  ;;  %v1359_v62 = vadd.f32 %v1341_v59, %v1195_v43  ;;  %v1704_v63 = vmul.f32 %v3233_v34, %v1680_v22  ;;  %v1821_v0 = vpack.c.bf16 %v1797_v58, %v1797_v58  ;;  %v1673_v56 = vld [vmem:[%s3226_s23 + $0x43] sm:$0xff] }
 0x14b   : > { %1948 = vst [vmem:[%s3093_s19 + $0xc] sm:$0xf] %v1858_v60  ;;  %v1859_v25 = vrot.slane %v1857_v29, 4 }
 0x14c   : > { %v1531_v1 = vadd.f32 %v1513_v12, %v1359_v62  ;;  %v1718_v52 = vadd.f32 %v3243_v35, %v1704_v63  ;;  %v1861_v2 = vshrl.u32 %v1821_v0, 16  ;;  %v1864_v3 = vshll.u32 %v1821_v0, 16  ;;  %v1777_v63 = vpop.permute.xlu0 %1776 }
 0x14e   : > { %v1661_v9 = vadd.f32 %v1643_v51, %v1531_v1  ;;  %v1728_v8 = vmax.f32 %v1718_v52, 0.0  ;;  %v1863_v19 = vrot.slane %v1861_v2, 6  ;;  %v1866_v17 = vrot.slane %v1864_v3, 7  ;;  %v1521_v2 = vpop.f32.mrf.mxu3 }
 0x150   : > { %v1681_v21 = vadd.f32 %v1671_v4, %v1661_v9  ;;  %v1798_v37 = vmul.f32 %v1767_v10, %v1728_v8  ;;  %v1867_v44 = vor.u32 %v1866_v17, %v1863_v19  ;;  %v1182_v38 = vpop.f32.mrf.mxu1  ;;  %v1648_v48 = vpop.f32.mrf.mxu0 }
 0x151   : > { %v1344_v26 = vpop.f32.mrf.mxu2  ;;  %v1197_v42 = vadd.f32 %v1182_v38, %v3214_v32 }
 0x152   : > { %1691 = vst [vmem:[%s3238_s29 + $0x33] sm:$0xff] %v1681_v21  ;;  %v1822_v27 = vpack.c.bf16 %v1798_v37, %v1798_v37  ;;  %v1360_v28 = vadd.f32 %v1344_v26, %v1196_v13  ;;  %v1705_v18 = vmul.f32 %v3233_v34, %v1681_v21  ;;  %v1868_v30 = vsel %vm3263_vm11, %v1859_v25, %v1867_v44 }
 0x153   : > { %1949 = vst [vmem:[%s3093_s19 + $0x10] sm:$0xf] %v1868_v30  ;;  %v1869_v33 = vrot.slane %v1867_v44, 4 }
 0x154   : > { %v1871_v57 = vshrl.u32 %v1822_v27, 16  ;;  %v1874_v15 = vshll.u32 %v1822_v27, 16  ;;  %v1532_v61 = vadd.f32 %v1516_v6, %v1360_v28  ;;  %v1719_v36 = vadd.f32 %v3243_v35, %v1705_v18  ;;  %v1782_v27 = vpop.permute.xlu1 %1781 }
 0x156   : > { %v1873_v39 = vrot.slane %v1871_v57, 6  ;;  %v1876_v41 = vrot.slane %v1874_v15, 7  ;;  %v1662_v40 = vadd.f32 %v1646_v53, %v1532_v61  ;;  %v1729_v12 = vmax.f32 %v1719_v36, 0.0  ;;  %v1674_v53 = vld [vmem:[%s3226_s23 + $0x4b] sm:$0xff] }
 0x158   : > { %v1877_v46 = vor.u32 %v1876_v41, %v1873_v39  ;;  %v1682_v47 = vadd.f32 %v1672_v14, %v1662_v40  ;;  %v1799_v49 = vmul.f32 %v1772_v23, %v1729_v12  ;;  %v1185_v29 = vpop.f32.mrf.mxu1  ;;  %v1523_v39 = vpop.f32.mrf.mxu3  ;;  %v1675_v12 = vld [vmem:[%s3226_s23 + $0x53] sm:$0xff] }
 0x159   : > { %v1346_v50 = vpop.f32.mrf.mxu2  ;;  %v1198_v59 = vadd.f32 %v1185_v29, %v3217_v7  ;;  %v1651_v7 = vpop.f32.mrf.mxu0 }
 0x15a   : > { %v1878_v51 = vsel %vm3263_vm11, %v1869_v33, %v1877_v46  ;;  %1692 = vst [vmem:[%s3238_s29 + $0x3b] sm:$0xff] %v1682_v47  ;;  %v1706_v5 = vmul.f32 %v3233_v34, %v1682_v47  ;;  %v1361_v16 = vadd.f32 %v1346_v50, %v1197_v42  ;;  %v1823_v54 = vpack.c.bf16 %v1799_v49, %v1799_v49  ;;  %v1787_v47 = vpop.permute.xlu2 %1786 }
 0x15b   : > { %1950 = vst [vmem:[%s3093_s19 + $0x14] sm:$0xf] %v1878_v51  ;;  %v1879_v10 = vrot.slane %v1877_v46, 4 }
 0x15c   : > { %v1720_v32 = vadd.f32 %v3243_v35, %v1706_v5  ;;  %v1533_v43 = vadd.f32 %v1518_v45, %v1361_v16  ;;  %v1881_v11 = vshrl.u32 %v1823_v54, 16  ;;  %v1884_v55 = vshll.u32 %v1823_v54, 16 }
 0x15e   : > { %v1730_v22 = vmax.f32 %v1720_v32, 0.0  ;;  %v1663_v58 = vadd.f32 %v1648_v48, %v1533_v43  ;;  %v1883_v60 = vrot.slane %v1881_v11, 6  ;;  %v1886_v62 = vrot.slane %v1884_v55, 7 }
 0x160   : > { %v1800_v0 = vmul.f32 %v1777_v63, %v1730_v22  ;;  %v1683_v1 = vadd.f32 %v1673_v56, %v1663_v58  ;;  %v1887_v52 = vor.u32 %v1886_v62, %v1883_v60  ;;  %v1187_v21 = vpop.f32.mrf.mxu1 }
 0x161   : > { %v1349_v3 = vpop.f32.mrf.mxu2  ;;  %v1199_v26 = vadd.f32 %v1187_v21, %v3221_v24  ;;  %v1653_v42 = vpop.f32.mrf.mxu0 }
 0x162   : > { %v1824_v4 = vpack.c.bf16 %v1800_v0, %v1800_v0  ;;  %1693 = vst [vmem:[%s3238_s29 + $0x43] sm:$0xff] %v1683_v1  ;;  %v1362_v6 = vadd.f32 %v1349_v3, %v1198_v59  ;;  %v1707_v20 = vmul.f32 %v3233_v34, %v1683_v1  ;;  %v1888_v9 = vsel %vm3263_vm11, %v1879_v10, %v1887_v52  ;;  %v1792_v59 = vpop.permute.xlu0 %1791 }
 0x163   : > { %1951 = vst [vmem:[%s3093_s19 + $0x18] sm:$0xf] %v1888_v9  ;;  %v1889_v18 = vrot.slane %v1887_v52, 4 }
 0x164   : > { %v1891_v13 = vshrl.u32 %v1824_v4, 16  ;;  %v1894_v8 = vshll.u32 %v1824_v4, 16  ;;  %v1534_v19 = vadd.f32 %v1521_v2, %v1362_v6  ;;  %v1721_v17 = vadd.f32 %v3243_v35, %v1707_v20  ;;  %v1958_v4 = vld [vmem:[%s3093_s19 + $0x2c] sm:$0x3] }
 0x166   : > { %v1893_v37 = vrot.slane %v1891_v13, 6  ;;  %v1896_v25 = vrot.slane %v1894_v8, 7  ;;  %v1664_v44 = vadd.f32 %v1651_v7, %v1534_v19  ;;  %v1731_v28 = vmax.f32 %v1721_v17, 0.0 }
 0x168   : > { %v1897_v30 = vor.u32 %v1896_v25, %v1893_v37  ;;  %v1684_v57 = vadd.f32 %v1674_v53, %v1664_v44  ;;  %v1801_v15 = vmul.f32 %v1782_v27, %v1731_v28 }
 0x169   : > { %v1351_v61 = vpop.f32.mrf.mxu2 }
 0x16a   : > { %v1898_v36 = vsel %vm3263_vm11, %v1889_v18, %v1897_v30  ;;  %1694 = vst [vmem:[%s3238_s29 + $0x4b] sm:$0xff] %v1684_v57  ;;  %v1708_v14 = vmul.f32 %v3233_v34, %v1684_v57  ;;  %v1363_v38 = vadd.f32 %v1351_v61, %v1199_v26  ;;  %v1825_v41 = vpack.c.bf16 %v1801_v15, %v1801_v15 }
 0x16b   : > { %1952 = vst [vmem:[%s3093_s19 + $0x1c] sm:$0xf] %v1898_v36  ;;  %v1899_v5 = vrot.slane %v1897_v30, 4 }
 0x16c   : > { %v1722_v24 = vadd.f32 %v3243_v35, %v1708_v14  ;;  %v1535_v40 = vadd.f32 %v1523_v39, %v1363_v38  ;;  %v1901_v23 = vshrl.u32 %v1825_v41, 16  ;;  %v1904_v45 = vshll.u32 %v1825_v41, 16 }
 0x16e   : > { %v1732_v33 = vmax.f32 %v1722_v24, 0.0  ;;  %v1665_v46 = vadd.f32 %v1653_v42, %v1535_v40  ;;  %v1903_v48 = vrot.slane %v1901_v23, 6  ;;  %v1906_v49 = vrot.slane %v1904_v45, 7 }
 0x170   : > { %v1802_v50 = vmul.f32 %v1787_v47, %v1732_v33  ;;  %v1685_v51 = vadd.f32 %v1675_v12, %v1665_v46  ;;  %v1907_v16 = vor.u32 %v1906_v49, %v1903_v48 }
 0x172   : > { %v1826_v54 = vpack.c.bf16 %v1802_v50, %v1802_v50  ;;  %1695 = vst [vmem:[%s3238_s29 + $0x53] sm:$0xff] %v1685_v51  ;;  %v1709_v32 = vmul.f32 %v3233_v34, %v1685_v51  ;;  %v1908_v43 = vsel %vm3263_vm11, %v1899_v5, %v1907_v16  ;;  %v1909_v62 = vrot.slane %v1907_v16, 4 }
 0x173   : > { %1953 = vst [vmem:[%s3093_s19 + $0x20] sm:$0xf] %v1908_v43 }
 0x174   : > { %v1911_v11 = vshrl.u32 %v1826_v54, 16  ;;  %v1914_v55 = vshll.u32 %v1826_v54, 16  ;;  %v1723_v56 = vadd.f32 %v3243_v35, %v1709_v32 }
 0x176   : > { %v1913_v29 = vrot.slane %v1911_v11, 6  ;;  %v1916_v22 = vrot.slane %v1914_v55, 7  ;;  %v1733_v58 = vmax.f32 %v1723_v56, 0.0 }
 0x178   : > { %v1917_v60 = vor.u32 %v1916_v22, %v1913_v29  ;;  %v1803_v63 = vmul.f32 %v1792_v59, %v1733_v58 }
 0x17a   : > { %v1918_v34 = vsel %vm3263_vm11, %v1909_v62, %v1917_v60  ;;  %v1827_v0 = vpack.c.bf16 %v1803_v63, %v1803_v63  ;;  %v1919_v35 = vrot.slane %v1917_v60, 4 }
 0x17b   : > { %1954 = vst [vmem:[%s3093_s19 + $0x24] sm:$0xf] %v1918_v34 }
 0x17c   : > { %v1921_v1 = vshrl.u32 %v1827_v0, 16  ;;  %v1924_v10 = vshll.u32 %v1827_v0, 16 }
 0x17e   : > { %v1923_v52 = vrot.slane %v1921_v1, 6  ;;  %v1926_v2 = vrot.slane %v1924_v10, 7 }
 0x180   : > { %v1927_v3 = vor.u32 %v1926_v2, %v1923_v52 }
 0x182   : > { %v1928_v6 = vsel %vm3263_vm11, %v1919_v35, %v1927_v3  ;;  %v1929_v20 = vrot.slane %v1927_v3, 4 }
 0x183   : > { %1955 = vst [vmem:[%s3093_s19 + $0x28] sm:$0xf] %v1928_v6 }
 0x184   : > { %v1959_v9 = vsel %vm1957_vm13, %v1929_v20, %v1958_v4 }
 0x185   : > { %1960 = vst [vmem:[%s3093_s19 + $0x2c] sm:$0x3] %v1959_v9 }
 0x186 PF: > { %s18_s24 = sadd.s32 1, %s2665_s24  }
 0x187   : > { %p15_p4 = scmp.ge.s32.totalorder %s18_s24, 4  }
 0x189   :  { %17 = sbr.rel (!%p15_p4) target bundleno = 1 (0x1), region = 97 }

// kernel: resnet_layer_pallas.6
= control target key start
LH: loop header
LB: loop body
LE: loop exit
PB: predicated region body
PF: predicated region fallthrough
CT: control target
= control target key end

     0   :  { %s2533_s18 = smov 0   ;;  %s3126_s0 = inlined_call_operand.vmem [shape: bf16[2,110,128], index: 0, kind: input, shape index: {}]   ;;  %s3127_s1 = inlined_call_operand.vmem [shape: bf16[9,128,128], index: 1, kind: input, shape index: {}]   ;;  %s3128_s2 = inlined_call_operand.vmem [shape: f32[1,128], index: 2, kind: input, shape index: {}]   ;;  %s3129_s3 = inlined_call_operand.vmem [shape: f32[1,128], index: 3, kind: input, shape index: {}]   ;;  %s3130_s4 = inlined_call_operand.vmem [shape: f32[80,1], index: 4, kind: input, shape index: {}]   ;;  %s3131_s5 = inlined_call_operand.vmem [shape: bf16[2,110,128], index: 5, kind: output, shape index: {}]  }
   0x1 LB: > { %s1899_s19 = sadd.s32 4294967295, %s2500_s18   ;;  %p1903_p0 = scmp.ge.s32.totalorder %s2500_s18, 1  ;;  %s2500_s18 = sphi %s2533_s18, %s15_s18  }
   0x2   : > { %p187_p1 = scmp.lt.s32.totalorder %s2500_s18, 3 }
   0x4   : > { %p188_p2 = pnand %p1903_p0, %p187_p1 }
   0x5   : > { %p215_p3 = scmp.lt.s32.totalorder (!%p188_p2), %s1899_s19, 1 }
   0x6   : > { %191 = sbr.rel (%p188_p2) target bundleno = 388 (0x184), region = 40 }
   0xb   : > { %v2391_v0 = vld [vmem:[%s3127_s1 + $0x78] sm:$0xff]  ;;  %v2390_v1 = vld [vmem:[%s3127_s1 + $0x70] sm:$0xff]  ;;  %s3135_s19 = smov (!%p215_p3, %s1899_s19), 1  ;;  %v2389_v4 = vld [vmem:[%s3127_s1 + $0x68] sm:$0xff]  ;;  %vm298_vm0 = vsmask.f32 7424 }
   0xc   : > { %396 = vmatpush.bf16.msra.mxu0 %v2391_v0  ;;  %2463 = vmatpush.bf16.msra.mxu1 %v2391_v0  ;;  %v2411_v2 = vld [vmem:[%s3127_s1 + $0xf8] sm:$0xff]  ;;  %v2410_v3 = vld [vmem:[%s3127_s1 + $0xf0] sm:$0xff]  ;;  %s2479_s30 = smul.u32 56, %s3135_s19  ;;  %v2409_v5 = vld [vmem:[%s3127_s1 + $0xe8] sm:$0xff]  ;;  %vm538_vm1 = vcmask 1046528   ;;  %vm1004_vm4 = vcmask 1045504  }
   0xd   : > { %2464 = vmatpush.bf16.msra.mxu2 %v2391_v0  ;;  %767 = vmatpush.bf16.msra.mxu3 %v2411_v2  ;;  %v2388_v6 = vld [vmem:[%s3127_s1 + $0x60] sm:$0xff]  ;;  %v2387_v9 = vld [vmem:[%s3127_s1 + $0x58] sm:$0xff]  ;;  %v2386_v17 = vld [vmem:[%s3127_s1 + $0x50] sm:$0xff]  ;;  %vm832_vm2 = vsmask.f32 6400  ;;  %vm1470_vm5 = vcmask 1044480  }
   0xe   : > { %s2570_s12 = scalar_lea.vmem %s3126_s0, %s2479_s30  ;;  %v2408_v7 = vld [vmem:[%s3127_s1 + $0xe0] sm:$0xff]  ;;  %v2407_v14 = vld [vmem:[%s3127_s1 + $0xd8] sm:$0xff]  ;;  %v2406_v24 = vld [vmem:[%s3127_s1 + $0xd0] sm:$0xff]  ;;  %vm1298_vm3 = vsmask.f32 5376  ;;  %s2918_s21 = scalar_lea.vmem %s3131_s5, %s2479_s30  ;;  %vm1824_vm6 = vcmask 1043457  }
   0xf   : > { %v252_v8 = vld [vmem:[%s2570_s12 + $0x28] sm:$0x1]  ;;  %v2580_v10 = vld [vmem:[%s2570_s12] sm:$0xff]   ;;  %v2583_v11 = vld [vmem:[%s2570_s12 + $0x10] sm:$0xff]  ;;  %vm1825_vm7 = vsmask.f32 7942 }
  0x10   : > { %397 = vmatpush.bf16.msra.mxu0 %v2390_v1  ;;  %2465 = vmatpush.bf16.msra.mxu1 %v2390_v1  ;;  %v2586_v12 = vld [vmem:[%s2570_s12 + $0x20] sm:$0xff]  ;;  %v291_v13 = vunpack.c.l.b16 %v252_v8  ;;  %v2592_v15 = vld [vmem:[%s2570_s12 + $0x8] sm:$0xff]  ;;  %v302_v16 = vshll.u32 %v2580_v10, 16  ;;  %v2599_v18 = vld [vmem:[%s2570_s12 + $0x18] sm:$0xff]  ;;  %v315_v19 = vshll.u32 %v2583_v11, 16  ;;  %v300_v25 = vshrl.u32 %v2580_v10, 16 }
  0x11   : > { %2466 = vmatpush.bf16.msra.mxu2 %v2390_v1  ;;  %768 = vmatpush.bf16.msra.mxu3 %v2410_v3  ;;  %v331_v21 = vshll.u32 %v2586_v12, 16  ;;  %v647_v22 = vld [vmem:[%s2570_s12 + $0x4] sm:$0xe]  ;;  %v2607_v23 = vld [vmem:[%s2570_s12 + $0x8] sm:$0xff]   ;;  %v307_v27 = vshll.u32 %v2592_v15, 16  ;;  %v319_v28 = vshrl.u32 %v2583_v11, 16  ;;  %vm1826_vm8 = vmand %vm1824_vm6, %vm1825_vm7 }
  0x12   : > { %v2602_v20 = vpack.c.b16 %v291_v13, %v291_v13  ;;  %v304_v26 = vrot.slane %v302_v16, 1  ;;  %v2385_v29 = vld [vmem:[%s3127_s1 + $0x48] sm:$0xff]  ;;  %v2618_v30 = vrot.slane %v315_v19, 1  ;;  %v323_v31 = vshll.u32 %v2599_v18, 16  ;;  %v2384_v39 = vld [vmem:[%s3127_s1 + $0x40] sm:$0xff]  ;;  %v2383_v45 = vld [vmem:[%s3127_s1 + $0x38] sm:$0xff] }
  0x13   : > { %v686_v32 = vunpack.c.l.b16 %v647_v22  ;;  %v687_v33 = vunpack.c.l.b16 %v2607_v23  ;;  %v2622_v34 = vrot.slane %v331_v21, 1  ;;  %v335_v35 = vshrl.u32 %v2586_v12, 16  ;;  %v2405_v37 = vld [vmem:[%s3127_s1 + $0xc8] sm:$0xff]  ;;  %v2399_v48 = vld [vmem:[%s3127_s1 + $0xb8] sm:$0xff]  ;;  %v2404_v52 = vld [vmem:[%s3127_s1 + $0xc0] sm:$0xff] }
  0x14   : > { %398 = vmatpush.bf16.msra.mxu0 %v2389_v4  ;;  %2467 = vmatpush.bf16.msra.mxu1 %v2389_v4  ;;  %v339_v36 = vshll.u32 %v2602_v20, 16  ;;  %v309_v38 = vrot.slane %v307_v27, 1  ;;  %v305_v40 = vor.u32 %v304_v26, %v300_v25  ;;  %v321_v41 = vor.u32 %v319_v28, %v2618_v30  ;;  %v2634_v43 = vld [vmem:[%s2570_s12 + $0xc] sm:$0xff]  ;;  %v2419_v49 = vld [vmem:[%s3127_s1 + $0x138] sm:$0xff]  ;;  %v2380_v3 = vld [vmem:[%s3127_s1 + $0x20] sm:$0xff] }
  0x15   : > { %2468 = vmatpush.bf16.msra.mxu2 %v2389_v4  ;;  %769 = vmatpush.bf16.msra.mxu3 %v2409_v5  ;;  %v325_v42 = vrot.slane %v323_v31, 1  ;;  %v2638_v44 = vpack.c.b16 %v687_v33, %v686_v32  ;;  %v337_v46 = vor.u32 %v335_v35, %v2622_v34  ;;  %v704_v54 = vrot.slane %v2634_v43, 1  ;;  %v2382_v56 = vld [vmem:[%s3127_s1 + $0x30] sm:$0xff]  ;;  %v2447_v57 = vld [vmem:[%s3127_s1 + $0x1f8] sm:$0xff]  ;;  %v2381_v61 = vld [vmem:[%s3127_s1 + $0x28] sm:$0xff] }
  0x16   : > { %v341_v47 = vrot.slane %v339_v36, 1  ;;  %v310_v50 = vsel %vm298_vm0, %v305_v40, %v309_v38  ;;  %v2398_v58 = vld [vmem:[%s3127_s1 + $0xb0] sm:$0xff]  ;;  %v2397_v63 = vld [vmem:[%s3127_s1 + $0xa8] sm:$0xff]  ;;  %v311_v1 = vshrl.u32 %v2592_v15, 16  ;;  %v327_v2 = vshrl.u32 %v2599_v18, 16  ;;  %v2396_v4 = vld [vmem:[%s3127_s1 + $0xa0] sm:$0xff] }
  0x17   : > { %v326_v51 = vsel %vm298_vm0, %v321_v41, %v325_v42  ;;  %v703_v53 = vrot.slane %v2638_v44, 1  ;;  %v2418_v59 = vld [vmem:[%s3127_s1 + $0x130] sm:$0xff]  ;;  %v2417_v0 = vld [vmem:[%s3127_s1 + $0x128] sm:$0xff]  ;;  %v2416_v5 = vld [vmem:[%s3127_s1 + $0x120] sm:$0xff]  ;;  %v834_v27 = vshrl.u32 %v2638_v44, 16  ;;  %v845_v31 = vshll.u32 %v2634_v43, 16 }
  0x18   : > { %399 = vmatpush.bf16.msra.mxu0 %v2388_v6  ;;  %2469 = vmatpush.bf16.msra.mxu1 %v2388_v6  ;;  %v342_v55 = vsel %vm298_vm0, %v337_v46, %v341_v47  ;;  %v2446_v62 = vld [vmem:[%s3127_s1 + $0x1f0] sm:$0xff]  ;;  %v2395_v13 = vld [vmem:[%s3127_s1 + $0x98] sm:$0xff]  ;;  %v2460_v25 = vld [vmem:[%s2570_s12] sm:$0xf0]  ;;  %v540_v46 = vrot.slane %v2592_v15, 1  ;;  %vm1839_vm12 = vcmask 1041408  }
  0x19   : > { %2470 = vmatpush.bf16.msra.mxu2 %v2388_v6  ;;  %770 = vmatpush.bf16.msra.mxu3 %v2408_v7  ;;  %v705_v60 = vsel %vm538_vm1, %v703_v53, %v704_v54  ;;  %v313_v6 = vor.u32 %v311_v1, %v309_v38  ;;  %v329_v7 = vor.u32 %v327_v2, %v325_v42  ;;  %v2695_v8 = vld [vmem:[%s2570_s12 + $0x14] sm:$0xff]  ;;  %v2461_v26 = vld [vmem:[%s2570_s12] sm:$0xe]  ;;  %v2445_v28 = vld [vmem:[%s3127_s1 + $0x1e8] sm:$0xff]  ;;  %v836_v38 = vrot.slane %v834_v27, 1 }
  0x1a   : > { %v706_v19 = vrot.slane %v2695_v8, 1  ;;  %v2378_v21 = vld [vmem:[%s3127_s1 + $0x10] sm:$0xff]  ;;  %v2393_v35 = vld [vmem:[%s3127_s1 + $0x88] sm:$0xff]  ;;  %v847_v41 = vrot.slane %v845_v31, 2  ;;  %v2376_v42 = vld [vmem:[%s3127_s1] sm:$0xff] }
  0x1b   : > { %v318_v16 = vsel %vm298_vm0, %v313_v6, %v2618_v30  ;;  %v2394_v22 = vld [vmem:[%s3127_s1 + $0x90] sm:$0xff]  ;;  %v842_v30 = vshrl.u32 %v2634_v43, 16  ;;  %v2413_v36 = vld [vmem:[%s3127_s1 + $0x108] sm:$0xff]  ;;  %v2412_v47 = vld [vmem:[%s3127_s1 + $0x100] sm:$0xff]  ;;  %vm1711_vm9 = vsmask.f32 1280 }
  0x1c   : > { %400 = vmatpush.bf16.msra.mxu0 %v2387_v9  ;;  %2471 = vmatpush.bf16.msra.mxu1 %v2387_v9  ;;  %v707_v32 = vsel %vm538_vm1, %v704_v54, %v706_v19  ;;  %v2761_v53 = vld [vmem:[%s2570_s12 + $0x1c] sm:$0xff]  ;;  %v2422_v27 = vld [vmem:[%s3127_s1 + $0x150] sm:$0xff]  ;;  %vm1712_vm10 = vsmask.f32 5392  ;;  %vm1840_vm13 = vmand %vm1839_vm12, %vm1711_vm9 }
  0x1d   : > { %2472 = vmatpush.bf16.msra.mxu2 %v2387_v9  ;;  %771 = vmatpush.bf16.msra.mxu3 %v2407_v14  ;;  %v2379_v9 = vld [vmem:[%s3127_s1 + $0x18] sm:$0xff]  ;;  %v844_v40 = vrot.slane %v842_v30, 1  ;;  %v2424_v6 = vld [vmem:[%s3127_s1 + $0x160] sm:$0xff]  ;;  %v2450_v31 = vld [vmem:[%s3127_s1 + $0x210] sm:$0xff] }
  0x1e   : > { %v2415_v14 = vld [vmem:[%s3127_s1 + $0x118] sm:$0xff]  ;;  %vm3069_vm11 = vmor %vm1711_vm9, %vm1712_vm10 }
  0x1f   : > { %v2443_v2 = vld [vmem:[%s3127_s1 + $0x1d8] sm:$0xff] }
  0x20   : > { %401 = vmatpush.bf16.msra.mxu0 %v2386_v17  ;;  %2473 = vmatpush.bf16.msra.mxu1 %v2386_v17 }
  0x21   : > { %2474 = vmatpush.bf16.msra.mxu2 %v2386_v17  ;;  %772 = vmatpush.bf16.msra.mxu3 %v2406_v24  ;;  %v334_v17 = vsel %vm298_vm0, %v329_v7, %v2622_v34  ;;  %v2414_v24 = vld [vmem:[%s3127_s1 + $0x110] sm:$0xff]  ;;  %v2377_v34 = vld [vmem:[%s3127_s1 + $0x8] sm:$0xff]  ;;  %v2452_v7 = vld [vmem:[%s3127_s1 + $0x220] sm:$0xff] }
  0x24   : > { %402 = vmatpush.bf16.msra.mxu0 %v2385_v29  ;;  %2475 = vmatpush.bf16.msra.mxu1 %v2385_v29 }
  0x25   : > { %2476 = vmatpush.bf16.msra.mxu2 %v2385_v29  ;;  %773 = vmatpush.bf16.msra.mxu3 %v2405_v37  ;;  %v837_v29 = vshll.u32 %v2638_v44, 16  ;;  %v2462_v37 = vor.u32 %v2461_v26, %v2460_v25  ;;  %v2392_v44 = vld [vmem:[%s3127_s1 + $0x80] sm:$0xff]  ;;  %v2451_v25 = vld [vmem:[%s3127_s1 + $0x218] sm:$0xff]  ;;  %v2442_v26 = vld [vmem:[%s3127_s1 + $0x1d0] sm:$0xff] }
  0x28   : > { %403 = vmatpush.bf16.msra.mxu0 %v2384_v39  ;;  %2477 = vmatpush.bf16.msra.mxu1 %v2384_v39 }
  0x29   : > { %2478 = vmatpush.bf16.msra.mxu2 %v2384_v39  ;;  %774 = vmatpush.bf16.msra.mxu3 %v2404_v52  ;;  %v839_v39 = vrot.slane %v837_v29, 2  ;;  %v2455_v52 = vld [vmem:[%s3127_s1 + $0x238] sm:$0xff]  ;;  %v863_v29 = vshll.u32 %v2761_v53, 16 }
  0x2b   : > { %404 = vmatmul.bf16.vlgmr.msra.gmra.mxu0 %v310_v50  ;;  %414 = vmatmul.bf16.vlgmr.msra.gmra.mxu1 %v326_v51  ;;  %v840_v50 = vor.u32 %v839_v39, %v836_v38  ;;  %v848_v51 = vor.u32 %v847_v41, %v844_v40  ;;  %v544_v38 = vrot.slane %v2599_v18, 1 }
  0x2c   : > { %483 = vmatpush.bf16.msrb.mxu1 %v2383_v45  ;;  %939 = vmatpush.bf16.msrb.mxu0 %v2419_v49  ;;  %v539_v45 = vrot.slane %v2462_v37, 1  ;;  %v2427_v49 = vld [vmem:[%s3127_s1 + $0x178] sm:$0xff] }
  0x2d   : > { %603 = vmatpush.bf16.msrb.mxu2 %v2399_v48  ;;  %1405 = vmatpush.bf16.msrb.mxu3 %v2447_v57  ;;  %v2439_v48 = vld [vmem:[%s3127_s1 + $0x1b8] sm:$0xff]  ;;  %v2426_v57 = vld [vmem:[%s3127_s1 + $0x170] sm:$0xff] }
  0x2e   : > { %424 = vmatmul.bf16.vlgmr.msra.gmra.mxu2 %v342_v55  ;;  %775 = vmatmul.bf16.vlgmr.msra.gmra.mxu3 %v705_v60  ;;  %v541_v54 = vsel %vm538_vm1, %v539_v45, %v540_v46  ;;  %v849_v55 = vsel %vm832_vm2, %v840_v50, %v848_v51  ;;  %v2444_v60 = vld [vmem:[%s3127_s1 + $0x1e0] sm:$0xff] }
  0x30   : > { %484 = vmatpush.bf16.msrb.mxu1 %v2382_v56  ;;  %940 = vmatpush.bf16.msrb.mxu0 %v2418_v59  ;;  %v2438_v56 = vld [vmem:[%s3127_s1 + $0x1b0] sm:$0xff] }
  0x31   : > { %604 = vmatpush.bf16.msrb.mxu2 %v2398_v58  ;;  %1406 = vmatpush.bf16.msrb.mxu3 %v2446_v62  ;;  %v708_v58 = vrot.slane %v2761_v53, 1  ;;  %v2454_v59 = vld [vmem:[%s3127_s1 + $0x230] sm:$0xff]  ;;  %v854_v62 = vshll.u32 %v2695_v8, 16 }
  0x33   : > { %v709_v1 = vsel %vm538_vm1, %v706_v19, %v708_v58 }
  0x34   : > { %485 = vmatpush.bf16.msrb.mxu1 %v2381_v61  ;;  %941 = vmatpush.bf16.msrb.mxu0 %v2417_v0  ;;  %v851_v61 = vshrl.u32 %v2695_v8, 16  ;;  %v2425_v0 = vld [vmem:[%s3127_s1 + $0x168] sm:$0xff] }
  0x35   : > { %605 = vmatpush.bf16.msrb.mxu2 %v2397_v63  ;;  %1407 = vmatpush.bf16.msrb.mxu3 %v2445_v28  ;;  %v2437_v63 = vld [vmem:[%s3127_s1 + $0x1a8] sm:$0xff]  ;;  %v860_v28 = vshrl.u32 %v2761_v53, 16 }
  0x38   : > { %486 = vmatpush.bf16.msrb.mxu1 %v2380_v3  ;;  %942 = vmatpush.bf16.msrb.mxu0 %v2416_v5  ;;  %v853_v3 = vrot.slane %v851_v61, 1  ;;  %v2436_v5 = vld [vmem:[%s3127_s1 + $0x1a0] sm:$0xff] }
  0x39   : > { %606 = vmatpush.bf16.msrb.mxu2 %v2396_v4  ;;  %1408 = vmatpush.bf16.msrb.mxu3 %v2444_v60  ;;  %v856_v4 = vrot.slane %v854_v62, 2  ;;  %v811_v60 = vld [vmem:[%s2570_s12 + $0x2c] sm:$0x3] }
  0x3b   : > { %409 = vmatmul.bf16.gmra.mxu0 %v318_v16  ;;  %419 = vmatmul.bf16.gmra.mxu1 %v334_v17  ;;  %v2810_v16 = vld [vmem:[%s2570_s12 + $0x24] sm:$0xff]  ;;  %v2423_v17 = vld [vmem:[%s3127_s1 + $0x158] sm:$0xff] }
  0x3c   : > { %487 = vmatpush.bf16.msrb.mxu1 %v2379_v9  ;;  %943 = vmatpush.bf16.msrb.mxu0 %v2415_v14  ;;  %v542_v9 = vrot.slane %v2583_v11, 1  ;;  %v2435_v14 = vld [vmem:[%s3127_s1 + $0x198] sm:$0xff]  ;;  %v872_v50 = vshll.u32 %v2810_v16, 16 }
  0x3d   : > { %607 = vmatpush.bf16.msrb.mxu2 %v2395_v13  ;;  %1409 = vmatpush.bf16.msrb.mxu3 %v2443_v2  ;;  %v857_v13 = vor.u32 %v856_v4, %v853_v3  ;;  %v830_v2 = vunpack.c.l.b16 %v811_v60 }
  0x3e   : > { %780 = vmatmul.bf16.gmra.mxu3 %v707_v32  ;;  %v543_v19 = vsel %vm538_vm1, %v540_v46, %v542_v9  ;;  %v657_v32 = vld [vmem:[%s2570_s12 + $0x2c] sm:$0x1]  ;;  %v545_v41 = vsel %vm538_vm1, %v542_v9, %v544_v38  ;;  %v2448_v9 = vld [vmem:[%s3127_s1 + $0x200] sm:$0xff] }
  0x3f   : > { %v696_v37 = vunpack.c.l.b16 %v657_v32 }
  0x40   : > { %488 = vmatpush.bf16.msrb.mxu1 %v2378_v21  ;;  %944 = vmatpush.bf16.msrb.mxu0 %v2414_v24  ;;  %v858_v21 = vsel %vm832_vm2, %v848_v51, %v857_v13  ;;  %v2434_v24 = vld [vmem:[%s3127_s1 + $0x190] sm:$0xff]  ;;  %v2432_v51 = vld [vmem:[%s3127_s1 + $0x180] sm:$0xff] }
  0x41   : > { %608 = vmatpush.bf16.msrb.mxu2 %v2394_v22  ;;  %v710_v22 = vrot.slane %v2810_v16, 1  ;;  %1410 = vmatpush.bf16.msrb.mxu3 %v2442_v26  ;;  %v702_v40 = vpack.c.b16 %v696_v37, %v696_v37  ;;  %v1449_v37 = vld [vmem:[%s2570_s12 + $0x8] sm:$0x8] }
  0x43   : > { %v711_v30 = vsel %vm538_vm1, %v708_v58, %v710_v22  ;;  %v712_v45 = vrot.slane %v702_v40, 1 }
  0x44   : > { %489 = vmatpush.bf16.msrb.mxu1 %v2377_v34  ;;  %945 = vmatpush.bf16.msrb.mxu0 %v2413_v36  ;;  %v2441_v34 = vld [vmem:[%s3127_s1 + $0x1c8] sm:$0xff]  ;;  %v865_v36 = vrot.slane %v863_v29, 2 }
  0x45   : > { %609 = vmatpush.bf16.msrb.mxu2 %v2393_v35  ;;  %v862_v35 = vrot.slane %v860_v28, 1  ;;  %1411 = vmatpush.bf16.msrb.mxu3 %v2441_v34 }
  0x47   : > { %v866_v39 = vor.u32 %v865_v36, %v862_v35  ;;  %v983_v35 = vld [vmem:[%s2570_s12 + $0x4] sm:$0xc] }
  0x48   : > { %490 = vmatpush.bf16.msrb.mxu1 %v2376_v42  ;;  %946 = vmatpush.bf16.msrb.mxu0 %v2412_v47  ;;  %v1113_v42 = vld [vmem:[%s2570_s12 + $0x8] sm:$0xc]  ;;  %v1153_v47 = vunpack.c.h.b16 %v2607_v23 }
  0x49   : > { %610 = vmatpush.bf16.msrb.mxu2 %v2392_v44  ;;  %v867_v44 = vsel %vm832_vm2, %v857_v13, %v866_v39  ;;  %v1152_v46 = vunpack.c.l.b16 %v1113_v42 }
  0x4b   : > { %491 = vmatmul.bf16.vlgmr.msrb.gmra.mxu1 %v2580_v10  ;;  %947 = vmatmul.bf16.vlgmr.msrb.gmra.mxu0 %v849_v55  ;;  %v2453_v10 = vld [vmem:[%s3127_s1 + $0x228] sm:$0xff]  ;;  %v2420_v55 = vld [vmem:[%s3127_s1 + $0x140] sm:$0xff] }
  0x4c   : > { %1069 = vmatpush.bf16.msra.mxu1 %v2427_v49  ;;  %1535 = vmatpush.bf16.msra.mxu0 %v2455_v52  ;;  %v869_v49 = vshrl.u32 %v2810_v16, 16  ;;  %v2449_v52 = vld [vmem:[%s3127_s1 + $0x208] sm:$0xff] }
  0x4d   : > { %1233 = vmatpush.bf16.msra.mxu2 %v2439_v48  ;;  %v2421_v48 = vld [vmem:[%s3127_s1 + $0x148] sm:$0xff] }
  0x4e   : > { %611 = vmatmul.bf16.vlgmr.msrb.gmra.mxu2 %v541_v54  ;;  %785 = vmatmul.bf16.gmra.mxu3 %v709_v1  ;;  %v2440_v54 = vld [vmem:[%s3127_s1 + $0x1c0] sm:$0xff]  ;;  %v871_v58 = vrot.slane %v869_v49, 1  ;;  %v546_v1 = vrot.slane %v2586_v12, 1 }
  0x4f   : > { %1412 = vmatpush.bf16.msrb.mxu3 %v2440_v54 }
  0x50   : > { %1070 = vmatpush.bf16.msra.mxu1 %v2426_v57  ;;  %1536 = vmatpush.bf16.msra.mxu0 %v2454_v59  ;;  %v2873_v57 = vpack.c.b16 %v1153_v47, %v1152_v46  ;;  %v874_v59 = vrot.slane %v872_v50, 2 }
  0x51   : > { %1234 = vmatpush.bf16.msra.mxu2 %v2438_v56  ;;  %v2869_v56 = vld [vmem:[%s2570_s12 + $0x10] sm:$0xff] }
  0x52   : > { %v1300_v61 = vshrl.u32 %v2873_v57, 16  ;;  %v1303_v62 = vshll.u32 %v2873_v57, 16  ;;  %v1169_v23 = vrot.slane %v2873_v57, 2  ;;  %v1170_v46 = vrot.slane %v2869_v56, 2 }
  0x53   : > { %v1472_v50 = vrot.slane %v2869_v56, 3 }
  0x54   : > { %1071 = vmatpush.bf16.msra.mxu1 %v2425_v0  ;;  %1537 = vmatpush.bf16.msra.mxu0 %v2453_v10  ;;  %v1311_v0 = vshll.u32 %v2869_v56, 16  ;;  %v875_v10 = vor.u32 %v874_v59, %v871_v58  ;;  %v1302_v3 = vrot.slane %v1300_v61, 2  ;;  %v1305_v4 = vrot.slane %v1303_v62, 3  ;;  %v2947_v58 = vld [vmem:[%s2570_s12 + $0x28] sm:$0xff]  ;;  %v1619_v61 = vld [vmem:[%s3130_s4 + $0x10] sm:$0xff] }
  0x55   : > { %1235 = vmatpush.bf16.msra.mxu2 %v2437_v63  ;;  %v1308_v63 = vshrl.u32 %v2869_v56, 16  ;;  %v1171_v54 = vsel %vm1004_vm4, %v1169_v23, %v1170_v46  ;;  %v1618_v56 = vld [vmem:[%s3130_s4 + $0x8] sm:$0xff]  ;;  %v1335_v59 = vshrl.u32 %v2947_v58, 16  ;;  %v1338_v60 = vshll.u32 %v2947_v58, 16 }
  0x56   : > { %v876_v13 = vsel %vm832_vm2, %v866_v39, %v875_v10  ;;  %v1468_v39 = vunpack.c.l.b16 %v1449_v37 }
  0x58   : > { %1072 = vmatpush.bf16.msra.mxu1 %v2424_v6  ;;  %1538 = vmatpush.bf16.msra.mxu0 %v2452_v7  ;;  %v1313_v6 = vrot.slane %v1311_v0, 3  ;;  %v547_v7 = vsel %vm538_vm1, %v544_v38, %v546_v1  ;;  %v1002_v38 = vunpack.c.l.b16 %v983_v35  ;;  %v1469_v42 = vpack.c.b16 %v1153_v47, %v1468_v39  ;;  %v1623_v39 = vld [vmem:[%s3130_s4 + $0x30] sm:$0xff] }
  0x59   : > { %1236 = vmatpush.bf16.msra.mxu2 %v2436_v5  ;;  %v1310_v5 = vrot.slane %v1308_v63, 2  ;;  %v1008_v63 = vrot.slane %v2695_v8, 2 }
  0x5a   : > { %v1471_v49 = vrot.slane %v1469_v42, 3 }
  0x5b   : > { %496 = vmatmul.bf16.gmra.mxu1 %v2592_v15  ;;  %952 = vmatmul.bf16.gmra.mxu0 %v858_v21  ;;  %v2433_v15 = vld [vmem:[%s3127_s1 + $0x188] sm:$0xff] }
  0x5c   : > { %1073 = vmatpush.bf16.msra.mxu1 %v2423_v17  ;;  %1539 = vmatpush.bf16.msra.mxu0 %v2451_v25  ;;  %v1306_v17 = vor.u32 %v1305_v4, %v1302_v3  ;;  %v2893_v25 = vld [vmem:[%s2570_s12 + $0x18] sm:$0xff]  ;;  %v1277_v3 = vld [vmem:[%s2570_s12 + $0x30] sm:$0x7] }
  0x5d   : > { %1237 = vmatpush.bf16.msra.mxu2 %v2435_v14  ;;  %v2886_v14 = vpack.c.b16 %v830_v2, %v830_v2  ;;  %v1317_v28 = vshrl.u32 %v2893_v25, 16  ;;  %v1320_v29 = vshll.u32 %v2893_v25, 16  ;;  %v1172_v62 = vrot.slane %v2893_v25, 2 }
  0x5e   : > { %616 = vmatmul.bf16.gmra.mxu2 %v543_v19  ;;  %790 = vmatmul.bf16.gmra.mxu3 %v711_v30  ;;  %v1314_v19 = vor.u32 %v1313_v6, %v1310_v5  ;;  %v1474_v0 = vrot.slane %v2893_v25, 3 }
  0x5f   : > { %v878_v21 = vshrl.u32 %v2886_v14, 16  ;;  %v1173_v2 = vsel %vm1004_vm4, %v1170_v46, %v1172_v62  ;;  %v1123_v46 = vld [vmem:[%s2570_s12 + $0x30] sm:$0x3] }
  0x60   : > { %1074 = vmatpush.bf16.msra.mxu1 %v2422_v27  ;;  %1540 = vmatpush.bf16.msra.mxu0 %v2450_v31  ;;  %v1322_v31 = vrot.slane %v1320_v29, 3 }
  0x61   : > { %1238 = vmatpush.bf16.msra.mxu2 %v2434_v24  ;;  %v1315_v24 = vsel %vm1298_vm3, %v1306_v17, %v1314_v19  ;;  %v880_v26 = vrot.slane %v878_v21, 1 }
  0x64   : > { %1075 = vmatpush.bf16.msra.mxu1 %v2421_v48  ;;  %1541 = vmatpush.bf16.msra.mxu0 %v2449_v52  ;;  %v1006_v48 = vrot.slane %v2634_v43, 2 }
  0x65   : > { %1239 = vmatpush.bf16.msra.mxu2 %v2433_v15  ;;  %v1319_v15 = vrot.slane %v1317_v28, 2  ;;  %v1010_v28 = vrot.slane %v2761_v53, 2 }
  0x66   : > { %v1009_v6 = vsel %vm1004_vm4, %v1006_v48, %v1008_v63 }
  0x67   : > { %v1323_v36 = vor.u32 %v1322_v31, %v1319_v15 }
  0x68   : > { %1076 = vmatpush.bf16.msra.mxu1 %v2420_v55  ;;  %1542 = vmatpush.bf16.msra.mxu0 %v2448_v9 }
  0x69   : > { %1240 = vmatpush.bf16.msra.mxu2 %v2432_v51  ;;  %v1324_v40 = vsel %vm1298_vm3, %v1314_v19, %v1323_v36  ;;  %v1620_v19 = vld [vmem:[%s3130_s4 + $0x18] sm:$0xff] }
  0x6b   : > { %501 = vmatmul.bf16.gmra.mxu1 %v2583_v11  ;;  %957 = vmatmul.bf16.gmra.mxu0 %v867_v44  ;;  %v713_v11 = vsel %vm538_vm1, %v710_v22, %v712_v45  ;;  %v881_v22 = vshll.u32 %v2886_v14, 16 }
  0x6d   : > { %v883_v27 = vrot.slane %v881_v22, 2 }
  0x6e   : > { %621 = vmatmul.bf16.gmra.mxu2 %v545_v41  ;;  %795 = vmatmul.bf16.gmra.mxu3 %v713_v11  ;;  %v1003_v41 = vpack.c.b16 %v687_v33, %v1002_v38  ;;  %v2502_v33 = vmov 0   ;;  %v1473_v11 = vsel %vm1470_vm5, %v1471_v49, %v1472_v50 }
  0x6f   : > { %v884_v30 = vor.u32 %v883_v27, %v880_v26  ;;  %2489 = vset.pattern.permute.xlu0 %v2502_v33  ;;  %1687 = vst [vmem:[%s2918_s21] sm:$0xf] %v2502_v33  ;;  %2490 = vset.pattern.permute.xlu1 %v2502_v33 }
  0x70   : > { %1699 = vst [vmem:[%s2918_s21 + $0x30] sm:$0xf] %v2502_v33  ;;  %2491 = vset.pattern.permute.xlu2 %v2502_v33  ;;  %v1005_v47 = vrot.slane %v1003_v41, 2  ;;  %1639 = vperm.xlu1 %2490, %v1619_v61   ;;  %v1176_v41 = vrot.slane %v2947_v58, 2 }
  0x71   : > { %v885_v34 = vsel %vm832_vm2, %v875_v10, %v884_v30  ;;  %1700 = vst [vmem:[%s2918_s21 + $0x34] sm:$0x7] %v2502_v33  ;;  %v1340_v10 = vrot.slane %v1338_v60, 3 }
  0x72   : > { %1688 = vst [vmem:[%s2918_s21 + $0x4] sm:$0xf] %v2502_v33  ;;  %v1007_v43 = vsel %vm1004_vm4, %v1005_v47, %v1006_v48 }
  0x73   : > { %1689 = vst [vmem:[%s2918_s21 + $0x8] sm:$0xf] %v2502_v33 }
  0x74   : > { %1690 = vst [vmem:[%s2918_s21 + $0xc] sm:$0xf] %v2502_v33 }
  0x75   : > { %1691 = vst [vmem:[%s2918_s21 + $0x10] sm:$0xf] %v2502_v33 }
  0x76   : > { %1692 = vst [vmem:[%s2918_s21 + $0x14] sm:$0xf] %v2502_v33 }
  0x77   : > { %1693 = vst [vmem:[%s2918_s21 + $0x18] sm:$0xf] %v2502_v33 }
  0x78   : > { %1694 = vst [vmem:[%s2918_s21 + $0x1c] sm:$0xf] %v2502_v33  ;;  %1644 = vperm.xlu1 %2490, %v1620_v19  }
  0x79   : > { %1695 = vst [vmem:[%s2918_s21 + $0x20] sm:$0xf] %v2502_v33 }
  0x7a   : > { %1696 = vst [vmem:[%s2918_s21 + $0x24] sm:$0xf] %v2502_v33 }
  0x7b   : > { %506 = vmatmul.bf16.gmra.mxu1 %v2599_v18  ;;  %962 = vmatmul.bf16.gmra.mxu0 %v876_v13  ;;  %v548_v18 = vrot.slane %v2602_v20, 1  ;;  %v2905_v20 = vld [vmem:[%s2570_s12 + $0x20] sm:$0xff]  ;;  %1697 = vst [vmem:[%s2918_s21 + $0x28] sm:$0xf] %v2502_v33  ;;  %v1296_v13 = vunpack.c.l.b16 %v1277_v3  ;;  %v1622_v3 = vld [vmem:[%s3130_s4 + $0x28] sm:$0xff] }
  0x7c   : > { %v1326_v44 = vshrl.u32 %v2905_v20, 16  ;;  %v1329_v45 = vshll.u32 %v2905_v20, 16  ;;  %1698 = vst [vmem:[%s2918_s21 + $0x2c] sm:$0xf] %v2502_v33  ;;  %v1174_v26 = vrot.slane %v2905_v20, 2  ;;  %v1476_v29 = vrot.slane %v2905_v20, 3 }
  0x7d   : > { %v549_v32 = vsel %vm538_vm1, %v546_v1, %v548_v18  ;;  %v1337_v1 = vrot.slane %v1335_v59, 2  ;;  %v2966_v17 = vpack.c.b16 %v1296_v13, %v1296_v13  ;;  %v1626_v33 = vld [vmem:[%s3130_s4 + $0x48] sm:$0xff] }
  0x7e   : > { %626 = vmatmul.bf16.gmra.mxu2 %v547_v7  ;;  %1413 = vmatmul.bf16.vlgmr.msrb.gmra.mxu3 %v1315_v24  ;;  %v1328_v51 = vrot.slane %v1326_v44, 2  ;;  %v1331_v52 = vrot.slane %v1329_v45, 3  ;;  %v1475_v7 = vsel %vm1470_vm5, %v1472_v50, %v1474_v0  ;;  %v1175_v15 = vsel %vm1004_vm4, %v1172_v62, %v1174_v26 }
  0x7f   : > { %v1341_v9 = vor.u32 %v1340_v10, %v1337_v1  ;;  %v1344_v24 = vshrl.u32 %v2966_v17, 16  ;;  %v1347_v25 = vshll.u32 %v2966_v17, 16  ;;  %v1477_v35 = vsel %vm1470_vm5, %v1474_v0, %v1476_v29 }
  0x80   : > { %v1332_v55 = vor.u32 %v1331_v52, %v1328_v51  ;;  %v1012_v45 = vrot.slane %v2810_v16, 2  ;;  %v1177_v23 = vsel %vm1004_vm4, %v1174_v26, %v1176_v41  ;;  %v1162_v52 = vunpack.c.l.b16 %v1123_v46 }
  0x81   : > { %v1346_v18 = vrot.slane %v1344_v24, 2  ;;  %v1349_v30 = vrot.slane %v1347_v25, 3  ;;  %v1014_v1 = vrot.slane %v2886_v14, 2  ;;  %v1480_v10 = vrot.slane %v2966_v17, 3 }
  0x82   : > { %v1333_v57 = vsel %vm1298_vm3, %v1323_v36, %v1332_v55  ;;  %v1342_v8 = vsel %vm1298_vm3, %v1332_v55, %v1341_v9  ;;  %v1013_v49 = vsel %vm1004_vm4, %v1010_v28, %v1012_v45  ;;  %v1624_v55 = vld [vmem:[%s3130_s4 + $0x38] sm:$0xff] }
  0x83   : > { %v1350_v36 = vor.u32 %v1349_v30, %v1346_v18  ;;  %1664 = vperm.xlu1 %2490, %v1624_v55   ;;  %v1015_v13 = vsel %vm1004_vm4, %v1012_v45, %v1014_v1 }
  0x85   : > { %v1351_v53 = vsel %vm1298_vm3, %v1341_v9, %v1350_v36 }
  0x8b   : > { %511 = vmatmul.bf16.gmra.mxu1 %v2586_v12  ;;  %967 = vmatmul.bf16.gmra.mxu0 %v885_v34  ;;  %v1617_v12 = vld [vmem:[%s3130_s4] sm:$0xff]  ;;  %v1011_v34 = vsel %vm1004_vm4, %v1008_v63, %v1010_v28 }
  0x8c   : > { %1629 = vperm.xlu0 %2489, %v1617_v12   ;;  %v1478_v12 = vrot.slane %v2947_v58, 3 }
  0x8e   : > { %631 = vmatmul.bf16.gmra.mxu2 %v549_v32  ;;  %1418 = vmatmul.bf16.gmra.mxu3 %v1324_v40  ;;  %v1479_v50 = vsel %vm1470_vm5, %v1476_v29, %v1478_v12 }
  0x94   : > { %1634 = vperm.xlu0 %2489, %v1618_v56   ;;  %v1168_v56 = vpack.c.b16 %v1162_v52, %v1162_v52 }
  0x96   : > { %v1178_v62 = vrot.slane %v1168_v56, 2 }
  0x9b   : > { %1077 = vmatmul.bf16.vlgmr.msra.gmra.mxu1 %v1007_v43  ;;  %1543 = vmatmul.bf16.vlgmr.msra.gmra.mxu0 %v1473_v11  ;;  %v1621_v11 = vld [vmem:[%s3130_s4 + $0x20] sm:$0xff] }
  0x9c   : > { %1659 = vperm.xlu0 %2489, %v1623_v39   ;;  %1649 = vperm.xlu2 %2491, %v1621_v11  }
  0x9e   : > { %1241 = vmatmul.bf16.vlgmr.msra.gmra.mxu2 %v1171_v54  ;;  %1423 = vmatmul.bf16.gmra.mxu3 %v1333_v57 }
  0xa4   : > { %1674 = vperm.xlu0 %2489, %v1626_v33   ;;  %1654 = vperm.xlu2 %2491, %v1622_v3  }
  0xa8   : > { %v405_v4 = vpop.f32.mrf.mxu0  ;;  %v2961_v5 = vpop.f32.mrf.mxu1 }
  0xab   : > { %1082 = vmatmul.bf16.gmra.mxu1 %v1009_v6  ;;  %1548 = vmatmul.bf16.gmra.mxu0 %v1475_v7 }
  0xae   : > { %1246 = vmatmul.bf16.gmra.mxu2 %v1173_v2  ;;  %1428 = vmatmul.bf16.gmra.mxu3 %v1342_v8  ;;  %v1481_v8 = vsel %vm1470_vm5, %v1478_v12, %v1480_v10 }
  0xb0   : > { %v407_v21 = vpop.f32.mrf.mxu0  ;;  %v2971_v22 = vpop.f32.mrf.mxu1 }
  0xb1   : > { %v776_v27 = vpop.f32.mrf.mxu3  ;;  %v2983_v37 = vpop.f32.mrf.mxu2 }
  0xb8   : > { %v410_v31 = vpop.f32.mrf.mxu0  ;;  %v2979_v32 = vpop.f32.mrf.mxu1 }
  0xb9   : > { %v778_v38 = vpop.f32.mrf.mxu3  ;;  %v2992_v44 = vpop.f32.mrf.mxu2 }
  0xbb   : > { %1087 = vmatmul.bf16.gmra.mxu1 %v1011_v34  ;;  %1553 = vmatmul.bf16.gmra.mxu0 %v1477_v35 }
  0xbe   : > { %1251 = vmatmul.bf16.gmra.mxu2 %v1175_v15  ;;  %1433 = vmatmul.bf16.gmra.mxu3 %v1351_v53 }
  0xc0   : > { %v412_v40 = vpop.f32.mrf.mxu0  ;;  %v2989_v20 = vpop.f32.mrf.mxu1 }
  0xc1   : > { %v781_v42 = vpop.f32.mrf.mxu3 }
  0xc8   : > { %v492_v47 = vpop.f32.mrf.mxu1  ;;  %v948_v48 = vpop.f32.mrf.mxu0 }
  0xc9   : > { %v493_v51 = vadd.f32 %v492_v47, %v405_v4  ;;  %v783_v16 = vpop.f32.mrf.mxu3  ;;  %v1179_v4 = vsel %vm1004_vm4, %v1176_v41, %v1178_v62 }
  0xcb   : > { %1092 = vmatmul.bf16.gmra.mxu1 %v1013_v49  ;;  %1558 = vmatmul.bf16.gmra.mxu0 %v1479_v50 }
  0xce   : > { %1256 = vmatmul.bf16.gmra.mxu2 %v1177_v23 }
  0xd0   : > { %v494_v58 = vpop.f32.mrf.mxu1  ;;  %v950_v59 = vpop.f32.mrf.mxu0 }
  0xd1   : > { %v612_v54 = vpop.f32.mrf.mxu2  ;;  %v495_v60 = vadd.f32 %v494_v58, %v407_v21  ;;  %v786_v63 = vpop.f32.mrf.mxu3 }
  0xd2   : > { %v637_v43 = vadd.f32 %v612_v54, %v493_v51 }
  0xd4   : > { %v801_v57 = vadd.f32 %v776_v27, %v637_v43 }
  0xd6   : > { %v3009_v61 = vadd.f32 %v948_v48, %v801_v57 }
  0xd8   : > { %v497_v7 = vpop.f32.mrf.mxu1  ;;  %v953_v9 = vpop.f32.mrf.mxu0 }
  0xd9   : > { %v614_v0 = vpop.f32.mrf.mxu2  ;;  %v498_v19 = vadd.f32 %v497_v7, %v410_v31  ;;  %v788_v17 = vpop.f32.mrf.mxu3  ;;  %v1625_v31 = vld [vmem:[%s3130_s4 + $0x40] sm:$0xff] }
  0xda   : > { %v638_v2 = vadd.f32 %v614_v0, %v495_v60  ;;  %1669 = vperm.xlu2 %2491, %v1625_v31  }
  0xdb   : > { %1097 = vmatmul.bf16.gmra.mxu1 %v1015_v13  ;;  %1563 = vmatmul.bf16.gmra.mxu0 %v1481_v8 }
  0xdc   : > { %v802_v6 = vadd.f32 %v778_v38, %v638_v2 }
  0xde   : > { %1261 = vmatmul.bf16.gmra.mxu2 %v1179_v4  ;;  %v3019_v14 = vadd.f32 %v950_v59, %v802_v6 }
  0xe0   : > { %v499_v26 = vpop.f32.mrf.mxu1  ;;  %v955_v27 = vpop.f32.mrf.mxu0 }
  0xe1   : > { %v617_v21 = vpop.f32.mrf.mxu2  ;;  %v500_v28 = vadd.f32 %v499_v26, %v412_v40  ;;  %v791_v18 = vpop.f32.mrf.mxu3 }
  0xe2   : > { %v639_v24 = vadd.f32 %v617_v21, %v498_v19 }
  0xe4   : > { %v803_v25 = vadd.f32 %v781_v42, %v639_v24 }
  0xe6   : > { %v3021_v29 = vadd.f32 %v953_v9, %v803_v25 }
  0xe8   : > { %v502_v35 = vpop.f32.mrf.mxu1  ;;  %v958_v36 = vpop.f32.mrf.mxu0 }
  0xe9   : > { %v619_v30 = vpop.f32.mrf.mxu2  ;;  %v503_v38 = vadd.f32 %v502_v35, %v2961_v5  ;;  %v793_v40 = vpop.f32.mrf.mxu3 }
  0xea   : > { %v640_v15 = vadd.f32 %v619_v30, %v500_v28 }
  0xec   : > { %v804_v34 = vadd.f32 %v783_v16, %v640_v15 }
  0xee   : > { %v3027_v53 = vadd.f32 %v955_v27, %v804_v34 }
  0xf0   : > { %v504_v45 = vpop.f32.mrf.mxu1  ;;  %v960_v12 = vpop.f32.mrf.mxu0 }
  0xf1   : > { %v622_v39 = vpop.f32.mrf.mxu2  ;;  %v505_v33 = vadd.f32 %v504_v45, %v2971_v22  ;;  %v796_v49 = vpop.f32.mrf.mxu3 }
  0xf2   : > { %v641_v41 = vadd.f32 %v622_v39, %v503_v38 }
  0xf4   : > { %v805_v42 = vadd.f32 %v786_v63, %v641_v41 }
  0xf6   : > { %v3030_v23 = vadd.f32 %v958_v36, %v805_v42 }
  0xf8   : > { %v507_v50 = vpop.f32.mrf.mxu1  ;;  %v963_v51 = vpop.f32.mrf.mxu0 }
  0xf9   : > { %v624_v46 = vpop.f32.mrf.mxu2  ;;  %v508_v5 = vadd.f32 %v507_v50, %v2979_v32  ;;  %v798_v22 = vpop.f32.mrf.mxu3 }
  0xfa   : > { %v642_v47 = vadd.f32 %v624_v46, %v505_v33 }
  0xfc   : > { %v806_v48 = vadd.f32 %v788_v17, %v642_v47 }
  0xfe   : > { %v3033_v52 = vadd.f32 %v960_v12, %v806_v48  ;;  %v1630_v36 = vpop.permute.xlu0 %1629 }
 0x100   : > { %v509_v11 = vpop.f32.mrf.mxu1  ;;  %v965_v55 = vpop.f32.mrf.mxu0 }
 0x101   : > { %v627_v16 = vpop.f32.mrf.mxu2  ;;  %v510_v56 = vadd.f32 %v509_v11, %v2989_v20  ;;  %v1414_v1 = vpop.f32.mrf.mxu3 }
 0x102   : > { %v643_v54 = vadd.f32 %v627_v16, %v508_v5 }
 0x104   : > { %v807_v43 = vadd.f32 %v791_v18, %v643_v54 }
 0x106   : > { %v3036_v57 = vadd.f32 %v963_v51, %v807_v43  ;;  %v1635_v54 = vpop.permute.xlu0 %1634 }
 0x108   : > { %v512_v62 = vpop.f32.mrf.mxu1  ;;  %v968_v63 = vpop.f32.mrf.mxu0 }
 0x109   : > { %v629_v58 = vpop.f32.mrf.mxu2  ;;  %v513_v0 = vadd.f32 %v512_v62, %v2983_v37  ;;  %v1416_v8 = vpop.f32.mrf.mxu3 }
 0x10a   : > { %v644_v59 = vadd.f32 %v629_v58, %v510_v56 }
 0x10c   : > { %v808_v60 = vadd.f32 %v793_v40, %v644_v59 }
 0x10e   : > { %v3039_v32 = vadd.f32 %v965_v55, %v808_v60 }
 0x110   : > { %v514_v4 = vpop.f32.mrf.mxu1  ;;  %v970_v6 = vpop.f32.mrf.mxu0 }
 0x111   : > { %v632_v10 = vpop.f32.mrf.mxu2  ;;  %v515_v20 = vadd.f32 %v514_v4, %v2992_v44  ;;  %v1419_v28 = vpop.f32.mrf.mxu3  ;;  %v3050_v44 = vld [vmem:[%s3128_s2] ss:$0 sm:$0xff] }
 0x112   : > { %v645_v2 = vadd.f32 %v632_v10, %v513_v0  ;;  %v1640_v10 = vpop.permute.xlu1 %1639 }
 0x114   : > { %v809_v3 = vadd.f32 %v796_v49, %v645_v2 }
 0x116   : > { %v3042_v7 = vadd.f32 %v968_v63, %v809_v3 }
 0x118   : > { %v1078_v17 = vpop.f32.mrf.mxu1  ;;  %v1544_v21 = vpop.f32.mrf.mxu0 }
 0x119   : > { %v634_v9 = vpop.f32.mrf.mxu2  ;;  %v1103_v37 = vadd.f32 %v1078_v17, %v3009_v61  ;;  %v3056_v61 = vld [vmem:[%s3129_s3] ss:$0 sm:$0xff]  ;;  %v1421_v46 = vpop.f32.mrf.mxu3 }
 0x11a   : > { %v646_v13 = vadd.f32 %v634_v9, %v515_v20 }
 0x11c   : > { %v810_v19 = vadd.f32 %v798_v22, %v646_v13 }
 0x11e   : > { %v3045_v24 = vadd.f32 %v970_v6, %v810_v19 }
 0x120   : > { %v1080_v18 = vpop.f32.mrf.mxu1  ;;  %v1546_v30 = vpop.f32.mrf.mxu0 }
 0x121   : > { %v1242_v25 = vpop.f32.mrf.mxu2  ;;  %v1104_v31 = vadd.f32 %v1080_v18, %v3019_v14  ;;  %v1424_v4 = vpop.f32.mrf.mxu3 }
 0x122   : > { %v1267_v26 = vadd.f32 %v1242_v25, %v1103_v37 }
 0x124   : > { %v1439_v27 = vadd.f32 %v1414_v1, %v1267_v26 }
 0x126   : > { %v1569_v15 = vadd.f32 %v1544_v21, %v1439_v27 }
 0x128   : > { %v1583_v34 = vmul.f32 %v3050_v44, %v1569_v15  ;;  %v1083_v42 = vpop.f32.mrf.mxu1  ;;  %v1549_v45 = vpop.f32.mrf.mxu0 }
 0x129   : > { %v1244_v35 = vpop.f32.mrf.mxu2  ;;  %v1105_v14 = vadd.f32 %v1083_v42, %v3021_v29  ;;  %v1827_v29 = vld [vmem:[%s2918_s21 + $0x4] sm:$0xe]  ;;  %v1645_v42 = vpop.permute.xlu1 %1644 }
 0x12a   : > { %v1268_v38 = vadd.f32 %v1244_v35, %v1104_v31  ;;  %v1597_v39 = vadd.f32 %v3056_v61, %v1583_v34 }
 0x12c   : > { %v1440_v41 = vadd.f32 %v1416_v8, %v1268_v38  ;;  %v1607_v40 = vmax.f32 %v1597_v39, 0.0 }
 0x12e   : > { %v1570_v12 = vadd.f32 %v1546_v30, %v1440_v41  ;;  %v1677_v33 = vmul.f32 %v1630_v36, %v1607_v40  ;;  %v1426_v40 = vpop.f32.mrf.mxu3 }
 0x130   : > { %v1701_v47 = vpack.c.bf16 %v1677_v33, %v1677_v33  ;;  %v1584_v48 = vmul.f32 %v3050_v44, %v1570_v12  ;;  %v1085_v22 = vpop.f32.mrf.mxu1  ;;  %v1551_v58 = vpop.f32.mrf.mxu0 }
 0x131   : > { %v1247_v49 = vpop.f32.mrf.mxu2  ;;  %v1106_v63 = vadd.f32 %v1085_v22, %v3027_v53 }
 0x132   : > { %v1715_v50 = vshrl.u32 %v1701_v47, 16  ;;  %v1718_v51 = vshll.u32 %v1701_v47, 16  ;;  %v1269_v5 = vadd.f32 %v1247_v49, %v1105_v14  ;;  %v1598_v16 = vadd.f32 %v3056_v61, %v1584_v48 }
 0x134   : > { %v1717_v43 = vrot.slane %v1715_v50, 6  ;;  %v1720_v11 = vrot.slane %v1718_v51, 7  ;;  %v1441_v55 = vadd.f32 %v1419_v28, %v1269_v5  ;;  %v1608_v56 = vmax.f32 %v1598_v16, 0.0 }
 0x136   : > { %v1721_v59 = vor.u32 %v1720_v11, %v1717_v43  ;;  %v1571_v60 = vadd.f32 %v1549_v45, %v1441_v55  ;;  %v1678_v62 = vmul.f32 %v1635_v54, %v1608_v56  ;;  %v1650_v11 = vpop.permute.xlu2 %1649 }
 0x138   : > { %v1828_v0 = vsel %vm1826_vm8, %v1721_v59, %v1827_v29  ;;  %v1702_v1 = vpack.c.bf16 %v1678_v62, %v1678_v62  ;;  %v1585_v2 = vmul.f32 %v3050_v44, %v1571_v60  ;;  %v1722_v21 = vrot.slane %v1721_v59, 4  ;;  %v1088_v25 = vpop.f32.mrf.mxu1  ;;  %v1554_v26 = vpop.f32.mrf.mxu0 }
 0x139   : > { %1829 = vst [vmem:[%s2918_s21 + $0x4] sm:$0xe] %v1828_v0  ;;  %v1249_v3 = vpop.f32.mrf.mxu2  ;;  %v1107_v30 = vadd.f32 %v1088_v25, %v3030_v23 }
 0x13a   : > { %v1724_v6 = vshrl.u32 %v1702_v1, 16  ;;  %v1727_v20 = vshll.u32 %v1702_v1, 16  ;;  %v1270_v9 = vadd.f32 %v1249_v3, %v1106_v63  ;;  %v1599_v13 = vadd.f32 %v3056_v61, %v1585_v2  ;;  %v1429_v63 = vpop.f32.mrf.mxu3 }
 0x13c   : > { %v1726_v8 = vrot.slane %v1724_v6, 6  ;;  %v1729_v19 = vrot.slane %v1727_v20, 7  ;;  %v1442_v17 = vadd.f32 %v1421_v46, %v1270_v9  ;;  %v1609_v53 = vmax.f32 %v1599_v13, 0.0 }
 0x13e   : > { %v1730_v27 = vor.u32 %v1729_v19, %v1726_v8  ;;  %v1572_v28 = vadd.f32 %v1551_v58, %v1442_v17  ;;  %v1679_v18 = vmul.f32 %v1640_v10, %v1609_v53 }
 0x140   : > { %v1731_v15 = vsel %vm3069_vm11, %v1722_v21, %v1730_v27  ;;  %v1703_v31 = vpack.c.bf16 %v1679_v18, %v1679_v18  ;;  %v1586_v34 = vmul.f32 %v3050_v44, %v1572_v28  ;;  %v1732_v14 = vrot.slane %v1730_v27, 4  ;;  %v1090_v46 = vpop.f32.mrf.mxu1  ;;  %v1556_v47 = vpop.f32.mrf.mxu0 }
 0x141   : > { %1830 = vst [vmem:[%s2918_s21 + $0x8] sm:$0xf] %v1731_v15  ;;  %v1252_v35 = vpop.f32.mrf.mxu2  ;;  %v1108_v51 = vadd.f32 %v1090_v46, %v3033_v52  ;;  %v1655_v21 = vpop.permute.xlu2 %1654 }
 0x142   : > { %v1734_v36 = vshrl.u32 %v1703_v31, 16  ;;  %v1737_v38 = vshll.u32 %v1703_v31, 16  ;;  %v1271_v39 = vadd.f32 %v1252_v35, %v1107_v30  ;;  %v1600_v41 = vadd.f32 %v3056_v61, %v1586_v34  ;;  %v1431_v35 = vpop.f32.mrf.mxu3 }
 0x144   : > { %v1736_v45 = vrot.slane %v1734_v36, 6  ;;  %v1739_v12 = vrot.slane %v1737_v38, 7  ;;  %v1443_v33 = vadd.f32 %v1424_v4, %v1271_v39  ;;  %v1610_v23 = vmax.f32 %v1600_v41, 0.0 }
 0x146   : > { %v1740_v48 = vor.u32 %v1739_v12, %v1736_v45  ;;  %v1573_v49 = vadd.f32 %v1554_v26, %v1443_v33  ;;  %v1680_v50 = vmul.f32 %v1645_v42, %v1610_v23 }
 0x148   : > { %v1741_v5 = vsel %vm3069_vm11, %v1732_v14, %v1740_v48  ;;  %v1704_v16 = vpack.c.bf16 %v1680_v50, %v1680_v50  ;;  %v1587_v54 = vmul.f32 %v3050_v44, %v1573_v49  ;;  %v1742_v52 = vrot.slane %v1740_v48, 4  ;;  %v1093_v0 = vpop.f32.mrf.mxu1  ;;  %v1559_v4 = vpop.f32.mrf.mxu0 }
 0x149   : > { %1831 = vst [vmem:[%s2918_s21 + $0xc] sm:$0xf] %v1741_v5  ;;  %v1254_v43 = vpop.f32.mrf.mxu2  ;;  %v1109_v3 = vadd.f32 %v1093_v0, %v3036_v57  ;;  %v1660_v48 = vpop.permute.xlu0 %1659 }
 0x14a   : > { %v1744_v55 = vshrl.u32 %v1704_v16, 16  ;;  %v1747_v56 = vshll.u32 %v1704_v16, 16  ;;  %v1272_v29 = vadd.f32 %v1254_v43, %v1108_v51  ;;  %v1601_v22 = vadd.f32 %v3056_v61, %v1587_v54 }
 0x14c   : > { %v1746_v58 = vrot.slane %v1744_v55, 6  ;;  %v1749_v59 = vrot.slane %v1747_v56, 7  ;;  %v1444_v60 = vadd.f32 %v1426_v40, %v1272_v29  ;;  %v1611_v62 = vmax.f32 %v1601_v22, 0.0  ;;  %v1434_v55 = vpop.f32.mrf.mxu3 }
 0x14e   : > { %v1750_v1 = vor.u32 %v1749_v59, %v1746_v58  ;;  %v1574_v10 = vadd.f32 %v1556_v47, %v1444_v60  ;;  %v1681_v2 = vmul.f32 %v1650_v11, %v1611_v62  ;;  %v1665_v62 = vpop.permute.xlu1 %1664 }
 0x150   : > { %v1751_v6 = vsel %vm3069_vm11, %v1742_v52, %v1750_v1  ;;  %v1705_v20 = vpack.c.bf16 %v1681_v2, %v1681_v2  ;;  %v1588_v9 = vmul.f32 %v3050_v44, %v1574_v10  ;;  %v1752_v28 = vrot.slane %v1750_v1, 4  ;;  %v1095_v18 = vpop.f32.mrf.mxu1  ;;  %v1561_v41 = vpop.f32.mrf.mxu0 }
 0x151   : > { %1832 = vst [vmem:[%s2918_s21 + $0x10] sm:$0xf] %v1751_v6  ;;  %v1257_v13 = vpop.f32.mrf.mxu2  ;;  %v1110_v34 = vadd.f32 %v1095_v18, %v3039_v32 }
 0x152   : > { %v1754_v8 = vshrl.u32 %v1705_v20, 16  ;;  %v1757_v19 = vshll.u32 %v1705_v20, 16  ;;  %v1273_v17 = vadd.f32 %v1257_v13, %v1109_v3  ;;  %v1602_v53 = vadd.f32 %v3056_v61, %v1588_v9 }
 0x154   : > { %v1756_v25 = vrot.slane %v1754_v8, 6  ;;  %v1759_v26 = vrot.slane %v1757_v19, 7  ;;  %v1445_v27 = vadd.f32 %v1429_v63, %v1273_v17  ;;  %v1612_v57 = vmax.f32 %v1602_v53, 0.0 }
 0x156   : > { %v1760_v30 = vor.u32 %v1759_v26, %v1756_v25  ;;  %v1575_v15 = vadd.f32 %v1559_v4, %v1445_v27  ;;  %v1682_v31 = vmul.f32 %v1655_v21, %v1612_v57  ;;  %v1436_v25 = vpop.f32.mrf.mxu3 }
 0x158   : > { %v1761_v36 = vsel %vm3069_vm11, %v1752_v28, %v1760_v30  ;;  %v1706_v38 = vpack.c.bf16 %v1682_v31, %v1682_v31  ;;  %v1589_v39 = vmul.f32 %v3050_v44, %v1575_v15  ;;  %v1762_v47 = vrot.slane %v1760_v30, 4  ;;  %v1098_v49 = vpop.f32.mrf.mxu1  ;;  %v1564_v60 = vpop.f32.mrf.mxu0 }
 0x159   : > { %1833 = vst [vmem:[%s2918_s21 + $0x14] sm:$0xf] %v1761_v36  ;;  %v1259_v40 = vpop.f32.mrf.mxu2  ;;  %v1111_v16 = vadd.f32 %v1098_v49, %v3042_v7 }
 0x15a   : > { %v1764_v42 = vshrl.u32 %v1706_v38, 16  ;;  %v1767_v45 = vshll.u32 %v1706_v38, 16  ;;  %v1603_v12 = vadd.f32 %v3056_v61, %v1589_v39  ;;  %v1274_v33 = vadd.f32 %v1259_v40, %v1110_v34 }
 0x15c   : > { %v1766_v23 = vrot.slane %v1764_v42, 6  ;;  %v1769_v14 = vrot.slane %v1767_v45, 7  ;;  %v1613_v46 = vmax.f32 %v1603_v12, 0.0  ;;  %v1446_v32 = vadd.f32 %v1431_v35, %v1274_v33  ;;  %v1675_v33 = vpop.permute.xlu0 %1674 }
 0x15e   : > { %v1770_v50 = vor.u32 %v1769_v14, %v1766_v23  ;;  %v1683_v51 = vmul.f32 %v1660_v48, %v1613_v46  ;;  %v1576_v5 = vadd.f32 %v1561_v41, %v1446_v32 }
 0x160   : > { %v1771_v54 = vsel %vm3069_vm11, %v1762_v47, %v1770_v50  ;;  %v1707_v43 = vpack.c.bf16 %v1683_v51, %v1683_v51  ;;  %v1590_v11 = vmul.f32 %v3050_v44, %v1576_v5  ;;  %v1772_v1 = vrot.slane %v1770_v50, 4  ;;  %v1100_v10 = vpop.f32.mrf.mxu1  ;;  %v1566_v18 = vpop.f32.mrf.mxu0  ;;  %v1841_v5 = vld [vmem:[%s2918_s21 + $0x2c] sm:$0x3] }
 0x161   : > { %1834 = vst [vmem:[%s2918_s21 + $0x18] sm:$0xf] %v1771_v54  ;;  %v1262_v56 = vpop.f32.mrf.mxu2  ;;  %v1112_v6 = vadd.f32 %v1100_v10, %v3045_v24  ;;  %v1670_v24 = vpop.permute.xlu2 %1669 }
 0x162   : > { %v1774_v29 = vshrl.u32 %v1707_v43, 16  ;;  %v1777_v22 = vshll.u32 %v1707_v43, 16  ;;  %v1275_v58 = vadd.f32 %v1262_v56, %v1111_v16  ;;  %v1604_v59 = vadd.f32 %v3056_v61, %v1590_v11 }
 0x164   : > { %v1776_v52 = vrot.slane %v1774_v29, 6  ;;  %v1779_v63 = vrot.slane %v1777_v22, 7  ;;  %v1447_v7 = vadd.f32 %v1434_v55, %v1275_v58  ;;  %v1614_v0 = vmax.f32 %v1604_v59, 0.0 }
 0x166   : > { %v1780_v2 = vor.u32 %v1779_v63, %v1776_v52  ;;  %v1577_v3 = vadd.f32 %v1564_v60, %v1447_v7  ;;  %v1684_v4 = vmul.f32 %v1665_v62, %v1614_v0 }
 0x168   : > { %v1781_v20 = vsel %vm3069_vm11, %v1772_v1, %v1780_v2  ;;  %v1591_v9 = vmul.f32 %v3050_v44, %v1577_v3  ;;  %v1708_v13 = vpack.c.bf16 %v1684_v4, %v1684_v4  ;;  %v1782_v30 = vrot.slane %v1780_v2, 4 }
 0x169   : > { %1835 = vst [vmem:[%s2918_s21 + $0x1c] sm:$0xf] %v1781_v20  ;;  %v1264_v8 = vpop.f32.mrf.mxu2 }
 0x16a   : > { %v1605_v19 = vadd.f32 %v3056_v61, %v1591_v9  ;;  %v1784_v17 = vshrl.u32 %v1708_v13, 16  ;;  %v1787_v53 = vshll.u32 %v1708_v13, 16  ;;  %v1276_v21 = vadd.f32 %v1264_v8, %v1112_v6 }
 0x16c   : > { %v1615_v26 = vmax.f32 %v1605_v19, 0.0  ;;  %v1786_v27 = vrot.slane %v1784_v17, 6  ;;  %v1789_v57 = vrot.slane %v1787_v53, 7  ;;  %v1448_v28 = vadd.f32 %v1436_v25, %v1276_v21 }
 0x16e   : > { %v1685_v15 = vmul.f32 %v1670_v24, %v1615_v26  ;;  %v1790_v31 = vor.u32 %v1789_v57, %v1786_v27  ;;  %v1578_v34 = vadd.f32 %v1566_v18, %v1448_v28 }
 0x170   : > { %v1709_v35 = vpack.c.bf16 %v1685_v15, %v1685_v15  ;;  %v1791_v36 = vsel %vm3069_vm11, %v1782_v30, %v1790_v31  ;;  %v1592_v38 = vmul.f32 %v3050_v44, %v1578_v34  ;;  %v1792_v14 = vrot.slane %v1790_v31, 4 }
 0x171   : > { %1836 = vst [vmem:[%s2918_s21 + $0x20] sm:$0xf] %v1791_v36 }
 0x172   : > { %v1794_v39 = vshrl.u32 %v1709_v35, 16  ;;  %v1797_v41 = vshll.u32 %v1709_v35, 16  ;;  %v1606_v40 = vadd.f32 %v3056_v61, %v1592_v38 }
 0x174   : > { %v1796_v42 = vrot.slane %v1794_v39, 6  ;;  %v1799_v45 = vrot.slane %v1797_v41, 7  ;;  %v1616_v12 = vmax.f32 %v1606_v40, 0.0 }
 0x176   : > { %v1800_v23 = vor.u32 %v1799_v45, %v1796_v42  ;;  %v1686_v46 = vmul.f32 %v1675_v33, %v1616_v12 }
 0x178   : > { %v1801_v32 = vsel %vm3069_vm11, %v1792_v14, %v1800_v23  ;;  %v1710_v47 = vpack.c.bf16 %v1686_v46, %v1686_v46  ;;  %v1802_v61 = vrot.slane %v1800_v23, 4 }
 0x179   : > { %1837 = vst [vmem:[%s2918_s21 + $0x24] sm:$0xf] %v1801_v32 }
 0x17a   : > { %v1804_v44 = vshrl.u32 %v1710_v47, 16  ;;  %v1807_v48 = vshll.u32 %v1710_v47, 16 }
 0x17c   : > { %v1806_v49 = vrot.slane %v1804_v44, 6  ;;  %v1809_v50 = vrot.slane %v1807_v48, 7 }
 0x17e   : > { %v1810_v51 = vor.u32 %v1809_v50, %v1806_v49 }
 0x180   : > { %v1811_v16 = vsel %vm3069_vm11, %v1802_v61, %v1810_v51  ;;  %v1812_v54 = vrot.slane %v1810_v51, 4 }
 0x181   : > { %1838 = vst [vmem:[%s2918_s21 + $0x28] sm:$0xf] %v1811_v16 }
 0x182   : > { %v1842_v43 = vsel %vm1840_vm13, %v1812_v54, %v1841_v5 }
 0x183   : > { %1843 = vst [vmem:[%s2918_s21 + $0x2c] sm:$0x3] %v1842_v43 }
 0x184 PF: > { %s15_s18 = sadd.s32 1, %s2500_s18  }
 0x185   : > { %p12_p4 = scmp.ge.s32.totalorder %s15_s18, 4  }
 0x187   :  { %14 = sbr.rel (!%p12_p4) target bundleno = 1 (0x1), region = 78 }

// kernel: resnet_layer_pallas.4
= control target key start
LH: loop header
LB: loop body
LE: loop exit
PB: predicated region body
PF: predicated region fallthrough
CT: control target
= control target key end

     0   :  { %s3305_s13 = smov 0   ;;  %s3887_s0 = inlined_call_operand.vmem [shape: bf16[2,100,128], index: 0, kind: input, shape index: {}]   ;;  %s3888_s1 = inlined_call_operand.vmem [shape: bf16[2,100,128], index: 1, kind: input, shape index: {}]   ;;  %s3889_s2 = inlined_call_operand.vmem [shape: bf16[2,100,128], index: 2, kind: input, shape index: {}]   ;;  %s3890_s3 = inlined_call_operand.vmem [shape: bf16[2,100,128], index: 3, kind: input, shape index: {}]   ;;  %s3891_s4 = inlined_call_operand.vmem [shape: bf16[9,128,128], index: 4, kind: input, shape index: {}]   ;;  %s3892_s5 = inlined_call_operand.vmem [shape: f32[1,128], index: 5, kind: input, shape index: {}]   ;;  %s3893_s6 = inlined_call_operand.vmem [shape: f32[1,128], index: 6, kind: input, shape index: {}]   ;;  %s3894_s7 = inlined_call_operand.vmem [shape: f32[80,1], index: 7, kind: input, shape index: {}]   ;;  %s3895_s8 = inlined_call_operand.vmem [shape: bf16[128,128], index: 8, kind: input, shape index: {}]   ;;  %s3896_s9 = inlined_call_operand.vmem [shape: bf16[2,110,128], index: 9, kind: output, shape index: {0}]   ;;  %s3897_s10 = inlined_call_operand.vmem [shape: f32[2,110,128], index: 10, kind: output, shape index: {1}]  }
   0x1 LB: > { %s2442_s14 = sadd.s32 4294967295, %s3247_s13   ;;  %p2446_p0 = scmp.ge.s32.totalorder %s3247_s13, 1  ;;  %s3247_s13 = sphi %s3305_s13, %s21_s13  }
   0x2   : > { %p345_p1 = scmp.lt.s32.totalorder %s3247_s13, 3 }
   0x4   : > { %p346_p2 = pnand %p2446_p0, %p345_p1 }
   0x5   : > { %p403_p3 = scmp.lt.s32.totalorder (!%p346_p2), %s2442_s14, 1 }
   0x6   : > { %349 = sbr.rel (%p346_p2) target bundleno = 401 (0x191), region = 56 }
   0xb   : > { %v3108_v0 = vld [vmem:[%s3891_s4 + $0x78] sm:$0xff]  ;;  %v3107_v2 = vld [vmem:[%s3891_s4 + $0x70] sm:$0xff]  ;;  %v3106_v4 = vld [vmem:[%s3891_s4 + $0x68] sm:$0xff]  ;;  %s3901_s14 = smov (!%p403_p3, %s2442_s14), 1  ;;  %vm767_vm0 = vsmask.f32 7424 }
   0xc   : > { %v3095_v1 = vld [vmem:[%s3891_s4 + $0x38] sm:$0xff]  ;;  %3208 = vmatpush.bf16.msra.mxu2 %v3108_v0  ;;  %v3094_v3 = vld [vmem:[%s3891_s4 + $0x30] sm:$0xff]  ;;  %565 = vmatpush.bf16.msra.mxu0 %v3108_v0  ;;  %v3093_v5 = vld [vmem:[%s3891_s4 + $0x28] sm:$0xff]  ;;  %s3362_s25 = smul.u32 52, %s3901_s14  ;;  %vm1754_vm1 = vsmask.f32 6400 }
   0xd   : > { %3216 = vmatpush.bf16.msra.mxu3 %v3095_v1  ;;  %677 = vmatpush.bf16.msra.mxu1 %v3095_v1  ;;  %v3105_v6 = vld [vmem:[%s3891_s4 + $0x60] sm:$0xff]  ;;  %v3104_v8 = vld [vmem:[%s3891_s4 + $0x58] sm:$0xff]  ;;  %v3103_v10 = vld [vmem:[%s3891_s4 + $0x50] sm:$0xff]  ;;  %s3225_s20 = smul.u32 56, %s3901_s14  ;;  %vm1460_vm2 = vcmask 1046528   ;;  %vm2150_vm3 = vcmask 1043457  }
   0xe   : > { %v3092_v7 = vld [vmem:[%s3891_s4 + $0x20] sm:$0xff]  ;;  %v3091_v9 = vld [vmem:[%s3891_s4 + $0x18] sm:$0xff]  ;;  %v3090_v11 = vld [vmem:[%s3891_s4 + $0x10] sm:$0xff]  ;;  %s3374_s12 = scalar_lea.vmem %s3887_s0, %s3362_s25  ;;  %s3380_s17 = scalar_lea.vmem %s3888_s1, %s3362_s25  ;;  %vm2151_vm4 = vsmask.f32 7942  ;;  %vm2165_vm9 = vcmask 1041408  }
   0xf   : > { %v3102_v12 = vld [vmem:[%s3891_s4 + $0x48] sm:$0xff]  ;;  %v3101_v14 = vld [vmem:[%s3891_s4 + $0x40] sm:$0xff]  ;;  %v3121_v16 = vld [vmem:[%s3891_s4 + $0xb8] sm:$0xff]  ;;  %s3463_s21 = scalar_lea.vmem %s3889_s2, %s3362_s25  ;;  %s3518_s24 = scalar_lea.vmem %s3890_s3, %s3362_s25  ;;  %vm2037_vm6 = vsmask.f32 1280 }
  0x10   : > { %3209 = vmatpush.bf16.msra.mxu2 %v3107_v2  ;;  %566 = vmatpush.bf16.msra.mxu0 %v3107_v2  ;;  %v3089_v13 = vld [vmem:[%s3891_s4 + $0x8] sm:$0xff]  ;;  %v3088_v15 = vld [vmem:[%s3891_s4] sm:$0xff]  ;;  %v3134_v17 = vld [vmem:[%s3891_s4 + $0xf8] sm:$0xff]  ;;  %s3657_s26 = scalar_lea.vmem %s3896_s9, %s3225_s20  ;;  %s3226_s29 = smul.u32 112, %s3901_s14  ;;  %vm2038_vm7 = vsmask.f32 5392 }
  0x11   : > { %3217 = vmatpush.bf16.msra.mxu3 %v3094_v3  ;;  %678 = vmatpush.bf16.msra.mxu1 %v3094_v3  ;;  %v3098_v18 = vld [vmem:[%s3380_s17 + $0x10] sm:$0xff]  ;;  %v3147_v20 = vld [vmem:[%s3891_s4 + $0x138] sm:$0xff]  ;;  %v3096_v24 = vld [vmem:[%s3380_s17] sm:$0xff] }
  0x12   : > { %v3085_v19 = vld [vmem:[%s3374_s12 + $0x10] sm:$0xff]  ;;  %v3160_v21 = vld [vmem:[%s3891_s4 + $0x178] sm:$0xff]  ;;  %v3083_v25 = vld [vmem:[%s3374_s12] sm:$0xff]  ;;  %s3788_s15 = scalar_lea.vmem %s3897_s10, %s3226_s29 }
  0x13   : > { %v3120_v22 = vld [vmem:[%s3891_s4 + $0xb0] sm:$0xff]  ;;  %v3119_v28 = vld [vmem:[%s3891_s4 + $0xa8] sm:$0xff]  ;;  %v3118_v32 = vld [vmem:[%s3891_s4 + $0xa0] sm:$0xff] }
  0x14   : > { %3210 = vmatpush.bf16.msra.mxu2 %v3106_v4  ;;  %567 = vmatpush.bf16.msra.mxu0 %v3106_v4  ;;  %v3133_v23 = vld [vmem:[%s3891_s4 + $0xf0] sm:$0xff]  ;;  %v3132_v29 = vld [vmem:[%s3891_s4 + $0xe8] sm:$0xff]  ;;  %v3131_v33 = vld [vmem:[%s3891_s4 + $0xe0] sm:$0xff] }
  0x15   : > { %3218 = vmatpush.bf16.msra.mxu3 %v3093_v5  ;;  %679 = vmatpush.bf16.msra.mxu1 %v3093_v5  ;;  %v3146_v26 = vld [vmem:[%s3891_s4 + $0x130] sm:$0xff]  ;;  %v3145_v30 = vld [vmem:[%s3891_s4 + $0x128] sm:$0xff]  ;;  %v3144_v34 = vld [vmem:[%s3891_s4 + $0x120] sm:$0xff] }
  0x16   : > { %v3159_v27 = vld [vmem:[%s3891_s4 + $0x170] sm:$0xff]  ;;  %v3158_v31 = vld [vmem:[%s3891_s4 + $0x168] sm:$0xff]  ;;  %v3157_v35 = vld [vmem:[%s3891_s4 + $0x160] sm:$0xff] }
  0x17   : > { %v3117_v36 = vld [vmem:[%s3891_s4 + $0x98] sm:$0xff]  ;;  %v3116_v42 = vld [vmem:[%s3891_s4 + $0x90] sm:$0xff]  ;;  %v3097_v44 = vld [vmem:[%s3380_s17 + $0x8] sm:$0xff] }
  0x18   : > { %3211 = vmatpush.bf16.msra.mxu2 %v3105_v6  ;;  %568 = vmatpush.bf16.msra.mxu0 %v3105_v6  ;;  %v3130_v37 = vld [vmem:[%s3891_s4 + $0xd8] sm:$0xff]  ;;  %v3129_v43 = vld [vmem:[%s3891_s4 + $0xd0] sm:$0xff]  ;;  %v3084_v45 = vld [vmem:[%s3374_s12 + $0x8] sm:$0xff] }
  0x19   : > { %3219 = vmatpush.bf16.msra.mxu3 %v3092_v7  ;;  %680 = vmatpush.bf16.msra.mxu1 %v3092_v7  ;;  %v3099_v38 = vld [vmem:[%s3380_s17 + $0x18] sm:$0xff]  ;;  %v3142_v46 = vld [vmem:[%s3891_s4 + $0x110] sm:$0xff]  ;;  %v3115_v48 = vld [vmem:[%s3891_s4 + $0x88] sm:$0xff] }
  0x1a   : > { %v3086_v39 = vld [vmem:[%s3374_s12 + $0x18] sm:$0xff]  ;;  %v3155_v47 = vld [vmem:[%s3891_s4 + $0x150] sm:$0xff]  ;;  %v3128_v49 = vld [vmem:[%s3891_s4 + $0xc8] sm:$0xff] }
  0x1b   : > { %v3143_v40 = vld [vmem:[%s3891_s4 + $0x118] sm:$0xff]  ;;  %v3148_v50 = vld [vmem:[%s3463_s21] sm:$0xff]  ;;  %v3476_v51 = vld [vmem:[%s3463_s21 + $0x8] sm:$0xff] }
  0x1c   : > { %3212 = vmatpush.bf16.msra.mxu2 %v3104_v8  ;;  %569 = vmatpush.bf16.msra.mxu0 %v3104_v8  ;;  %v3156_v41 = vld [vmem:[%s3891_s4 + $0x158] sm:$0xff]  ;;  %v1266_v52 = vshll.u32 %v3148_v50, 16  ;;  %v3141_v53 = vld [vmem:[%s3891_s4 + $0x108] sm:$0xff]  ;;  %v3114_v55 = vld [vmem:[%s3891_s4 + $0x80] sm:$0xff]  ;;  %v1264_v59 = vshrl.u32 %v3148_v50, 16  ;;  %v1271_v61 = vshll.u32 %v3476_v51, 16 }
  0x1d   : > { %3220 = vmatpush.bf16.msra.mxu3 %v3091_v9  ;;  %681 = vmatpush.bf16.msra.mxu1 %v3091_v9  ;;  %v3154_v54 = vld [vmem:[%s3891_s4 + $0x148] sm:$0xff]  ;;  %v3127_v56 = vld [vmem:[%s3891_s4 + $0xc0] sm:$0xff]  ;;  %v3173_v57 = vld [vmem:[%s3891_s4 + $0x1b8] sm:$0xff] }
  0x1e   : > { %v3186_v58 = vld [vmem:[%s3891_s4 + $0x1f8] sm:$0xff]  ;;  %v1268_v60 = vrot.slane %v1266_v52, 1  ;;  %v3140_v62 = vld [vmem:[%s3891_s4 + $0x100] sm:$0xff]  ;;  %v3172_v1 = vld [vmem:[%s3891_s4 + $0x1b0] sm:$0xff]  ;;  %v1273_v6 = vrot.slane %v1271_v61, 1 }
  0x1f   : > { %v3153_v63 = vld [vmem:[%s3891_s4 + $0x140] sm:$0xff]  ;;  %v3194_v0 = vld [vmem:[%s3891_s4 + $0x238] sm:$0xff]  ;;  %v3185_v2 = vld [vmem:[%s3891_s4 + $0x1f0] sm:$0xff] }
  0x20   : > { %3213 = vmatpush.bf16.msra.mxu2 %v3103_v10  ;;  %570 = vmatpush.bf16.msra.mxu0 %v3103_v10  ;;  %v3100_v3 = vld [vmem:[%s3380_s17 + $0x20] sm:$0xff]  ;;  %v1269_v5 = vor.u32 %v1268_v60, %v1264_v59  ;;  %v3171_v10 = vld [vmem:[%s3891_s4 + $0x1a8] sm:$0xff]  ;;  %v3190_v52 = vld [vmem:[%s3891_s4 + $0x218] sm:$0xff] }
  0x21   : > { %3221 = vmatpush.bf16.msra.mxu3 %v3090_v11  ;;  %682 = vmatpush.bf16.msra.mxu1 %v3090_v11  ;;  %v3087_v4 = vld [vmem:[%s3374_s12 + $0x20] sm:$0xff]  ;;  %v3193_v11 = vld [vmem:[%s3891_s4 + $0x230] sm:$0xff]  ;;  %v3180_v60 = vld [vmem:[%s3891_s4 + $0x1c8] sm:$0xff] }
  0x22   : > { %v3109_v7 = vld [vmem:[%s3374_s12] sm:$0xff]  ;;  %v1274_v9 = vsel %vm767_vm0, %v1269_v5, %v1273_v6  ;;  %vm2152_vm5 = vmand %vm2150_vm3, %vm2151_vm4 }
  0x23   : > { %v3135_v8 = vld [vmem:[%s3518_s24] sm:$0xff]  ;;  %vm3826_vm8 = vmor %vm2037_vm6, %vm2038_vm7 }
  0x24   : > { %3214 = vmatpush.bf16.msra.mxu2 %v3102_v12  ;;  %571 = vmatpush.bf16.msra.mxu0 %v3102_v12  ;;  %v3110_v12 = vld [vmem:[%s3374_s12 + $0x8] sm:$0xff]  ;;  %v3204_v59 = vld [vmem:[%s3895_s8 + $0x20] sm:$0xff]  ;;  %vm2166_vm10 = vmand %vm2165_vm9, %vm2037_vm6 }
  0x25   : > { %3222 = vmatpush.bf16.msra.mxu3 %v3089_v13  ;;  %683 = vmatpush.bf16.msra.mxu1 %v3089_v13  ;;  %v771_v13 = vshll.u32 %v3109_v7, 16 }
  0x28   : > { %3215 = vmatpush.bf16.msra.mxu2 %v3101_v14  ;;  %572 = vmatpush.bf16.msra.mxu0 %v3101_v14  ;;  %v3184_v14 = vld [vmem:[%s3891_s4 + $0x1e8] sm:$0xff] }
  0x29   : > { %3223 = vmatpush.bf16.msra.mxu3 %v3088_v15  ;;  %684 = vmatpush.bf16.msra.mxu1 %v3088_v15  ;;  %v3192_v15 = vld [vmem:[%s3891_s4 + $0x228] sm:$0xff] }
  0x2b   : > { %583 = vmatmul.bf16.vlgmr.msra.gmra.mxu2 %v3098_v18  ;;  %573 = vmatmul.bf16.vlgmr.msra.gmra.mxu0 %v3096_v24  ;;  %v3170_v18 = vld [vmem:[%s3891_s4 + $0x1a0] sm:$0xff] }
  0x2c   : > { %865 = vmatpush.bf16.msrb.mxu2 %v3121_v16  ;;  %695 = vmatmul.bf16.vlgmr.msra.gmra.mxu3 %v3085_v19  ;;  %v3207_v16 = vld [vmem:[%s3895_s8 + $0x38] sm:$0xff]  ;;  %v769_v19 = vshrl.u32 %v3109_v7, 16 }
  0x2d   : > { %1014 = vmatpush.bf16.msrb.mxu3 %v3134_v17  ;;  %1163 = vmatpush.bf16.msrb.mxu0 %v3147_v20  ;;  %v3150_v17 = vld [vmem:[%s3463_s21 + $0x10] sm:$0xff]  ;;  %v773_v20 = vrot.slane %v771_v13, 1  ;;  %v3138_v7 = vld [vmem:[%s3518_s24 + $0x18] sm:$0xff]  ;;  %v3179_v13 = vld [vmem:[%s3891_s4 + $0x1c0] sm:$0xff] }
  0x2e   : > { %1360 = vmatpush.bf16.msrb.mxu1 %v3160_v21  ;;  %v776_v21 = vshll.u32 %v3110_v12, 16 }
  0x2f   : > { %685 = vmatmul.bf16.vlgmr.msra.gmra.mxu1 %v3083_v25  ;;  %v774_v24 = vor.u32 %v773_v20, %v769_v19 }
  0x30   : > { %866 = vmatpush.bf16.msrb.mxu2 %v3120_v22  ;;  %v1275_v22 = vshrl.u32 %v3476_v51, 16  ;;  %v778_v25 = vrot.slane %v776_v21, 1  ;;  %v3168_v51 = vld [vmem:[%s3891_s4 + $0x190] sm:$0xff] }
  0x31   : > { %1015 = vmatpush.bf16.msrb.mxu3 %v3133_v23  ;;  %1164 = vmatpush.bf16.msrb.mxu0 %v3146_v26  ;;  %v1279_v23 = vshll.u32 %v3150_v17, 16  ;;  %v3122_v26 = vld [vmem:[%s3463_s21] sm:$0xff] }
  0x32   : > { %1361 = vmatpush.bf16.msrb.mxu1 %v3159_v27  ;;  %v1277_v27 = vor.u32 %v1275_v22, %v1273_v6 }
  0x34   : > { %867 = vmatpush.bf16.msrb.mxu2 %v3119_v28  ;;  %v1281_v28 = vrot.slane %v1279_v23, 1 }
  0x35   : > { %1016 = vmatpush.bf16.msrb.mxu3 %v3132_v29  ;;  %1165 = vmatpush.bf16.msrb.mxu0 %v3145_v30  ;;  %v779_v29 = vsel %vm767_vm0, %v774_v24, %v778_v25  ;;  %v3136_v30 = vld [vmem:[%s3518_s24 + $0x8] sm:$0xff] }
  0x36   : > { %1362 = vmatpush.bf16.msrb.mxu1 %v3158_v31  ;;  %v1282_v31 = vsel %vm767_vm0, %v1277_v27, %v1281_v28  ;;  %v721_v24 = vld [vmem:[%s3374_s12 + $0x28] sm:$0x1] }
  0x38   : > { %868 = vmatpush.bf16.msrb.mxu2 %v3118_v32  ;;  %v3183_v32 = vld [vmem:[%s3891_s4 + $0x1e0] sm:$0xff] }
  0x39   : > { %1017 = vmatpush.bf16.msrb.mxu3 %v3131_v33  ;;  %1166 = vmatpush.bf16.msrb.mxu0 %v3144_v34  ;;  %v3169_v33 = vld [vmem:[%s3891_s4 + $0x198] sm:$0xff]  ;;  %v3111_v34 = vld [vmem:[%s3374_s12 + $0x10] sm:$0xff] }
  0x3a   : > { %1363 = vmatpush.bf16.msrb.mxu1 %v3157_v35  ;;  %v3191_v35 = vld [vmem:[%s3891_s4 + $0x220] sm:$0xff]  ;;  %v788_v61 = vshrl.u32 %v3111_v34, 16 }
  0x3b   : > { %588 = vmatmul.bf16.gmra.mxu2 %v3099_v38  ;;  %578 = vmatmul.bf16.gmra.mxu0 %v3097_v44  ;;  %v3151_v38 = vld [vmem:[%s3463_s21 + $0x18] sm:$0xff] }
  0x3c   : > { %869 = vmatpush.bf16.msrb.mxu2 %v3117_v36  ;;  %700 = vmatmul.bf16.gmra.mxu3 %v3086_v39  ;;  %v3206_v36 = vld [vmem:[%s3895_s8 + $0x30] sm:$0xff]  ;;  %v780_v39 = vshrl.u32 %v3110_v12, 16  ;;  %v3203_v12 = vld [vmem:[%s3895_s8 + $0x18] sm:$0xff] }
  0x3d   : > { %1018 = vmatpush.bf16.msrb.mxu3 %v3130_v37  ;;  %1167 = vmatpush.bf16.msrb.mxu0 %v3143_v40  ;;  %v3182_v37 = vld [vmem:[%s3891_s4 + $0x1d8] sm:$0xff]  ;;  %v784_v40 = vshll.u32 %v3111_v34, 16  ;;  %v3624_v34 = vld [vmem:[%s3374_s12 + $0xc] sm:$0xff] }
  0x3e   : > { %1364 = vmatpush.bf16.msrb.mxu1 %v3156_v41  ;;  %v1283_v41 = vshrl.u32 %v3150_v17, 16 }
  0x3f   : > { %690 = vmatmul.bf16.gmra.mxu1 %v3084_v45  ;;  %v786_v44 = vrot.slane %v784_v40, 1  ;;  %v3123_v45 = vld [vmem:[%s3463_s21 + $0x8] sm:$0xff]  ;;  %v1764_v40 = vshrl.u32 %v3624_v34, 16 }
  0x40   : > { %870 = vmatpush.bf16.msrb.mxu2 %v3116_v42  ;;  %v1287_v42 = vshll.u32 %v3151_v38, 16 }
  0x41   : > { %1019 = vmatpush.bf16.msrb.mxu3 %v3129_v43  ;;  %1168 = vmatpush.bf16.msrb.mxu0 %v3142_v46  ;;  %v782_v43 = vor.u32 %v780_v39, %v778_v25  ;;  %v1285_v46 = vor.u32 %v1283_v41, %v1281_v28  ;;  %v3125_v25 = vld [vmem:[%s3463_s21 + $0x18] sm:$0xff]  ;;  %v1767_v41 = vshll.u32 %v3624_v34, 16 }
  0x42   : > { %1365 = vmatpush.bf16.msrb.mxu1 %v3155_v47  ;;  %v1289_v47 = vrot.slane %v1287_v42, 1 }
  0x44   : > { %871 = vmatpush.bf16.msrb.mxu2 %v3115_v48  ;;  %v787_v48 = vsel %vm767_vm0, %v782_v43, %v786_v44  ;;  %v1290_v50 = vsel %vm767_vm0, %v1285_v46, %v1289_v47  ;;  %v1766_v46 = vrot.slane %v1764_v40, 1 }
  0x45   : > { %1020 = vmatpush.bf16.msrb.mxu3 %v3128_v49  ;;  %1169 = vmatpush.bf16.msrb.mxu0 %v3141_v53  ;;  %v3137_v49 = vld [vmem:[%s3518_s24 + $0x10] sm:$0xff]  ;;  %v3112_v53 = vld [vmem:[%s3374_s12 + $0x18] sm:$0xff] }
  0x46   : > { %1366 = vmatpush.bf16.msrb.mxu1 %v3154_v54  ;;  %v3205_v54 = vld [vmem:[%s3895_s8 + $0x28] sm:$0xff] }
  0x48   : > { %872 = vmatpush.bf16.msrb.mxu2 %v3114_v55  ;;  %v3181_v55 = vld [vmem:[%s3891_s4 + $0x1d0] sm:$0xff] }
  0x49   : > { %1021 = vmatpush.bf16.msrb.mxu3 %v3127_v56  ;;  %1170 = vmatpush.bf16.msrb.mxu0 %v3140_v62  ;;  %v3167_v56 = vld [vmem:[%s3891_s4 + $0x188] sm:$0xff]  ;;  %v792_v62 = vshll.u32 %v3112_v53, 16 }
  0x4a   : > { %1367 = vmatpush.bf16.msrb.mxu1 %v3153_v63  ;;  %v1291_v63 = vshrl.u32 %v3151_v38, 16 }
  0x4b   : > { %593 = vmatmul.bf16.gmra.mxu2 %v3100_v3  ;;  %v3124_v3 = vld [vmem:[%s3463_s21 + $0x10] sm:$0xff] }
  0x4c   : > { %1525 = vmatpush.bf16.msra.mxu2 %v3173_v57  ;;  %705 = vmatmul.bf16.gmra.mxu3 %v3087_v4  ;;  %v3189_v57 = vld [vmem:[%s3891_s4 + $0x210] sm:$0xff]  ;;  %v1293_v4 = vor.u32 %v1291_v63, %v1289_v47  ;;  %v1769_v47 = vrot.slane %v1767_v41, 2 }
  0x4d   : > { %1689 = vmatpush.bf16.msra.mxu3 %v3186_v58  ;;  %1861 = vmatpush.bf16.msra.mxu0 %v3194_v0  ;;  %v3152_v58 = vld [vmem:[%s3463_s21 + $0x20] sm:$0xff]  ;;  %v3649_v63 = vld [vmem:[%s3380_s17 + $0xc] sm:$0xff] }
  0x4e   : > { %1171 = vmatmul.bf16.vlgmr.msrb.gmra.mxu0 %v3135_v8  ;;  %2274 = vmatpush.bf16.msra.mxu1 %v3207_v16  ;;  %v1295_v0 = vshll.u32 %v3152_v58, 16  ;;  %v3113_v8 = vld [vmem:[%s3374_s12 + $0x20] sm:$0xff]  ;;  %v1299_v20 = vshrl.u32 %v3152_v58, 16  ;;  %v3174_v58 = vld [vmem:[%s3380_s17 + $0x4] sm:$0xf0] }
  0x4f   : > { %1368 = vmatmul.bf16.vlgmr.msrb.gmra.mxu1 %v1274_v9  ;;  %v3187_v16 = vld [vmem:[%s3891_s4 + $0x200] sm:$0xff]  ;;  %v800_v19 = vshll.u32 %v3113_v8, 16  ;;  %v804_v42 = vshrl.u32 %v3113_v8, 16  ;;  %v3249_v8 = vmov 0  }
  0x50   : > { %1526 = vmatpush.bf16.msra.mxu2 %v3172_v1  ;;  %v790_v1 = vor.u32 %v788_v61, %v786_v44  ;;  %v1297_v5 = vrot.slane %v1295_v0, 1  ;;  %3236 = vset.pattern.permute.xlu0 %v3249_v8  ;;  %2013 = vst [vmem:[%s3657_s26] sm:$0xf] %v3249_v8 }
  0x51   : > { %1690 = vmatpush.bf16.msra.mxu3 %v3185_v2  ;;  %1862 = vmatpush.bf16.msra.mxu0 %v3193_v11  ;;  %v794_v2 = vrot.slane %v792_v62, 1  ;;  %v3188_v11 = vld [vmem:[%s3891_s4 + $0x208] sm:$0xff]  ;;  %v802_v23 = vrot.slane %v800_v19, 1  ;;  %v3195_v62 = vld [vmem:[%s3518_s24] sm:$0xff]  ;;  %2025 = vst [vmem:[%s3657_s26 + $0x30] sm:$0xf] %v3249_v8 }
  0x52   : > { %2275 = vmatpush.bf16.msra.mxu1 %v3206_v36  ;;  %v1298_v9 = vsel %vm767_vm0, %v1293_v4, %v1297_v5  ;;  %v3202_v36 = vld [vmem:[%s3895_s8 + $0x10] sm:$0xff]  ;;  %v1462_v4 = vrot.slane %v3624_v34, 1  ;;  %3237 = vset.pattern.permute.xlu1 %v3249_v8  ;;  %2026 = vst [vmem:[%s3657_s26 + $0x34] sm:$0x7] %v3249_v8 }
  0x53   : > { %v795_v6 = vsel %vm767_vm0, %v790_v1, %v794_v2  ;;  %3238 = vset.pattern.permute.xlu2 %v3249_v8  ;;  %2014 = vst [vmem:[%s3657_s26 + $0x4] sm:$0xf] %v3249_v8 }
  0x54   : > { %1527 = vmatpush.bf16.msra.mxu2 %v3171_v10  ;;  %v3166_v10 = vld [vmem:[%s3891_s4 + $0x180] sm:$0xff]  ;;  %2015 = vst [vmem:[%s3657_s26 + $0x8] sm:$0xf] %v3249_v8 }
  0x55   : > { %1691 = vmatpush.bf16.msra.mxu3 %v3184_v14  ;;  %1863 = vmatpush.bf16.msra.mxu0 %v3192_v15  ;;  %v1217_v14 = vld [vmem:[%s3463_s21 + $0x28] sm:$0x1]  ;;  %2016 = vst [vmem:[%s3657_s26 + $0xc] sm:$0xf] %v3249_v8 }
  0x56   : > { %2276 = vmatpush.bf16.msra.mxu1 %v3205_v54  ;;  %v1256_v15 = vunpack.c.l.b16 %v1217_v14  ;;  %2017 = vst [vmem:[%s3657_s26 + $0x10] sm:$0xf] %v3249_v8 }
  0x57   : > { %2018 = vst [vmem:[%s3657_s26 + $0x14] sm:$0xf] %v3249_v8 }
  0x58   : > { %1528 = vmatpush.bf16.msra.mxu2 %v3170_v18  ;;  %v1262_v17 = vpack.c.b16 %v1256_v15, %v1256_v15  ;;  %v796_v18 = vshrl.u32 %v3112_v53, 16  ;;  %v3201_v53 = vld [vmem:[%s3895_s8 + $0x8] sm:$0xff]  ;;  %v3671_v15 = vld [vmem:[%s3374_s12 + $0x1c] sm:$0xff]  ;;  %2019 = vst [vmem:[%s3657_s26 + $0x18] sm:$0xf] %v3249_v8 }
  0x59   : > { %1692 = vmatpush.bf16.msra.mxu3 %v3183_v32  ;;  %1864 = vmatpush.bf16.msra.mxu0 %v3191_v35  ;;  %v3139_v32 = vld [vmem:[%s3518_s24 + $0x20] sm:$0xff]  ;;  %2020 = vst [vmem:[%s3657_s26 + $0x1c] sm:$0xf] %v3249_v8 }
  0x5a   : > { %2277 = vmatpush.bf16.msra.mxu1 %v3204_v59  ;;  %v1303_v21 = vshll.u32 %v1262_v17, 16  ;;  %v798_v22 = vor.u32 %v796_v18, %v794_v2  ;;  %v3200_v59 = vld [vmem:[%s3895_s8] sm:$0xff]  ;;  %2021 = vst [vmem:[%s3657_s26 + $0x20] sm:$0xf] %v3249_v8 }
  0x5b   : > { %873 = vmatmul.bf16.vlgmr.msrb.gmra.mxu2 %v779_v29  ;;  %v760_v29 = vunpack.c.l.b16 %v721_v24  ;;  %v3176_v24 = vld [vmem:[%s3380_s17 + $0x14] sm:$0xff]  ;;  %2022 = vst [vmem:[%s3657_s26 + $0x24] sm:$0xf] %v3249_v8 }
  0x5c   : > { %1022 = vmatmul.bf16.vlgmr.msrb.gmra.mxu3 %v3122_v26  ;;  %1529 = vmatpush.bf16.msra.mxu2 %v3169_v33  ;;  %v1301_v26 = vor.u32 %v1299_v20, %v1297_v5  ;;  %v1305_v27 = vrot.slane %v1303_v21, 1  ;;  %v803_v28 = vsel %vm767_vm0, %v798_v22, %v802_v23  ;;  %v1782_v20 = vshrl.u32 %v3671_v15, 16  ;;  %v1944_v22 = vld [vmem:[%s3894_s7 + $0x8] sm:$0xff]  ;;  %2023 = vst [vmem:[%s3657_s26 + $0x28] sm:$0xf] %v3249_v8 }
  0x5d   : > { %1693 = vmatpush.bf16.msra.mxu3 %v3182_v37  ;;  %1865 = vmatpush.bf16.msra.mxu0 %v3190_v52  ;;  %v766_v37 = vpack.c.b16 %v760_v29, %v760_v29  ;;  %v1770_v52 = vor.u32 %v1769_v47, %v1766_v46  ;;  %v1785_v21 = vshll.u32 %v3671_v15, 16  ;;  %2024 = vst [vmem:[%s3657_s26 + $0x2c] sm:$0xf] %v3249_v8 }
  0x5e   : > { %1176 = vmatmul.bf16.gmra.mxu0 %v3136_v30  ;;  %2278 = vmatpush.bf16.msra.mxu1 %v3203_v12  ;;  %v2863_v30 = vld [vmem:[%s3374_s12 + $0x4] sm:$0xe]  ;;  %v1306_v33 = vsel %vm767_vm0, %v1301_v26, %v1305_v27  ;;  %v1784_v27 = vrot.slane %v1782_v20, 1 }
  0x5f   : > { %1373 = vmatmul.bf16.gmra.mxu1 %v1282_v31  ;;  %v3161_v31 = vld [vmem:[%s3374_s12 + $0x4] sm:$0xf0]  ;;  %v808_v43 = vshll.u32 %v766_v37, 16 }
  0x60   : > { %1530 = vmatpush.bf16.msra.mxu2 %v3168_v51  ;;  %v2864_v35 = vor.u32 %v3161_v31, %v2863_v30  ;;  %v1628_v30 = vrot.slane %v3176_v24, 1 }
  0x61   : > { %1694 = vmatpush.bf16.msra.mxu3 %v3181_v55  ;;  %1866 = vmatpush.bf16.msra.mxu0 %v3189_v57  ;;  %v2931_v57 = vld [vmem:[%s3380_s17 + $0x4] sm:$0xe] }
  0x62   : > { %2279 = vmatpush.bf16.msra.mxu1 %v3202_v36  ;;  %v1756_v38 = vshrl.u32 %v2864_v35, 16  ;;  %v1759_v39 = vshll.u32 %v2864_v35, 16  ;;  %v2932_v0 = vor.u32 %v3174_v58, %v2931_v57  ;;  %v1945_v36 = vld [vmem:[%s3894_s7 + $0x10] sm:$0xff] }
  0x63   : > { %1965 = vperm.xlu1 %3237, %v1945_v36  }
  0x64   : > { %1531 = vmatpush.bf16.msra.mxu2 %v3167_v56  ;;  %v1758_v44 = vrot.slane %v1756_v38, 1  ;;  %v3638_v56 = vld [vmem:[%s3374_s12 + $0x14] sm:$0xff]  ;;  %v1625_v5 = vrot.slane %v2932_v0, 1 }
  0x65   : > { %1695 = vmatpush.bf16.msra.mxu3 %v3180_v60  ;;  %1867 = vmatpush.bf16.msra.mxu0 %v3188_v11  ;;  %v1773_v60 = vshrl.u32 %v3638_v56, 16  ;;  %v1776_v61 = vshll.u32 %v3638_v56, 16  ;;  %v1464_v29 = vrot.slane %v3638_v56, 1  ;;  %v1466_v56 = vrot.slane %v3671_v15, 1 }
  0x66   : > { %2280 = vmatpush.bf16.msra.mxu1 %v3201_v53 }
  0x67   : > { %v1775_v1 = vrot.slane %v1773_v60, 1  ;;  %v1778_v2 = vrot.slane %v1776_v61, 2  ;;  %v1465_v37 = vsel %vm1460_vm2, %v1462_v4, %v1464_v29 }
  0x68   : > { %1532 = vmatpush.bf16.msra.mxu2 %v3166_v10 }
  0x69   : > { %1696 = vmatpush.bf16.msra.mxu3 %v3179_v13  ;;  %1868 = vmatpush.bf16.msra.mxu0 %v3187_v16 }
  0x6a   : > { %2281 = vmatpush.bf16.msra.mxu1 %v3200_v59  ;;  %v1733_v59 = vld [vmem:[%s3374_s12 + $0x2c] sm:$0x3] }
  0x6b   : > { %878 = vmatmul.bf16.gmra.mxu2 %v787_v48  ;;  %v806_v48 = vor.u32 %v804_v42, %v802_v23  ;;  %v3196_v23 = vld [vmem:[%s3518_s24 + $0x8] sm:$0xff]  ;;  %v1752_v0 = vunpack.c.l.b16 %v1733_v59 }
  0x6c   : > { %1027 = vmatmul.bf16.gmra.mxu3 %v3123_v45  ;;  %v1761_v45 = vrot.slane %v1759_v39, 2  ;;  %v3705_v42 = vld [vmem:[%s3374_s12 + $0x24] sm:$0xff] }
  0x6d   : > { %v1791_v47 = vshrl.u32 %v3705_v42, 16  ;;  %v1948_v59 = vld [vmem:[%s3894_s7 + $0x28] sm:$0xff] }
  0x6e   : > { %1181 = vmatmul.bf16.gmra.mxu0 %v3137_v49  ;;  %v810_v49 = vrot.slane %v808_v43, 1  ;;  %v1762_v51 = vor.u32 %v1761_v45, %v1758_v44 }
  0x6f   : > { %1378 = vmatmul.bf16.gmra.mxu1 %v1290_v50  ;;  %v3126_v50 = vld [vmem:[%s3463_s21 + $0x20] sm:$0xff] }
  0x70   : > { %v811_v54 = vsel %vm767_vm0, %v806_v48, %v810_v49  ;;  %v1771_v55 = vsel %vm1754_vm1, %v1762_v51, %v1770_v52  ;;  %v1794_v48 = vshll.u32 %v3705_v42, 16  ;;  %v1946_v49 = vld [vmem:[%s3894_s7 + $0x18] sm:$0xff]  ;;  %v3197_v51 = vld [vmem:[%s3518_s24 + $0x10] sm:$0xff] }
  0x71   : > { %1970 = vperm.xlu1 %3237, %v1946_v49  }
  0x7b   : > { %883 = vmatmul.bf16.gmra.mxu2 %v795_v6  ;;  %v1626_v6 = vrot.slane %v3649_v63, 1 }
  0x7c   : > { %1032 = vmatmul.bf16.gmra.mxu3 %v3124_v3  ;;  %v1461_v3 = vrot.slane %v2864_v35, 1 }
  0x7d   : > { %v1627_v11 = vsel %vm1460_vm2, %v1625_v5, %v1626_v6  ;;  %v1629_v38 = vsel %vm1460_vm2, %v1626_v6, %v1628_v30  ;;  %v1753_v6 = vpack.c.b16 %v1752_v0, %v1752_v0 }
  0x7e   : > { %1186 = vmatmul.bf16.gmra.mxu0 %v3138_v7  ;;  %v1779_v7 = vor.u32 %v1778_v2, %v1775_v1  ;;  %v1463_v10 = vsel %vm1460_vm2, %v1461_v3, %v1462_v4  ;;  %v1467_v1 = vsel %vm1460_vm2, %v1464_v29, %v1466_v56 }
  0x7f   : > { %1383 = vmatmul.bf16.gmra.mxu1 %v1298_v9  ;;  %v1943_v9 = vld [vmem:[%s3894_s7] sm:$0xff] }
  0x80   : > { %1955 = vperm.xlu0 %3236, %v1943_v9   ;;  %v1780_v14 = vsel %vm1754_vm1, %v1770_v52, %v1779_v7 }
  0x88   : > { %1960 = vperm.xlu0 %3236, %v1944_v22  }
  0x8b   : > { %888 = vmatmul.bf16.gmra.mxu2 %v803_v28  ;;  %v1787_v28 = vrot.slane %v1785_v21, 2  ;;  %v1468_v21 = vrot.slane %v3705_v42, 1  ;;  %v1947_v42 = vld [vmem:[%s3894_s7 + $0x20] sm:$0xff] }
  0x8c   : > { %1037 = vmatmul.bf16.gmra.mxu3 %v3125_v25  ;;  %1975 = vperm.xlu2 %3238, %v1947_v42  }
  0x8d   : > { %v1788_v35 = vor.u32 %v1787_v28, %v1784_v27  ;;  %v1952_v27 = vld [vmem:[%s3894_s7 + $0x48] sm:$0xff]  ;;  %v1469_v28 = vsel %vm1460_vm2, %v1466_v56, %v1468_v21 }
  0x8e   : > { %1191 = vmatmul.bf16.gmra.mxu0 %v3139_v32 }
  0x8f   : > { %1388 = vmatmul.bf16.gmra.mxu1 %v1306_v33  ;;  %v1789_v41 = vsel %vm1754_vm1, %v1779_v7, %v1788_v35 }
  0x94   : > { %1980 = vperm.xlu2 %3238, %v1948_v59  }
  0x9b   : > { %893 = vmatmul.bf16.gmra.mxu2 %v811_v54  ;;  %v1793_v54 = vrot.slane %v1791_v47, 1 }
  0x9c   : > { %1042 = vmatmul.bf16.gmra.mxu3 %v3126_v50  ;;  %v3177_v50 = vld [vmem:[%s3380_s17 + $0x1c] sm:$0xff] }
  0x9d   : > { %v1630_v57 = vrot.slane %v3177_v50, 1 }
  0x9e   : > { %1869 = vmatmul.bf16.vlgmr.msra.gmra.mxu0 %v1771_v55  ;;  %v1796_v55 = vrot.slane %v1794_v48, 2  ;;  %v3199_v48 = vld [vmem:[%s3518_s24 + $0x20] sm:$0xff] }
  0x9f   : > { %2282 = vmatmul.bf16.vlgmr.msra.gmra.mxu1 %v3195_v62  ;;  %v1631_v2 = vsel %vm1460_vm2, %v1628_v30, %v1630_v57  ;;  %v1414_v30 = vld [vmem:[%s3374_s12 + $0x2c] sm:$0x1] }
  0xa0   : > { %v1797_v63 = vor.u32 %v1796_v55, %v1793_v54 }
  0xa2   : > { %v1798_v4 = vsel %vm1754_vm1, %v1788_v35, %v1797_v63 }
  0xa8   : > { %v574_v12 = vpop.f32.mrf.mxu0 }
  0xab   : > { %1533 = vmatmul.bf16.vlgmr.msra.gmra.mxu2 %v1463_v10  ;;  %v1800_v10 = vshrl.u32 %v1753_v6, 16 }
  0xac   : > { %1697 = vmatmul.bf16.vlgmr.msra.gmra.mxu3 %v1627_v11  ;;  %v686_v13 = vpop.f32.mrf.mxu1  ;;  %v1803_v11 = vshll.u32 %v1753_v6, 16 }
  0xad   : > { %v3673_v16 = vadd.f32 %v686_v13, %v574_v12  ;;  %v1949_v12 = vld [vmem:[%s3894_s7 + $0x30] sm:$0xff]  ;;  %v3178_v13 = vld [vmem:[%s3380_s17 + $0x24] sm:$0xff] }
  0xae   : > { %v584_v17 = vpop.f32.mrf.mxu2  ;;  %1874 = vmatmul.bf16.gmra.mxu0 %v1780_v14  ;;  %1985 = vperm.xlu0 %3236, %v1949_v12   ;;  %v3198_v14 = vld [vmem:[%s3518_s24 + $0x18] sm:$0xff]  ;;  %v1805_v20 = vrot.slane %v1803_v11, 2  ;;  %v1632_v22 = vrot.slane %v3178_v13, 1 }
  0xaf   : > { %v696_v18 = vpop.f32.mrf.mxu3  ;;  %2287 = vmatmul.bf16.gmra.mxu1 %v3196_v23 }
  0xb0   : > { %v3678_v19 = vadd.f32 %v696_v18, %v584_v17  ;;  %v576_v25 = vpop.f32.mrf.mxu0  ;;  %v1802_v18 = vrot.slane %v1800_v10, 1  ;;  %v1633_v29 = vsel %vm1460_vm2, %v1630_v57, %v1632_v22 }
  0xb4   : > { %v688_v26 = vpop.f32.mrf.mxu1 }
  0xb5   : > { %v3693_v31 = vadd.f32 %v688_v26, %v576_v25  ;;  %v1806_v26 = vor.u32 %v1805_v20, %v1802_v18 }
  0xb6   : > { %v586_v32 = vpop.f32.mrf.mxu2  ;;  %2000 = vperm.xlu0 %3236, %v1952_v27  }
  0xb7   : > { %v698_v33 = vpop.f32.mrf.mxu3  ;;  %v1807_v35 = vsel %vm1754_vm1, %v1797_v63, %v1806_v26 }
  0xb8   : > { %v3696_v34 = vadd.f32 %v698_v33, %v586_v32  ;;  %v579_v39 = vpop.f32.mrf.mxu0  ;;  %v1579_v32 = vld [vmem:[%s3380_s17 + $0x2c] sm:$0x1] }
  0xbb   : > { %1538 = vmatmul.bf16.gmra.mxu2 %v1465_v37  ;;  %v1453_v37 = vunpack.c.l.b16 %v1414_v30 }
  0xbc   : > { %1702 = vmatmul.bf16.gmra.mxu3 %v1629_v38  ;;  %v691_v40 = vpop.f32.mrf.mxu1  ;;  %v1618_v38 = vunpack.c.l.b16 %v1579_v32 }
  0xbd   : > { %v3707_v43 = vadd.f32 %v691_v40, %v579_v39 }
  0xbe   : > { %v589_v44 = vpop.f32.mrf.mxu2  ;;  %1879 = vmatmul.bf16.gmra.mxu0 %v1789_v41  ;;  %v1624_v47 = vpack.c.b16 %v1618_v38, %v1618_v38 }
  0xbf   : > { %v701_v45 = vpop.f32.mrf.mxu3  ;;  %2292 = vmatmul.bf16.gmra.mxu1 %v3197_v51 }
  0xc0   : > { %v3709_v46 = vadd.f32 %v701_v45, %v589_v44  ;;  %v581_v52 = vpop.f32.mrf.mxu0  ;;  %v1950_v44 = vld [vmem:[%s3894_s7 + $0x38] sm:$0xff]  ;;  %v1459_v45 = vpack.c.b16 %v1453_v37, %v1453_v37 }
  0xc1   : > { %1990 = vperm.xlu1 %3237, %v1950_v44  }
  0xc4   : > { %v693_v53 = vpop.f32.mrf.mxu1 }
  0xc5   : > { %v3719_v58 = vadd.f32 %v693_v53, %v581_v52  ;;  %v1470_v53 = vrot.slane %v1459_v45, 1 }
  0xc6   : > { %v591_v60 = vpop.f32.mrf.mxu2 }
  0xc7   : > { %v703_v61 = vpop.f32.mrf.mxu3 }
  0xc8   : > { %v3722_v62 = vadd.f32 %v703_v61, %v591_v60  ;;  %v1471_v60 = vsel %vm1460_vm2, %v1468_v21, %v1470_v53 }
  0xcb   : > { %1543 = vmatmul.bf16.gmra.mxu2 %v1467_v1  ;;  %v1172_v3 = vpop.f32.mrf.mxu0 }
  0xcc   : > { %1707 = vmatmul.bf16.gmra.mxu3 %v1631_v2  ;;  %v1369_v5 = vpop.f32.mrf.mxu1 }
  0xce   : > { %v594_v7 = vpop.f32.mrf.mxu2  ;;  %1884 = vmatmul.bf16.gmra.mxu0 %v1798_v4 }
  0xcf   : > { %v706_v8 = vpop.f32.mrf.mxu3  ;;  %2297 = vmatmul.bf16.gmra.mxu1 %v3198_v14 }
  0xd0   : > { %v3727_v9 = vadd.f32 %v706_v8, %v594_v7 }
  0xd3   : > { %v1174_v15 = vpop.f32.mrf.mxu0 }
  0xd4   : > { %v1371_v17 = vpop.f32.mrf.mxu1 }
  0xd6   : > { %v596_v23 = vpop.f32.mrf.mxu2 }
  0xd7   : > { %v708_v24 = vpop.f32.mrf.mxu3 }
  0xd8   : > { %v3735_v25 = vadd.f32 %v708_v24, %v596_v23 }
  0xdb   : > { %1548 = vmatmul.bf16.gmra.mxu2 %v1469_v28  ;;  %v1177_v33 = vpop.f32.mrf.mxu0 }
  0xdc   : > { %1712 = vmatmul.bf16.gmra.mxu3 %v1633_v29  ;;  %v1374_v36 = vpop.f32.mrf.mxu1 }
  0xde   : > { %v874_v39 = vpop.f32.mrf.mxu2  ;;  %1889 = vmatmul.bf16.gmra.mxu0 %v1807_v35 }
  0xdf   : > { %v1023_v40 = vpop.f32.mrf.mxu3  ;;  %v899_v41 = vadd.f32 %v874_v39, %v3673_v16  ;;  %2302 = vmatmul.bf16.gmra.mxu1 %v3199_v48  ;;  %v1634_v16 = vrot.slane %v1624_v47, 1 }
  0xe1   : > { %v1048_v49 = vadd.f32 %v1023_v40, %v899_v41  ;;  %v1635_v61 = vsel %vm1460_vm2, %v1632_v22, %v1634_v16 }
  0xe3   : > { %v1197_v50 = vadd.f32 %v1172_v3, %v1048_v49  ;;  %v1179_v51 = vpop.f32.mrf.mxu0 }
  0xe4   : > { %v1376_v52 = vpop.f32.mrf.mxu1 }
  0xe5   : > { %v3753_v54 = vadd.f32 %v1369_v5, %v1197_v50 }
  0xe6   : > { %v876_v55 = vpop.f32.mrf.mxu2 }
  0xe7   : > { %v1025_v56 = vpop.f32.mrf.mxu3  ;;  %v900_v57 = vadd.f32 %v876_v55, %v3693_v31 }
  0xe9   : > { %v1049_v63 = vadd.f32 %v1025_v56, %v900_v57 }
  0xeb   : > { %1553 = vmatmul.bf16.gmra.mxu2 %v1471_v60  ;;  %v1198_v0 = vadd.f32 %v1174_v15, %v1049_v63  ;;  %v1182_v1 = vpop.f32.mrf.mxu0  ;;  %v1951_v15 = vld [vmem:[%s3894_s7 + $0x40] sm:$0xff] }
  0xec   : > { %1717 = vmatmul.bf16.gmra.mxu3 %v1635_v61  ;;  %v1379_v2 = vpop.f32.mrf.mxu1  ;;  %1995 = vperm.xlu2 %3238, %v1951_v15  }
  0xed   : > { %v3761_v3 = vadd.f32 %v1371_v17, %v1198_v0 }
  0xee   : > { %v879_v4 = vpop.f32.mrf.mxu2 }
  0xef   : > { %v1028_v5 = vpop.f32.mrf.mxu3  ;;  %v901_v31 = vadd.f32 %v879_v4, %v3707_v43 }
  0xf1   : > { %v1050_v6 = vadd.f32 %v1028_v5, %v901_v31 }
  0xf3   : > { %v1199_v7 = vadd.f32 %v1177_v33, %v1050_v6  ;;  %v1184_v8 = vpop.f32.mrf.mxu0 }
  0xf4   : > { %v1381_v10 = vpop.f32.mrf.mxu1 }
  0xf5   : > { %v3764_v11 = vadd.f32 %v1374_v36, %v1199_v7 }
  0xf6   : > { %v881_v12 = vpop.f32.mrf.mxu2 }
  0xf7   : > { %v1030_v13 = vpop.f32.mrf.mxu3  ;;  %v902_v14 = vadd.f32 %v881_v12, %v3719_v58  ;;  %v3803_v12 = vld [vmem:[%s3892_s5] ss:$0 sm:$0xff] }
  0xf9   : > { %v1051_v17 = vadd.f32 %v1030_v13, %v902_v14  ;;  %v3808_v13 = vld [vmem:[%s3893_s6] ss:$0 sm:$0xff] }
  0xfb   : > { %v1200_v18 = vadd.f32 %v1179_v51, %v1051_v17  ;;  %v1187_v20 = vpop.f32.mrf.mxu0  ;;  %v1956_v17 = vpop.permute.xlu0 %1955 }
  0xfc   : > { %v1384_v21 = vpop.f32.mrf.mxu1 }
  0xfd   : > { %v3770_v43 = vadd.f32 %v1376_v52, %v1200_v18 }
  0xfe   : > { %v884_v22 = vpop.f32.mrf.mxu2 }
  0xff   : > { %v1033_v23 = vpop.f32.mrf.mxu3  ;;  %v903_v24 = vadd.f32 %v884_v22, %v3678_v19 }
 0x101   : > { %v1052_v26 = vadd.f32 %v1033_v23, %v903_v24 }
 0x103   : > { %v1201_v27 = vadd.f32 %v1182_v1, %v1052_v26  ;;  %v1189_v28 = vpop.f32.mrf.mxu0 }
 0x104   : > { %v1386_v29 = vpop.f32.mrf.mxu1 }
 0x105   : > { %v3773_v58 = vadd.f32 %v1379_v2, %v1201_v27 }
 0x106   : > { %v886_v30 = vpop.f32.mrf.mxu2 }
 0x107   : > { %v1035_v32 = vpop.f32.mrf.mxu3  ;;  %v904_v33 = vadd.f32 %v886_v30, %v3696_v34 }
 0x109   : > { %v1053_v35 = vadd.f32 %v1035_v32, %v904_v33 }
 0x10b   : > { %v1202_v36 = vadd.f32 %v1184_v8, %v1053_v35  ;;  %v1192_v37 = vpop.f32.mrf.mxu0 }
 0x10c   : > { %v1389_v39 = vpop.f32.mrf.mxu1 }
 0x10d   : > { %v3776_v38 = vadd.f32 %v1381_v10, %v1202_v36 }
 0x10e   : > { %v889_v40 = vpop.f32.mrf.mxu2 }
 0x10f   : > { %v1038_v41 = vpop.f32.mrf.mxu3  ;;  %v905_v19 = vadd.f32 %v889_v40, %v3709_v46  ;;  %v1961_v40 = vpop.permute.xlu0 %1960 }
 0x111   : > { %v1054_v42 = vadd.f32 %v1038_v41, %v905_v19 }
 0x113   : > { %v1203_v44 = vadd.f32 %v1187_v20, %v1054_v42  ;;  %v1194_v47 = vpop.f32.mrf.mxu0 }
 0x114   : > { %v1391_v50 = vpop.f32.mrf.mxu1 }
 0x115   : > { %v3779_v45 = vadd.f32 %v1384_v21, %v1203_v44 }
 0x116   : > { %v891_v48 = vpop.f32.mrf.mxu2 }
 0x117   : > { %v1040_v49 = vpop.f32.mrf.mxu3  ;;  %v906_v34 = vadd.f32 %v891_v48, %v3722_v62 }
 0x119   : > { %v1055_v51 = vadd.f32 %v1040_v49, %v906_v34 }
 0x11b   : > { %v1204_v52 = vadd.f32 %v1189_v28, %v1055_v51  ;;  %v1870_v56 = vpop.f32.mrf.mxu0 }
 0x11c   : > { %v2283_v57 = vpop.f32.mrf.mxu1 }
 0x11d   : > { %v3783_v53 = vadd.f32 %v1386_v29, %v1204_v52  ;;  %2308 = vst [vmem:[%s3788_s15 + $0xb] sm:$0xff] %v2283_v57  ;;  %v1966_v52 = vpop.permute.xlu1 %1965 }
 0x11e   : > { %v894_v46 = vpop.f32.mrf.mxu2 }
 0x11f   : > { %v1043_v16 = vpop.f32.mrf.mxu3  ;;  %v907_v55 = vadd.f32 %v894_v46, %v3727_v9 }
 0x121   : > { %v1056_v62 = vadd.f32 %v1043_v16, %v907_v55 }
 0x123   : > { %v1205_v59 = vadd.f32 %v1192_v37, %v1056_v62  ;;  %v1872_v4 = vpop.f32.mrf.mxu0 }
 0x124   : > { %v2285_v1 = vpop.f32.mrf.mxu1 }
 0x125   : > { %v3792_v60 = vadd.f32 %v1389_v39, %v1205_v59  ;;  %2309 = vst [vmem:[%s3788_s15 + $0x13] sm:$0xff] %v2285_v1 }
 0x126   : > { %v896_v61 = vpop.f32.mrf.mxu2 }
 0x127   : > { %v1045_v63 = vpop.f32.mrf.mxu3  ;;  %v908_v0 = vadd.f32 %v896_v61, %v3735_v25 }
 0x129   : > { %v1057_v2 = vadd.f32 %v1045_v63, %v908_v0 }
 0x12b   : > { %v1206_v5 = vadd.f32 %v1194_v47, %v1057_v2  ;;  %v1875_v14 = vpop.f32.mrf.mxu0  ;;  %v2153_v47 = vld [vmem:[%s3657_s26 + $0x4] sm:$0xe] }
 0x12c   : > { %v2288_v8 = vpop.f32.mrf.mxu1 }
 0x12d   : > { %v3796_v31 = vadd.f32 %v1391_v50, %v1206_v5  ;;  %2310 = vst [vmem:[%s3788_s15 + $0x1b] sm:$0xff] %v2288_v8 }
 0x12e   : > { %v1534_v9 = vpop.f32.mrf.mxu2 }
 0x12f   : > { %v1698_v6 = vpop.f32.mrf.mxu3  ;;  %v1559_v7 = vadd.f32 %v1534_v9, %v3753_v54 }
 0x131   : > { %v1723_v10 = vadd.f32 %v1698_v6, %v1559_v7 }
 0x133   : > { %v1895_v25 = vadd.f32 %v1870_v56, %v1723_v10  ;;  %v1877_v30 = vpop.f32.mrf.mxu0 }
 0x134   : > { %v2290_v22 = vpop.f32.mrf.mxu1 }
 0x135   : > { %v1909_v15 = vmul.f32 %v3803_v12, %v1895_v25  ;;  %2311 = vst [vmem:[%s3788_s15 + $0x23] sm:$0xff] %v2290_v22 }
 0x136   : > { %v1536_v18 = vpop.f32.mrf.mxu2 }
 0x137   : > { %v1700_v54 = vpop.f32.mrf.mxu3  ;;  %v1560_v20 = vadd.f32 %v1536_v18, %v3761_v3  ;;  %v1923_v21 = vadd.f32 %v3808_v13, %v1909_v15 }
 0x139   : > { %v1724_v23 = vadd.f32 %v1700_v54, %v1560_v20  ;;  %v1933_v24 = vmax.f32 %v1923_v21, 0.0  ;;  %v1971_v21 = vpop.permute.xlu1 %1970 }
 0x13b   : > { %v1896_v26 = vadd.f32 %v1872_v4, %v1724_v23  ;;  %v2003_v27 = vmul.f32 %v1956_v17, %v1933_v24  ;;  %v1880_v59 = vpop.f32.mrf.mxu0 }
 0x13c   : > { %v2293_v39 = vpop.f32.mrf.mxu1 }
 0x13d   : > { %v1910_v28 = vmul.f32 %v3803_v12, %v1896_v26  ;;  %v2027_v29 = vpack.c.bf16 %v2003_v27, %v2003_v27  ;;  %2312 = vst [vmem:[%s3788_s15 + $0x2b] sm:$0xff] %v2293_v39 }
 0x13e   : > { %v1539_v32 = vpop.f32.mrf.mxu2 }
 0x13f   : > { %v1703_v33 = vpop.f32.mrf.mxu3  ;;  %v2041_v35 = vshrl.u32 %v2027_v29, 16  ;;  %v2044_v3 = vshll.u32 %v2027_v29, 16  ;;  %v1561_v36 = vadd.f32 %v1539_v32, %v3764_v11  ;;  %v1924_v37 = vadd.f32 %v3808_v13, %v1910_v28 }
 0x141   : > { %v2043_v41 = vrot.slane %v2041_v35, 6  ;;  %v2046_v19 = vrot.slane %v2044_v3, 7  ;;  %v1725_v42 = vadd.f32 %v1703_v33, %v1561_v36  ;;  %v1934_v44 = vmax.f32 %v1924_v37, 0.0  ;;  %v1976_v3 = vpop.permute.xlu2 %1975 }
 0x143   : > { %v2047_v48 = vor.u32 %v2046_v19, %v2043_v41  ;;  %v1897_v49 = vadd.f32 %v1875_v14, %v1725_v42  ;;  %v2004_v34 = vmul.f32 %v1961_v40, %v1934_v44  ;;  %v1882_v27 = vpop.f32.mrf.mxu0 }
 0x144   : > { %v2295_v61 = vpop.f32.mrf.mxu1 }
 0x145   : > { %v2154_v50 = vsel %vm2152_vm5, %v2047_v48, %v2153_v47  ;;  %v1911_v11 = vmul.f32 %v3803_v12, %v1897_v49  ;;  %v2028_v51 = vpack.c.bf16 %v2004_v34, %v2004_v34  ;;  %2313 = vst [vmem:[%s3788_s15 + $0x33] sm:$0xff] %v2295_v61  ;;  %v2048_v5 = vrot.slane %v2047_v48, 4 }
 0x146   : > { %2155 = vst [vmem:[%s3657_s26 + $0x4] sm:$0xe] %v2154_v50  ;;  %v1541_v46 = vpop.f32.mrf.mxu2 }
 0x147   : > { %v1705_v16 = vpop.f32.mrf.mxu3  ;;  %v2050_v55 = vshrl.u32 %v2028_v51, 16  ;;  %v2053_v56 = vshll.u32 %v2028_v51, 16  ;;  %v1562_v57 = vadd.f32 %v1541_v46, %v3770_v43  ;;  %v1925_v62 = vadd.f32 %v3808_v13, %v1911_v11 }
 0x149   : > { %v2052_v63 = vrot.slane %v2050_v55, 6  ;;  %v2055_v0 = vrot.slane %v2053_v56, 7  ;;  %v1726_v1 = vadd.f32 %v1705_v16, %v1562_v57  ;;  %v1935_v2 = vmax.f32 %v1925_v62, 0.0 }
 0x14b   : > { %v2056_v9 = vor.u32 %v2055_v0, %v2052_v63  ;;  %v1898_v6 = vadd.f32 %v1877_v30, %v1726_v1  ;;  %v2005_v43 = vmul.f32 %v1966_v52, %v1935_v2  ;;  %v1885_v52 = vpop.f32.mrf.mxu0  ;;  %v1981_v0 = vpop.permute.xlu2 %1980 }
 0x14c   : > { %v2298_v20 = vpop.f32.mrf.mxu1 }
 0x14d   : > { %v2057_v7 = vsel %vm3826_vm8, %v2048_v5, %v2056_v9  ;;  %v1912_v8 = vmul.f32 %v3803_v12, %v1898_v6  ;;  %v2029_v10 = vpack.c.bf16 %v2005_v43, %v2005_v43  ;;  %2314 = vst [vmem:[%s3788_s15 + $0x3b] sm:$0xff] %v2298_v20  ;;  %v2058_v28 = vrot.slane %v2056_v9, 4 }
 0x14e   : > { %2156 = vst [vmem:[%s3657_s26 + $0x8] sm:$0xf] %v2057_v7  ;;  %v1544_v25 = vpop.f32.mrf.mxu2 }
 0x14f   : > { %v1708_v14 = vpop.f32.mrf.mxu3  ;;  %v2060_v15 = vshrl.u32 %v2029_v10, 16  ;;  %v2063_v17 = vshll.u32 %v2029_v10, 16  ;;  %v1563_v18 = vadd.f32 %v1544_v25, %v3773_v58  ;;  %v1926_v54 = vadd.f32 %v3808_v13, %v1912_v8 }
 0x151   : > { %v2062_v22 = vrot.slane %v2060_v15, 6  ;;  %v2065_v23 = vrot.slane %v2063_v17, 7  ;;  %v1727_v24 = vadd.f32 %v1708_v14, %v1563_v18  ;;  %v1936_v26 = vmax.f32 %v1926_v54, 0.0 }
 0x153   : > { %v2066_v29 = vor.u32 %v2065_v23, %v2062_v22  ;;  %v1899_v30 = vadd.f32 %v1880_v59, %v1727_v24  ;;  %v2006_v32 = vmul.f32 %v1971_v21, %v1936_v26  ;;  %v1887_v14 = vpop.f32.mrf.mxu0 }
 0x154   : > { %v2300_v42 = vpop.f32.mrf.mxu1 }
 0x155   : > { %v2067_v33 = vsel %vm3826_vm8, %v2058_v28, %v2066_v29  ;;  %v1913_v58 = vmul.f32 %v3803_v12, %v1899_v30  ;;  %v2030_v35 = vpack.c.bf16 %v2006_v32, %v2006_v32  ;;  %2315 = vst [vmem:[%s3788_s15 + $0x43] sm:$0xff] %v2300_v42  ;;  %v2068_v34 = vrot.slane %v2066_v29, 4  ;;  %v1986_v28 = vpop.permute.xlu0 %1985  ;;  %v1991_v42 = vpop.permute.xlu1 %1990 }
 0x156   : > { %2157 = vst [vmem:[%s3657_s26 + $0xc] sm:$0xf] %v2067_v33  ;;  %v1546_v36 = vpop.f32.mrf.mxu2 }
 0x157   : > { %v1710_v37 = vpop.f32.mrf.mxu3  ;;  %v2070_v39 = vshrl.u32 %v2030_v35, 16  ;;  %v2073_v40 = vshll.u32 %v2030_v35, 16  ;;  %v1564_v41 = vadd.f32 %v1546_v36, %v3776_v38  ;;  %v1927_v19 = vadd.f32 %v3808_v13, %v1913_v58 }
 0x159   : > { %v2072_v44 = vrot.slane %v2070_v39, 6  ;;  %v2075_v47 = vrot.slane %v2073_v40, 7  ;;  %v1728_v48 = vadd.f32 %v1710_v37, %v1564_v41  ;;  %v1937_v49 = vmax.f32 %v1927_v19, 0.0 }
 0x15b   : > { %v2076_v50 = vor.u32 %v2075_v47, %v2072_v44  ;;  %v1900_v11 = vadd.f32 %v1882_v27, %v1728_v48  ;;  %v2007_v51 = vmul.f32 %v1976_v3, %v1937_v49  ;;  %v1890_v19 = vpop.f32.mrf.mxu0 }
 0x15c   : > { %v2303_v63 = vpop.f32.mrf.mxu1 }
 0x15d   : > { %v2077_v46 = vsel %vm3826_vm8, %v2068_v34, %v2076_v50  ;;  %v1914_v38 = vmul.f32 %v3803_v12, %v1900_v11  ;;  %v2031_v16 = vpack.c.bf16 %v2007_v51, %v2007_v51  ;;  %2316 = vst [vmem:[%s3788_s15 + $0x4b] sm:$0xff] %v2303_v63  ;;  %v2078_v6 = vrot.slane %v2076_v50, 4 }
 0x15e   : > { %2158 = vst [vmem:[%s3657_s26 + $0x10] sm:$0xf] %v2077_v46  ;;  %v1549_v55 = vpop.f32.mrf.mxu2 }
 0x15f   : > { %v1713_v56 = vpop.f32.mrf.mxu3  ;;  %v2080_v57 = vshrl.u32 %v2031_v16, 16  ;;  %v2083_v62 = vshll.u32 %v2031_v16, 16  ;;  %v1565_v59 = vadd.f32 %v1549_v55, %v3779_v45  ;;  %v1928_v61 = vadd.f32 %v3808_v13, %v1914_v38 }
 0x161   : > { %v2082_v1 = vrot.slane %v2080_v57, 6  ;;  %v2085_v2 = vrot.slane %v2083_v62, 7  ;;  %v1729_v5 = vadd.f32 %v1713_v56, %v1565_v59  ;;  %v1938_v9 = vmax.f32 %v1928_v61, 0.0 }
 0x163   : > { %v2086_v43 = vor.u32 %v2085_v2, %v2082_v1  ;;  %v1901_v7 = vadd.f32 %v1885_v52, %v1729_v5  ;;  %v2008_v8 = vmul.f32 %v1981_v0, %v1938_v9  ;;  %v1996_v1 = vpop.permute.xlu2 %1995  ;;  %v1892_v2 = vpop.f32.mrf.mxu0 }
 0x164   : > { %v2305_v22 = vpop.f32.mrf.mxu1 }
 0x165   : > { %v2087_v10 = vsel %vm3826_vm8, %v2078_v6, %v2086_v43  ;;  %v1915_v45 = vmul.f32 %v3803_v12, %v1901_v7  ;;  %v2032_v25 = vpack.c.bf16 %v2008_v8, %v2008_v8  ;;  %2317 = vst [vmem:[%s3788_s15 + $0x53] sm:$0xff] %v2305_v22  ;;  %v2088_v29 = vrot.slane %v2086_v43, 4 }
 0x166   : > { %2159 = vst [vmem:[%s3657_s26 + $0x14] sm:$0xf] %v2087_v10  ;;  %v1551_v15 = vpop.f32.mrf.mxu2 }
 0x167   : > { %v1715_v17 = vpop.f32.mrf.mxu3  ;;  %v2090_v18 = vshrl.u32 %v2032_v25, 16  ;;  %v2093_v54 = vshll.u32 %v2032_v25, 16  ;;  %v1929_v20 = vadd.f32 %v3808_v13, %v1915_v45  ;;  %v1566_v21 = vadd.f32 %v1551_v15, %v3783_v53 }
 0x169   : > { %v2092_v23 = vrot.slane %v2090_v18, 6  ;;  %v2095_v24 = vrot.slane %v2093_v54, 7  ;;  %v1939_v26 = vmax.f32 %v1929_v20, 0.0  ;;  %v1730_v27 = vadd.f32 %v1715_v17, %v1566_v21  ;;  %v2001_v18 = vpop.permute.xlu0 %2000 }
 0x16b   : > { %v2096_v30 = vor.u32 %v2095_v24, %v2092_v23  ;;  %v2009_v32 = vmul.f32 %v1986_v28, %v1939_v26  ;;  %v1902_v33 = vadd.f32 %v1887_v14, %v1730_v27 }
 0x16d   : > { %v2097_v58 = vsel %vm3826_vm8, %v2088_v29, %v2096_v30  ;;  %v2033_v35 = vpack.c.bf16 %v2009_v32, %v2009_v32  ;;  %v1916_v3 = vmul.f32 %v3803_v12, %v1902_v33  ;;  %v2098_v34 = vrot.slane %v2096_v30, 4  ;;  %v2167_v29 = vld [vmem:[%s3657_s26 + $0x2c] sm:$0x3] }
 0x16e   : > { %2160 = vst [vmem:[%s3657_s26 + $0x18] sm:$0xf] %v2097_v58  ;;  %v1554_v36 = vpop.f32.mrf.mxu2 }
 0x16f   : > { %v1718_v53 = vpop.f32.mrf.mxu3  ;;  %v2100_v37 = vshrl.u32 %v2033_v35, 16  ;;  %v2103_v39 = vshll.u32 %v2033_v35, 16  ;;  %v1567_v40 = vadd.f32 %v1554_v36, %v3792_v60  ;;  %v1930_v41 = vadd.f32 %v3808_v13, %v1916_v3 }
 0x171   : > { %v2102_v44 = vrot.slane %v2100_v37, 6  ;;  %v2105_v47 = vrot.slane %v2103_v39, 7  ;;  %v1731_v48 = vadd.f32 %v1718_v53, %v1567_v40  ;;  %v1940_v49 = vmax.f32 %v1930_v41, 0.0 }
 0x173   : > { %v2106_v50 = vor.u32 %v2105_v47, %v2102_v44  ;;  %v1903_v11 = vadd.f32 %v1890_v19, %v1731_v48  ;;  %v2010_v51 = vmul.f32 %v1991_v42, %v1940_v49 }
 0x175   : > { %v2107_v52 = vsel %vm3826_vm8, %v2098_v34, %v2106_v50  ;;  %v1917_v46 = vmul.f32 %v3803_v12, %v1903_v11  ;;  %v2034_v38 = vpack.c.bf16 %v2010_v51, %v2010_v51  ;;  %v2108_v5 = vrot.slane %v2106_v50, 4 }
 0x176   : > { %2161 = vst [vmem:[%s3657_s26 + $0x1c] sm:$0xf] %v2107_v52  ;;  %v1556_v60 = vpop.f32.mrf.mxu2 }
 0x177   : > { %v1931_v16 = vadd.f32 %v3808_v13, %v1917_v46  ;;  %v2110_v55 = vshrl.u32 %v2034_v38, 16  ;;  %v2113_v56 = vshll.u32 %v2034_v38, 16  ;;  %v1568_v57 = vadd.f32 %v1556_v60, %v3796_v31  ;;  %v1720_v62 = vpop.f32.mrf.mxu3 }
 0x179   : > { %v1941_v59 = vmax.f32 %v1931_v16, 0.0  ;;  %v2112_v61 = vrot.slane %v2110_v55, 6  ;;  %v2115_v63 = vrot.slane %v2113_v56, 7  ;;  %v1732_v0 = vadd.f32 %v1720_v62, %v1568_v57 }
 0x17b   : > { %v2011_v9 = vmul.f32 %v1996_v1, %v1941_v59  ;;  %v2116_v6 = vor.u32 %v2115_v63, %v2112_v61  ;;  %v1904_v43 = vadd.f32 %v1892_v2, %v1732_v0 }
 0x17d   : > { %v2035_v7 = vpack.c.bf16 %v2011_v9, %v2011_v9  ;;  %v2117_v8 = vsel %vm3826_vm8, %v2108_v5, %v2116_v6  ;;  %v1918_v10 = vmul.f32 %v3803_v12, %v1904_v43  ;;  %v2118_v20 = vrot.slane %v2116_v6, 4 }
 0x17e   : > { %2162 = vst [vmem:[%s3657_s26 + $0x20] sm:$0xf] %v2117_v8 }
 0x17f   : > { %v2120_v31 = vshrl.u32 %v2035_v7, 16  ;;  %v2123_v45 = vshll.u32 %v2035_v7, 16  ;;  %v1932_v25 = vadd.f32 %v3808_v13, %v1918_v10 }
 0x181   : > { %v2122_v14 = vrot.slane %v2120_v31, 6  ;;  %v2125_v15 = vrot.slane %v2123_v45, 7  ;;  %v1942_v17 = vmax.f32 %v1932_v25, 0.0 }
 0x183   : > { %v2126_v54 = vor.u32 %v2125_v15, %v2122_v14  ;;  %v2012_v21 = vmul.f32 %v2001_v18, %v1942_v17 }
 0x185   : > { %v2127_v22 = vsel %vm3826_vm8, %v2118_v20, %v2126_v54  ;;  %v2036_v23 = vpack.c.bf16 %v2012_v21, %v2012_v21  ;;  %v2128_v13 = vrot.slane %v2126_v54, 4 }
 0x186   : > { %2163 = vst [vmem:[%s3657_s26 + $0x24] sm:$0xf] %v2127_v22 }
 0x187   : > { %v2130_v12 = vshrl.u32 %v2036_v23, 16  ;;  %v2133_v24 = vshll.u32 %v2036_v23, 16 }
 0x189   : > { %v2132_v26 = vrot.slane %v2130_v12, 6  ;;  %v2135_v27 = vrot.slane %v2133_v24, 7 }
 0x18b   : > { %v2136_v28 = vor.u32 %v2135_v27, %v2132_v26 }
 0x18d   : > { %v2137_v30 = vsel %vm3826_vm8, %v2128_v13, %v2136_v28  ;;  %v2138_v32 = vrot.slane %v2136_v28, 4 }
 0x18e   : > { %2164 = vst [vmem:[%s3657_s26 + $0x28] sm:$0xf] %v2137_v30 }
 0x18f   : > { %v2168_v33 = vsel %vm2166_vm10, %v2138_v32, %v2167_v29 }
 0x190   : > { %2169 = vst [vmem:[%s3657_s26 + $0x2c] sm:$0x3] %v2168_v33 }
 0x191 PF: > { %s21_s13 = sadd.s32 1, %s3247_s13  }
 0x192   : > { %p18_p4 = scmp.ge.s32.totalorder %s21_s13, 4  }
 0x194   :  { %20 = sbr.rel (!%p18_p4) target bundleno = 1 (0x1), region = 115 }

// kernel: resnet_layer_pallas.7
= control target key start
LH: loop header
LB: loop body
LE: loop exit
PB: predicated region body
PF: predicated region fallthrough
CT: control target
= control target key end

     0   :  { %s2365_s18 = smov 0   ;;  %s2900_s0 = inlined_call_operand.vmem [shape: bf16[2,110,128], index: 0, kind: input, shape index: {}]   ;;  %s2901_s1 = inlined_call_operand.vmem [shape: bf16[9,128,128], index: 1, kind: input, shape index: {}]   ;;  %s2902_s2 = inlined_call_operand.vmem [shape: f32[1,128], index: 2, kind: input, shape index: {}]   ;;  %s2903_s3 = inlined_call_operand.vmem [shape: f32[1,128], index: 3, kind: input, shape index: {}]   ;;  %s2904_s4 = inlined_call_operand.vmem [shape: f32[2,110,128], index: 4, kind: input, shape index: {}]   ;;  %s2905_s5 = inlined_call_operand.vmem [shape: f32[2,80,128], index: 5, kind: output, shape index: {}]  }
   0x1 LB: > { %s1733_s19 = sadd.s32 4294967295, %s2333_s18   ;;  %p1737_p0 = scmp.ge.s32.totalorder %s2333_s18, 1  ;;  %s2333_s18 = sphi %s2365_s18, %s15_s18  }
   0x2   : > { %p197_p1 = scmp.lt.s32.totalorder %s2333_s18, 3 }
   0x4   : > { %p198_p2 = pnand %p1737_p0, %p197_p1 }
   0x5   : > { %p230_p3 = scmp.lt.s32.totalorder (!%p198_p2), %s1733_s19, 1 }
   0x6   : > { %201 = sbr.rel (%p198_p2) target bundleno = 377 (0x179), region = 40 }
   0xb   : > { %v2226_v0 = vld [vmem:[%s2901_s1 + $0x78] sm:$0xff]  ;;  %v2225_v1 = vld [vmem:[%s2901_s1 + $0x70] sm:$0xff]  ;;  %s2907_s19 = smov (!%p230_p3, %s1733_s19), 1  ;;  %v2224_v4 = vld [vmem:[%s2901_s1 + $0x68] sm:$0xff]  ;;  %vm317_vm0 = vsmask.f32 7424 }
   0xc   : > { %415 = vmatpush.bf16.msra.mxu0 %v2226_v0  ;;  %2298 = vmatpush.bf16.msra.mxu1 %v2226_v0  ;;  %v2246_v2 = vld [vmem:[%s2901_s1 + $0xf8] sm:$0xff]  ;;  %v2245_v3 = vld [vmem:[%s2901_s1 + $0xf0] sm:$0xff]  ;;  %s2314_s30 = smul.u32 56, %s2907_s19  ;;  %v2244_v5 = vld [vmem:[%s2901_s1 + $0xe8] sm:$0xff]  ;;  %vm557_vm1 = vcmask 1046528   ;;  %vm1023_vm4 = vcmask 1045504  }
   0xd   : > { %2299 = vmatpush.bf16.msra.mxu2 %v2226_v0  ;;  %786 = vmatpush.bf16.msra.mxu3 %v2246_v2  ;;  %v2223_v6 = vld [vmem:[%s2901_s1 + $0x60] sm:$0xff]  ;;  %v2222_v9 = vld [vmem:[%s2901_s1 + $0x58] sm:$0xff]  ;;  %v2221_v17 = vld [vmem:[%s2901_s1 + $0x50] sm:$0xff]  ;;  %vm851_vm2 = vsmask.f32 6400  ;;  %vm1489_vm5 = vcmask 1044480  }
   0xe   : > { %s2400_s12 = scalar_lea.vmem %s2900_s0, %s2314_s30  ;;  %v2243_v7 = vld [vmem:[%s2901_s1 + $0xe0] sm:$0xff]  ;;  %v2242_v14 = vld [vmem:[%s2901_s1 + $0xd8] sm:$0xff]  ;;  %v2241_v24 = vld [vmem:[%s2901_s1 + $0xd0] sm:$0xff]  ;;  %vm1317_vm3 = vsmask.f32 5376  ;;  %s2316_s20 = smul.u32 80, %s2907_s19 }
   0xf   : > { %v271_v8 = vld [vmem:[%s2400_s12 + $0x28] sm:$0x1]  ;;  %v2410_v10 = vld [vmem:[%s2400_s12] sm:$0xff]   ;;  %v2413_v11 = vld [vmem:[%s2400_s12 + $0x10] sm:$0xff] }
  0x10   : > { %416 = vmatpush.bf16.msra.mxu0 %v2225_v1  ;;  %2300 = vmatpush.bf16.msra.mxu1 %v2225_v1  ;;  %v2416_v12 = vld [vmem:[%s2400_s12 + $0x20] sm:$0xff]  ;;  %v310_v13 = vunpack.c.l.b16 %v271_v8  ;;  %v2422_v15 = vld [vmem:[%s2400_s12 + $0x8] sm:$0xff]  ;;  %v321_v16 = vshll.u32 %v2410_v10, 16  ;;  %v2429_v18 = vld [vmem:[%s2400_s12 + $0x18] sm:$0xff]  ;;  %v334_v19 = vshll.u32 %v2413_v11, 16  ;;  %v319_v25 = vshrl.u32 %v2410_v10, 16  ;;  %s2850_s23 = scalar_lea.vmem %s2905_s5, %s2316_s20 }
  0x11   : > { %2301 = vmatpush.bf16.msra.mxu2 %v2225_v1  ;;  %787 = vmatpush.bf16.msra.mxu3 %v2245_v3  ;;  %v350_v21 = vshll.u32 %v2416_v12, 16  ;;  %v666_v22 = vld [vmem:[%s2400_s12 + $0x4] sm:$0xe]  ;;  %v2437_v23 = vld [vmem:[%s2400_s12 + $0x8] sm:$0xff]   ;;  %v326_v27 = vshll.u32 %v2422_v15, 16  ;;  %v338_v28 = vshrl.u32 %v2413_v11, 16 }
  0x12   : > { %v2432_v20 = vpack.c.b16 %v310_v13, %v310_v13  ;;  %v323_v26 = vrot.slane %v321_v16, 1  ;;  %v2220_v29 = vld [vmem:[%s2901_s1 + $0x48] sm:$0xff]  ;;  %v2448_v30 = vrot.slane %v334_v19, 1  ;;  %v342_v31 = vshll.u32 %v2429_v18, 16  ;;  %v2219_v39 = vld [vmem:[%s2901_s1 + $0x40] sm:$0xff]  ;;  %v2218_v45 = vld [vmem:[%s2901_s1 + $0x38] sm:$0xff] }
  0x13   : > { %v705_v32 = vunpack.c.l.b16 %v666_v22  ;;  %v706_v33 = vunpack.c.l.b16 %v2437_v23  ;;  %v2452_v34 = vrot.slane %v350_v21, 1  ;;  %v354_v35 = vshrl.u32 %v2416_v12, 16  ;;  %v2240_v37 = vld [vmem:[%s2901_s1 + $0xc8] sm:$0xff]  ;;  %v2234_v48 = vld [vmem:[%s2901_s1 + $0xb8] sm:$0xff]  ;;  %v2239_v52 = vld [vmem:[%s2901_s1 + $0xc0] sm:$0xff] }
  0x14   : > { %417 = vmatpush.bf16.msra.mxu0 %v2224_v4  ;;  %2302 = vmatpush.bf16.msra.mxu1 %v2224_v4  ;;  %v358_v36 = vshll.u32 %v2432_v20, 16  ;;  %v328_v38 = vrot.slane %v326_v27, 1  ;;  %v324_v40 = vor.u32 %v323_v26, %v319_v25  ;;  %v340_v41 = vor.u32 %v338_v28, %v2448_v30  ;;  %v2464_v43 = vld [vmem:[%s2400_s12 + $0xc] sm:$0xff]  ;;  %v2254_v49 = vld [vmem:[%s2901_s1 + $0x138] sm:$0xff]  ;;  %v2215_v3 = vld [vmem:[%s2901_s1 + $0x20] sm:$0xff] }
  0x15   : > { %2303 = vmatpush.bf16.msra.mxu2 %v2224_v4  ;;  %788 = vmatpush.bf16.msra.mxu3 %v2244_v5  ;;  %v344_v42 = vrot.slane %v342_v31, 1  ;;  %v2468_v44 = vpack.c.b16 %v706_v33, %v705_v32  ;;  %v356_v46 = vor.u32 %v354_v35, %v2452_v34  ;;  %v723_v54 = vrot.slane %v2464_v43, 1  ;;  %v2217_v56 = vld [vmem:[%s2901_s1 + $0x30] sm:$0xff]  ;;  %v2282_v57 = vld [vmem:[%s2901_s1 + $0x1f8] sm:$0xff]  ;;  %v2216_v61 = vld [vmem:[%s2901_s1 + $0x28] sm:$0xff] }
  0x16   : > { %v360_v47 = vrot.slane %v358_v36, 1  ;;  %v329_v50 = vsel %vm317_vm0, %v324_v40, %v328_v38  ;;  %v2233_v58 = vld [vmem:[%s2901_s1 + $0xb0] sm:$0xff]  ;;  %v2232_v63 = vld [vmem:[%s2901_s1 + $0xa8] sm:$0xff]  ;;  %v330_v1 = vshrl.u32 %v2422_v15, 16  ;;  %v346_v2 = vshrl.u32 %v2429_v18, 16  ;;  %v2231_v4 = vld [vmem:[%s2901_s1 + $0xa0] sm:$0xff] }
  0x17   : > { %v345_v51 = vsel %vm317_vm0, %v340_v41, %v344_v42  ;;  %v722_v53 = vrot.slane %v2468_v44, 1  ;;  %v2253_v59 = vld [vmem:[%s2901_s1 + $0x130] sm:$0xff]  ;;  %v2252_v0 = vld [vmem:[%s2901_s1 + $0x128] sm:$0xff]  ;;  %v2251_v5 = vld [vmem:[%s2901_s1 + $0x120] sm:$0xff]  ;;  %v853_v27 = vshrl.u32 %v2468_v44, 16  ;;  %v864_v31 = vshll.u32 %v2464_v43, 16 }
  0x18   : > { %418 = vmatpush.bf16.msra.mxu0 %v2223_v6  ;;  %2304 = vmatpush.bf16.msra.mxu1 %v2223_v6  ;;  %v361_v55 = vsel %vm317_vm0, %v356_v46, %v360_v47  ;;  %v2281_v62 = vld [vmem:[%s2901_s1 + $0x1f0] sm:$0xff]  ;;  %v2230_v13 = vld [vmem:[%s2901_s1 + $0x98] sm:$0xff]  ;;  %v2295_v25 = vld [vmem:[%s2400_s12] sm:$0xf0]  ;;  %v559_v46 = vrot.slane %v2422_v15, 1 }
  0x19   : > { %2305 = vmatpush.bf16.msra.mxu2 %v2223_v6  ;;  %789 = vmatpush.bf16.msra.mxu3 %v2243_v7  ;;  %v724_v60 = vsel %vm557_vm1, %v722_v53, %v723_v54  ;;  %v332_v6 = vor.u32 %v330_v1, %v328_v38  ;;  %v348_v7 = vor.u32 %v346_v2, %v344_v42  ;;  %v2525_v8 = vld [vmem:[%s2400_s12 + $0x14] sm:$0xff]  ;;  %v2296_v26 = vld [vmem:[%s2400_s12] sm:$0xe]  ;;  %v2280_v28 = vld [vmem:[%s2901_s1 + $0x1e8] sm:$0xff]  ;;  %v855_v38 = vrot.slane %v853_v27, 1 }
  0x1a   : > { %v725_v19 = vrot.slane %v2525_v8, 1  ;;  %v2213_v21 = vld [vmem:[%s2901_s1 + $0x10] sm:$0xff]  ;;  %v2228_v35 = vld [vmem:[%s2901_s1 + $0x88] sm:$0xff]  ;;  %v866_v41 = vrot.slane %v864_v31, 2  ;;  %v2211_v42 = vld [vmem:[%s2901_s1] sm:$0xff] }
  0x1b   : > { %v337_v16 = vsel %vm317_vm0, %v332_v6, %v2448_v30  ;;  %v2229_v22 = vld [vmem:[%s2901_s1 + $0x90] sm:$0xff]  ;;  %v861_v30 = vshrl.u32 %v2464_v43, 16  ;;  %v2248_v36 = vld [vmem:[%s2901_s1 + $0x108] sm:$0xff]  ;;  %v2247_v47 = vld [vmem:[%s2901_s1 + $0x100] sm:$0xff] }
  0x1c   : > { %419 = vmatpush.bf16.msra.mxu0 %v2222_v9  ;;  %2306 = vmatpush.bf16.msra.mxu1 %v2222_v9  ;;  %v726_v32 = vsel %vm557_vm1, %v723_v54, %v725_v19  ;;  %v2591_v53 = vld [vmem:[%s2400_s12 + $0x1c] sm:$0xff]  ;;  %v2257_v27 = vld [vmem:[%s2901_s1 + $0x150] sm:$0xff] }
  0x1d   : > { %2307 = vmatpush.bf16.msra.mxu2 %v2222_v9  ;;  %790 = vmatpush.bf16.msra.mxu3 %v2242_v14  ;;  %v2214_v9 = vld [vmem:[%s2901_s1 + $0x18] sm:$0xff]  ;;  %v863_v40 = vrot.slane %v861_v30, 1  ;;  %v2259_v6 = vld [vmem:[%s2901_s1 + $0x160] sm:$0xff]  ;;  %v2285_v31 = vld [vmem:[%s2901_s1 + $0x210] sm:$0xff] }
  0x1e   : > { %v2250_v14 = vld [vmem:[%s2901_s1 + $0x118] sm:$0xff] }
  0x1f   : > { %v2278_v2 = vld [vmem:[%s2901_s1 + $0x1d8] sm:$0xff] }
  0x20   : > { %420 = vmatpush.bf16.msra.mxu0 %v2221_v17  ;;  %2308 = vmatpush.bf16.msra.mxu1 %v2221_v17 }
  0x21   : > { %2309 = vmatpush.bf16.msra.mxu2 %v2221_v17  ;;  %791 = vmatpush.bf16.msra.mxu3 %v2241_v24  ;;  %v353_v17 = vsel %vm317_vm0, %v348_v7, %v2452_v34  ;;  %v2249_v24 = vld [vmem:[%s2901_s1 + $0x110] sm:$0xff]  ;;  %v2212_v34 = vld [vmem:[%s2901_s1 + $0x8] sm:$0xff]  ;;  %v2287_v7 = vld [vmem:[%s2901_s1 + $0x220] sm:$0xff] }
  0x24   : > { %421 = vmatpush.bf16.msra.mxu0 %v2220_v29  ;;  %2310 = vmatpush.bf16.msra.mxu1 %v2220_v29 }
  0x25   : > { %2311 = vmatpush.bf16.msra.mxu2 %v2220_v29  ;;  %792 = vmatpush.bf16.msra.mxu3 %v2240_v37  ;;  %v856_v29 = vshll.u32 %v2468_v44, 16  ;;  %v2297_v37 = vor.u32 %v2296_v26, %v2295_v25  ;;  %v2227_v44 = vld [vmem:[%s2901_s1 + $0x80] sm:$0xff]  ;;  %v2286_v25 = vld [vmem:[%s2901_s1 + $0x218] sm:$0xff]  ;;  %v2277_v26 = vld [vmem:[%s2901_s1 + $0x1d0] sm:$0xff] }
  0x28   : > { %422 = vmatpush.bf16.msra.mxu0 %v2219_v39  ;;  %2312 = vmatpush.bf16.msra.mxu1 %v2219_v39 }
  0x29   : > { %2313 = vmatpush.bf16.msra.mxu2 %v2219_v39  ;;  %793 = vmatpush.bf16.msra.mxu3 %v2239_v52  ;;  %v858_v39 = vrot.slane %v856_v29, 2  ;;  %v2290_v52 = vld [vmem:[%s2901_s1 + $0x238] sm:$0xff]  ;;  %v882_v29 = vshll.u32 %v2591_v53, 16 }
  0x2b   : > { %423 = vmatmul.bf16.vlgmr.msra.gmra.mxu0 %v329_v50  ;;  %433 = vmatmul.bf16.vlgmr.msra.gmra.mxu1 %v345_v51  ;;  %v859_v50 = vor.u32 %v858_v39, %v855_v38  ;;  %v867_v51 = vor.u32 %v866_v41, %v863_v40  ;;  %v563_v38 = vrot.slane %v2429_v18, 1 }
  0x2c   : > { %502 = vmatpush.bf16.msrb.mxu1 %v2218_v45  ;;  %958 = vmatpush.bf16.msrb.mxu0 %v2254_v49  ;;  %v558_v45 = vrot.slane %v2297_v37, 1  ;;  %v2262_v49 = vld [vmem:[%s2901_s1 + $0x178] sm:$0xff] }
  0x2d   : > { %622 = vmatpush.bf16.msrb.mxu2 %v2234_v48  ;;  %1424 = vmatpush.bf16.msrb.mxu3 %v2282_v57  ;;  %v2274_v48 = vld [vmem:[%s2901_s1 + $0x1b8] sm:$0xff]  ;;  %v2261_v57 = vld [vmem:[%s2901_s1 + $0x170] sm:$0xff] }
  0x2e   : > { %443 = vmatmul.bf16.vlgmr.msra.gmra.mxu2 %v361_v55  ;;  %794 = vmatmul.bf16.vlgmr.msra.gmra.mxu3 %v724_v60  ;;  %v560_v54 = vsel %vm557_vm1, %v558_v45, %v559_v46  ;;  %v868_v55 = vsel %vm851_vm2, %v859_v50, %v867_v51  ;;  %v2279_v60 = vld [vmem:[%s2901_s1 + $0x1e0] sm:$0xff] }
  0x30   : > { %503 = vmatpush.bf16.msrb.mxu1 %v2217_v56  ;;  %959 = vmatpush.bf16.msrb.mxu0 %v2253_v59  ;;  %v2273_v56 = vld [vmem:[%s2901_s1 + $0x1b0] sm:$0xff] }
  0x31   : > { %623 = vmatpush.bf16.msrb.mxu2 %v2233_v58  ;;  %1425 = vmatpush.bf16.msrb.mxu3 %v2281_v62  ;;  %v727_v58 = vrot.slane %v2591_v53, 1  ;;  %v2289_v59 = vld [vmem:[%s2901_s1 + $0x230] sm:$0xff]  ;;  %v873_v62 = vshll.u32 %v2525_v8, 16 }
  0x33   : > { %v728_v1 = vsel %vm557_vm1, %v725_v19, %v727_v58 }
  0x34   : > { %504 = vmatpush.bf16.msrb.mxu1 %v2216_v61  ;;  %960 = vmatpush.bf16.msrb.mxu0 %v2252_v0  ;;  %v870_v61 = vshrl.u32 %v2525_v8, 16  ;;  %v2260_v0 = vld [vmem:[%s2901_s1 + $0x168] sm:$0xff] }
  0x35   : > { %624 = vmatpush.bf16.msrb.mxu2 %v2232_v63  ;;  %1426 = vmatpush.bf16.msrb.mxu3 %v2280_v28  ;;  %v2272_v63 = vld [vmem:[%s2901_s1 + $0x1a8] sm:$0xff]  ;;  %v879_v28 = vshrl.u32 %v2591_v53, 16 }
  0x38   : > { %505 = vmatpush.bf16.msrb.mxu1 %v2215_v3  ;;  %961 = vmatpush.bf16.msrb.mxu0 %v2251_v5  ;;  %v872_v3 = vrot.slane %v870_v61, 1  ;;  %v2271_v5 = vld [vmem:[%s2901_s1 + $0x1a0] sm:$0xff] }
  0x39   : > { %625 = vmatpush.bf16.msrb.mxu2 %v2231_v4  ;;  %1427 = vmatpush.bf16.msrb.mxu3 %v2279_v60  ;;  %v875_v4 = vrot.slane %v873_v62, 2  ;;  %v830_v60 = vld [vmem:[%s2400_s12 + $0x2c] sm:$0x3] }
  0x3b   : > { %428 = vmatmul.bf16.gmra.mxu0 %v337_v16  ;;  %438 = vmatmul.bf16.gmra.mxu1 %v353_v17  ;;  %v2640_v16 = vld [vmem:[%s2400_s12 + $0x24] sm:$0xff]  ;;  %v2258_v17 = vld [vmem:[%s2901_s1 + $0x158] sm:$0xff] }
  0x3c   : > { %506 = vmatpush.bf16.msrb.mxu1 %v2214_v9  ;;  %962 = vmatpush.bf16.msrb.mxu0 %v2250_v14  ;;  %v561_v9 = vrot.slane %v2413_v11, 1  ;;  %v2270_v14 = vld [vmem:[%s2901_s1 + $0x198] sm:$0xff]  ;;  %v891_v50 = vshll.u32 %v2640_v16, 16 }
  0x3d   : > { %626 = vmatpush.bf16.msrb.mxu2 %v2230_v13  ;;  %1428 = vmatpush.bf16.msrb.mxu3 %v2278_v2  ;;  %v876_v13 = vor.u32 %v875_v4, %v872_v3  ;;  %v849_v2 = vunpack.c.l.b16 %v830_v60 }
  0x3e   : > { %799 = vmatmul.bf16.gmra.mxu3 %v726_v32  ;;  %v562_v19 = vsel %vm557_vm1, %v559_v46, %v561_v9  ;;  %v676_v32 = vld [vmem:[%s2400_s12 + $0x2c] sm:$0x1]  ;;  %v564_v41 = vsel %vm557_vm1, %v561_v9, %v563_v38  ;;  %v2283_v9 = vld [vmem:[%s2901_s1 + $0x200] sm:$0xff] }
  0x3f   : > { %v715_v37 = vunpack.c.l.b16 %v676_v32 }
  0x40   : > { %507 = vmatpush.bf16.msrb.mxu1 %v2213_v21  ;;  %963 = vmatpush.bf16.msrb.mxu0 %v2249_v24  ;;  %v877_v21 = vsel %vm851_vm2, %v867_v51, %v876_v13  ;;  %v2269_v24 = vld [vmem:[%s2901_s1 + $0x190] sm:$0xff]  ;;  %v2267_v51 = vld [vmem:[%s2901_s1 + $0x180] sm:$0xff] }
  0x41   : > { %627 = vmatpush.bf16.msrb.mxu2 %v2229_v22  ;;  %v729_v22 = vrot.slane %v2640_v16, 1  ;;  %1429 = vmatpush.bf16.msrb.mxu3 %v2277_v26  ;;  %v721_v40 = vpack.c.b16 %v715_v37, %v715_v37  ;;  %v1468_v37 = vld [vmem:[%s2400_s12 + $0x8] sm:$0x8] }
  0x43   : > { %v730_v30 = vsel %vm557_vm1, %v727_v58, %v729_v22  ;;  %v731_v45 = vrot.slane %v721_v40, 1 }
  0x44   : > { %508 = vmatpush.bf16.msrb.mxu1 %v2212_v34  ;;  %964 = vmatpush.bf16.msrb.mxu0 %v2248_v36  ;;  %v2276_v34 = vld [vmem:[%s2901_s1 + $0x1c8] sm:$0xff]  ;;  %v884_v36 = vrot.slane %v882_v29, 2 }
  0x45   : > { %628 = vmatpush.bf16.msrb.mxu2 %v2228_v35  ;;  %v881_v35 = vrot.slane %v879_v28, 1  ;;  %1430 = vmatpush.bf16.msrb.mxu3 %v2276_v34 }
  0x47   : > { %v885_v39 = vor.u32 %v884_v36, %v881_v35  ;;  %v1002_v35 = vld [vmem:[%s2400_s12 + $0x4] sm:$0xc] }
  0x48   : > { %509 = vmatpush.bf16.msrb.mxu1 %v2211_v42  ;;  %965 = vmatpush.bf16.msrb.mxu0 %v2247_v47  ;;  %v1132_v42 = vld [vmem:[%s2400_s12 + $0x8] sm:$0xc]  ;;  %v1172_v47 = vunpack.c.h.b16 %v2437_v23 }
  0x49   : > { %629 = vmatpush.bf16.msrb.mxu2 %v2227_v44  ;;  %v886_v44 = vsel %vm851_vm2, %v876_v13, %v885_v39  ;;  %v1171_v46 = vunpack.c.l.b16 %v1132_v42 }
  0x4b   : > { %510 = vmatmul.bf16.vlgmr.msrb.gmra.mxu1 %v2410_v10  ;;  %966 = vmatmul.bf16.vlgmr.msrb.gmra.mxu0 %v868_v55  ;;  %v2288_v10 = vld [vmem:[%s2901_s1 + $0x228] sm:$0xff]  ;;  %v2255_v55 = vld [vmem:[%s2901_s1 + $0x140] sm:$0xff] }
  0x4c   : > { %1088 = vmatpush.bf16.msra.mxu1 %v2262_v49  ;;  %1554 = vmatpush.bf16.msra.mxu0 %v2290_v52  ;;  %v888_v49 = vshrl.u32 %v2640_v16, 16  ;;  %v2284_v52 = vld [vmem:[%s2901_s1 + $0x208] sm:$0xff] }
  0x4d   : > { %1252 = vmatpush.bf16.msra.mxu2 %v2274_v48  ;;  %v2256_v48 = vld [vmem:[%s2901_s1 + $0x148] sm:$0xff] }
  0x4e   : > { %630 = vmatmul.bf16.vlgmr.msrb.gmra.mxu2 %v560_v54  ;;  %804 = vmatmul.bf16.gmra.mxu3 %v728_v1  ;;  %v2275_v54 = vld [vmem:[%s2901_s1 + $0x1c0] sm:$0xff]  ;;  %v890_v58 = vrot.slane %v888_v49, 1  ;;  %v565_v1 = vrot.slane %v2416_v12, 1  ;;  %v1025_v49 = vrot.slane %v2464_v43, 2  ;;  %v2752_v43 = vld [vmem:[%s2400_s12 + $0x28] sm:$0xff] }
  0x4f   : > { %1431 = vmatpush.bf16.msrb.mxu3 %v2275_v54 }
  0x50   : > { %1089 = vmatpush.bf16.msra.mxu1 %v2261_v57  ;;  %1555 = vmatpush.bf16.msra.mxu0 %v2289_v59  ;;  %v2703_v57 = vpack.c.b16 %v1172_v47, %v1171_v46  ;;  %v893_v59 = vrot.slane %v891_v50, 2 }
  0x51   : > { %1253 = vmatpush.bf16.msra.mxu2 %v2273_v56  ;;  %v2699_v56 = vld [vmem:[%s2400_s12 + $0x10] sm:$0xff] }
  0x52   : > { %v1319_v61 = vshrl.u32 %v2703_v57, 16  ;;  %v1322_v62 = vshll.u32 %v2703_v57, 16  ;;  %v1189_v46 = vrot.slane %v2699_v56, 2 }
  0x54   : > { %1090 = vmatpush.bf16.msra.mxu1 %v2260_v0  ;;  %1556 = vmatpush.bf16.msra.mxu0 %v2288_v10  ;;  %v1330_v0 = vshll.u32 %v2699_v56, 16  ;;  %v894_v10 = vor.u32 %v893_v59, %v890_v58  ;;  %v1321_v3 = vrot.slane %v1319_v61, 2  ;;  %v1324_v4 = vrot.slane %v1322_v62, 3 }
  0x55   : > { %1254 = vmatpush.bf16.msra.mxu2 %v2272_v63  ;;  %v1327_v63 = vshrl.u32 %v2699_v56, 16  ;;  %v1027_v59 = vrot.slane %v2525_v8, 2 }
  0x56   : > { %v895_v13 = vsel %vm851_vm2, %v885_v39, %v894_v10  ;;  %v1487_v39 = vunpack.c.l.b16 %v1468_v37 }
  0x58   : > { %1091 = vmatpush.bf16.msra.mxu1 %v2259_v6  ;;  %1557 = vmatpush.bf16.msra.mxu0 %v2287_v7  ;;  %v1332_v6 = vrot.slane %v1330_v0, 3  ;;  %v566_v7 = vsel %vm557_vm1, %v563_v38, %v565_v1  ;;  %v1021_v38 = vunpack.c.l.b16 %v1002_v35  ;;  %v1488_v42 = vpack.c.b16 %v1172_v47, %v1487_v39  ;;  %v1296_v0 = vld [vmem:[%s2400_s12 + $0x30] sm:$0x7] }
  0x59   : > { %1255 = vmatpush.bf16.msra.mxu2 %v2271_v5  ;;  %v1329_v5 = vrot.slane %v1327_v63, 2  ;;  %v1031_v39 = vrot.slane %v2640_v16, 2 }
  0x5a   : > { %v1490_v50 = vrot.slane %v1488_v42, 3 }
  0x5b   : > { %515 = vmatmul.bf16.gmra.mxu1 %v2422_v15  ;;  %971 = vmatmul.bf16.gmra.mxu0 %v877_v21  ;;  %v2268_v15 = vld [vmem:[%s2901_s1 + $0x188] sm:$0xff] }
  0x5c   : > { %1092 = vmatpush.bf16.msra.mxu1 %v2258_v17  ;;  %1558 = vmatpush.bf16.msra.mxu0 %v2286_v25  ;;  %v1325_v17 = vor.u32 %v1324_v4, %v1321_v3  ;;  %v2723_v25 = vld [vmem:[%s2400_s12 + $0x18] sm:$0xff] }
  0x5d   : > { %1256 = vmatpush.bf16.msra.mxu2 %v2270_v14  ;;  %v2716_v14 = vpack.c.b16 %v849_v2, %v849_v2  ;;  %v1336_v28 = vshrl.u32 %v2723_v25, 16  ;;  %v1339_v29 = vshll.u32 %v2723_v25, 16  ;;  %v1191_v58 = vrot.slane %v2723_v25, 2 }
  0x5e   : > { %635 = vmatmul.bf16.gmra.mxu2 %v562_v19  ;;  %809 = vmatmul.bf16.gmra.mxu3 %v730_v30  ;;  %v1333_v19 = vor.u32 %v1332_v6, %v1329_v5  ;;  %v1493_v60 = vrot.slane %v2723_v25, 3  ;;  %v1028_v2 = vsel %vm1023_vm4, %v1025_v49, %v1027_v59  ;;  %v1315_v5 = vunpack.c.l.b16 %v1296_v0 }
  0x5f   : > { %v897_v21 = vshrl.u32 %v2716_v14, 16  ;;  %v1192_v63 = vsel %vm1023_vm4, %v1189_v46, %v1191_v58 }
  0x60   : > { %1093 = vmatpush.bf16.msra.mxu1 %v2257_v27  ;;  %1559 = vmatpush.bf16.msra.mxu0 %v2285_v31  ;;  %v1341_v31 = vrot.slane %v1339_v29, 3  ;;  %v2766_v6 = vpack.c.b16 %v1315_v5, %v1315_v5 }
  0x61   : > { %1257 = vmatpush.bf16.msra.mxu2 %v2269_v24  ;;  %v1334_v24 = vsel %vm1317_vm3, %v1325_v17, %v1333_v19  ;;  %v899_v26 = vrot.slane %v897_v21, 1 }
  0x62   : > { %v1366_v17 = vshll.u32 %v2766_v6, 16 }
  0x64   : > { %1094 = vmatpush.bf16.msra.mxu1 %v2256_v48  ;;  %1560 = vmatpush.bf16.msra.mxu0 %v2284_v52 }
  0x65   : > { %1258 = vmatpush.bf16.msra.mxu2 %v2268_v15  ;;  %v1338_v15 = vrot.slane %v1336_v28, 2 }
  0x67   : > { %v1342_v36 = vor.u32 %v1341_v31, %v1338_v15 }
  0x68   : > { %1095 = vmatpush.bf16.msra.mxu1 %v2255_v55  ;;  %1561 = vmatpush.bf16.msra.mxu0 %v2283_v9 }
  0x69   : > { %1259 = vmatpush.bf16.msra.mxu2 %v2267_v51  ;;  %v1343_v40 = vsel %vm1317_vm3, %v1333_v19, %v1342_v36 }
  0x6b   : > { %520 = vmatmul.bf16.gmra.mxu1 %v2413_v11  ;;  %976 = vmatmul.bf16.gmra.mxu0 %v886_v44  ;;  %v732_v11 = vsel %vm557_vm1, %v729_v22, %v731_v45  ;;  %v900_v22 = vshll.u32 %v2716_v14, 16 }
  0x6d   : > { %v902_v27 = vrot.slane %v900_v22, 2  ;;  %v1029_v22 = vrot.slane %v2591_v53, 2 }
  0x6e   : > { %640 = vmatmul.bf16.gmra.mxu2 %v564_v41  ;;  %814 = vmatmul.bf16.gmra.mxu3 %v732_v11  ;;  %v2735_v41 = vld [vmem:[%s2400_s12 + $0x20] sm:$0xff] }
  0x6f   : > { %v903_v30 = vor.u32 %v902_v27, %v899_v26  ;;  %v1345_v44 = vshrl.u32 %v2735_v41, 16  ;;  %v1348_v45 = vshll.u32 %v2735_v41, 16  ;;  %v1193_v19 = vrot.slane %v2735_v41, 2 }
  0x70   : > { %v1368_v26 = vrot.slane %v1366_v17, 3 }
  0x71   : > { %v904_v34 = vsel %vm851_vm2, %v894_v10, %v903_v30  ;;  %v1347_v51 = vrot.slane %v1345_v44, 2  ;;  %v1350_v52 = vrot.slane %v1348_v45, 3  ;;  %v1194_v27 = vsel %vm1023_vm4, %v1191_v58, %v1193_v19 }
  0x72   : > { %v1032_v45 = vsel %vm1023_vm4, %v1029_v22, %v1031_v39 }
  0x73   : > { %v1351_v11 = vor.u32 %v1350_v52, %v1347_v51 }
  0x75   : > { %v1352_v55 = vsel %vm1317_vm3, %v1342_v36, %v1351_v11  ;;  %v1195_v36 = vrot.slane %v2752_v43, 2 }
  0x7b   : > { %525 = vmatmul.bf16.gmra.mxu1 %v2429_v18  ;;  %981 = vmatmul.bf16.gmra.mxu0 %v895_v13  ;;  %v567_v18 = vrot.slane %v2432_v20, 1  ;;  %v1022_v20 = vpack.c.b16 %v706_v33, %v1021_v38  ;;  %v1491_v33 = vrot.slane %v2699_v56, 3  ;;  %v1354_v56 = vshrl.u32 %v2752_v43, 16 }
  0x7c   : > { %v1363_v13 = vshrl.u32 %v2766_v6, 16 }
  0x7d   : > { %v568_v32 = vsel %vm557_vm1, %v565_v1, %v567_v18  ;;  %v1024_v48 = vrot.slane %v1022_v20, 2  ;;  %v1492_v54 = vsel %vm1489_vm5, %v1490_v50, %v1491_v33  ;;  %v1356_v61 = vrot.slane %v1354_v56, 2  ;;  %v1142_v20 = vld [vmem:[%s2400_s12 + $0x30] sm:$0x3]  ;;  %s2315_s12 = smul.u32 112, %s2907_s19 }
  0x7e   : > { %645 = vmatmul.bf16.gmra.mxu2 %v566_v7  ;;  %1432 = vmatmul.bf16.vlgmr.msrb.gmra.mxu3 %v1334_v24  ;;  %v1494_v3 = vsel %vm1489_vm5, %v1491_v33, %v1493_v60  ;;  %v1495_v24 = vrot.slane %v2735_v41, 3  ;;  %v1365_v25 = vrot.slane %v1363_v13, 2  ;;  %v1030_v18 = vsel %vm1023_vm4, %v1027_v59, %v1029_v22 }
  0x7f   : > { %v1026_v47 = vsel %vm1023_vm4, %v1024_v48, %v1025_v49  ;;  %v1196_v41 = vsel %vm1023_vm4, %v1193_v19, %v1195_v36  ;;  %v1181_v48 = vunpack.c.l.b16 %v1142_v20  ;;  %v1033_v56 = vrot.slane %v2716_v14, 2  ;;  %s2830_s13 = scalar_lea.vmem %s2904_s4, %s2315_s12 }
  0x80   : > { %v1496_v30 = vsel %vm1489_vm5, %v1493_v60, %v1495_v24  ;;  %v1369_v15 = vor.u32 %v1368_v26, %v1365_v25 }
  0x81   : > { %v1187_v16 = vpack.c.b16 %v1181_v48, %v1181_v48 }
  0x8b   : > { %530 = vmatmul.bf16.gmra.mxu1 %v2416_v12  ;;  %986 = vmatmul.bf16.gmra.mxu0 %v904_v34  ;;  %v1188_v12 = vrot.slane %v2703_v57, 2  ;;  %v1357_v57 = vshll.u32 %v2752_v43, 16 }
  0x8d   : > { %v1190_v23 = vsel %vm1023_vm4, %v1188_v12, %v1189_v46  ;;  %v1359_v62 = vrot.slane %v1357_v57, 3  ;;  %v1499_v57 = vrot.slane %v2766_v6, 3 }
  0x8e   : > { %650 = vmatmul.bf16.gmra.mxu2 %v568_v32  ;;  %1437 = vmatmul.bf16.gmra.mxu3 %v1343_v40  ;;  %v1497_v40 = vrot.slane %v2752_v43, 3 }
  0x8f   : > { %v1360_v4 = vor.u32 %v1359_v62, %v1356_v61 }
  0x90   : > { %v1498_v12 = vsel %vm1489_vm5, %v1495_v24, %v1497_v40  ;;  %v1500_v0 = vsel %vm1489_vm5, %v1497_v40, %v1499_v57 }
  0x91   : > { %v1361_v8 = vsel %vm1317_vm3, %v1351_v11, %v1360_v4  ;;  %v1370_v53 = vsel %vm1317_vm3, %v1360_v4, %v1369_v15  ;;  %v1197_v11 = vrot.slane %v1187_v16, 2 }
  0x93   : > { %v1198_v59 = vsel %vm1023_vm4, %v1195_v36, %v1197_v11 }
  0x9b   : > { %1096 = vmatmul.bf16.vlgmr.msra.gmra.mxu1 %v1026_v47  ;;  %1562 = vmatmul.bf16.vlgmr.msra.gmra.mxu0 %v1492_v54 }
  0x9e   : > { %1260 = vmatmul.bf16.vlgmr.msra.gmra.mxu2 %v1190_v23  ;;  %1442 = vmatmul.bf16.gmra.mxu3 %v1352_v55 }
  0xa8   : > { %v424_v1 = vpop.f32.mrf.mxu0  ;;  %v2761_v10 = vpop.f32.mrf.mxu1 }
  0xab   : > { %1101 = vmatmul.bf16.gmra.mxu1 %v1028_v2  ;;  %1567 = vmatmul.bf16.gmra.mxu0 %v1494_v3 }
  0xae   : > { %1265 = vmatmul.bf16.gmra.mxu2 %v1192_v63  ;;  %1447 = vmatmul.bf16.gmra.mxu3 %v1361_v8  ;;  %v1034_v63 = vsel %vm1023_vm4, %v1031_v39, %v1033_v56 }
  0xb0   : > { %v426_v7 = vpop.f32.mrf.mxu0  ;;  %v2768_v9 = vpop.f32.mrf.mxu1 }
  0xb1   : > { %v795_v21 = vpop.f32.mrf.mxu3  ;;  %v2780_v31 = vpop.f32.mrf.mxu2 }
  0xb8   : > { %v429_v28 = vpop.f32.mrf.mxu0  ;;  %v2776_v29 = vpop.f32.mrf.mxu1 }
  0xb9   : > { %v797_v32 = vpop.f32.mrf.mxu3  ;;  %v2786_v38 = vpop.f32.mrf.mxu2 }
  0xbb   : > { %1106 = vmatmul.bf16.gmra.mxu1 %v1030_v18  ;;  %1572 = vmatmul.bf16.gmra.mxu0 %v1496_v30 }
  0xbe   : > { %1270 = vmatmul.bf16.gmra.mxu2 %v1194_v27  ;;  %1452 = vmatmul.bf16.gmra.mxu3 %v1370_v53 }
  0xc0   : > { %v431_v34 = vpop.f32.mrf.mxu0  ;;  %v2783_v35 = vpop.f32.mrf.mxu1 }
  0xc1   : > { %v800_v37 = vpop.f32.mrf.mxu3 }
  0xc8   : > { %v511_v42 = vpop.f32.mrf.mxu1  ;;  %v967_v44 = vpop.f32.mrf.mxu0 }
  0xc9   : > { %v512_v46 = vadd.f32 %v511_v42, %v424_v1  ;;  %v802_v49 = vpop.f32.mrf.mxu3 }
  0xcb   : > { %1111 = vmatmul.bf16.gmra.mxu1 %v1032_v45  ;;  %1577 = vmatmul.bf16.gmra.mxu0 %v1498_v12 }
  0xce   : > { %1275 = vmatmul.bf16.gmra.mxu2 %v1196_v41 }
  0xd0   : > { %v513_v52 = vpop.f32.mrf.mxu1  ;;  %v969_v23 = vpop.f32.mrf.mxu0 }
  0xd1   : > { %v631_v50 = vpop.f32.mrf.mxu2  ;;  %v514_v47 = vadd.f32 %v513_v52, %v426_v7  ;;  %v805_v55 = vpop.f32.mrf.mxu3 }
  0xd2   : > { %v656_v33 = vadd.f32 %v631_v50, %v512_v46 }
  0xd4   : > { %v820_v51 = vadd.f32 %v795_v21, %v656_v33 }
  0xd6   : > { %v2794_v54 = vadd.f32 %v967_v44, %v820_v51 }
  0xd8   : > { %v516_v61 = vpop.f32.mrf.mxu1  ;;  %v972_v62 = vpop.f32.mrf.mxu0 }
  0xd9   : > { %v633_v43 = vpop.f32.mrf.mxu2  ;;  %v517_v1 = vadd.f32 %v516_v61, %v429_v28  ;;  %v807_v3 = vpop.f32.mrf.mxu3 }
  0xda   : > { %v657_v58 = vadd.f32 %v633_v43, %v514_v47 }
  0xdb   : > { %1116 = vmatmul.bf16.gmra.mxu1 %v1034_v63  ;;  %1582 = vmatmul.bf16.gmra.mxu0 %v1500_v0 }
  0xdc   : > { %v821_v60 = vadd.f32 %v797_v32, %v657_v58 }
  0xde   : > { %1280 = vmatmul.bf16.gmra.mxu2 %v1198_v59  ;;  %v2801_v2 = vadd.f32 %v969_v23, %v821_v60 }
  0xe0   : > { %v518_v8 = vpop.f32.mrf.mxu1  ;;  %v974_v6 = vpop.f32.mrf.mxu0 }
  0xe1   : > { %v636_v14 = vpop.f32.mrf.mxu2  ;;  %v519_v7 = vadd.f32 %v518_v8, %v431_v34  ;;  %v810_v17 = vpop.f32.mrf.mxu3 }
  0xe2   : > { %v658_v4 = vadd.f32 %v636_v14, %v517_v1 }
  0xe4   : > { %v822_v5 = vadd.f32 %v800_v37, %v658_v4 }
  0xe6   : > { %v2803_v13 = vadd.f32 %v972_v62, %v822_v5 }
  0xe8   : > { %v521_v24 = vpop.f32.mrf.mxu1  ;;  %v977_v25 = vpop.f32.mrf.mxu0 }
  0xe9   : > { %v638_v19 = vpop.f32.mrf.mxu2  ;;  %v522_v26 = vadd.f32 %v521_v24, %v2761_v10  ;;  %v812_v30 = vpop.f32.mrf.mxu3  ;;  %v2842_v24 = vld [vmem:[%s2903_s3] ss:$0 sm:$0xff] }
  0xea   : > { %v659_v21 = vadd.f32 %v638_v19, %v519_v7 }
  0xec   : > { %v823_v22 = vadd.f32 %v802_v49, %v659_v21 }
  0xee   : > { %v2806_v27 = vadd.f32 %v974_v6, %v823_v22  ;;  %v1598_v6 = vld [vmem:[%s2830_s13 + $0xb] sm:$0xff] }
  0xf0   : > { %v523_v32 = vpop.f32.mrf.mxu1  ;;  %v979_v53 = vpop.f32.mrf.mxu0 }
  0xf1   : > { %v641_v28 = vpop.f32.mrf.mxu2  ;;  %v524_v34 = vadd.f32 %v523_v32, %v2768_v9  ;;  %v815_v41 = vpop.f32.mrf.mxu3 }
  0xf2   : > { %v660_v18 = vadd.f32 %v641_v28, %v522_v26 }
  0xf4   : > { %v824_v15 = vadd.f32 %v805_v55, %v660_v18 }
  0xf6   : > { %v2809_v36 = vadd.f32 %v977_v25, %v824_v15 }
  0xf8   : > { %v526_v20 = vpop.f32.mrf.mxu1  ;;  %v982_v42 = vpop.f32.mrf.mxu0 }
  0xf9   : > { %v643_v37 = vpop.f32.mrf.mxu2  ;;  %v527_v10 = vadd.f32 %v526_v20, %v2776_v29  ;;  %v817_v9 = vpop.f32.mrf.mxu3 }
  0xfa   : > { %v661_v39 = vadd.f32 %v643_v37, %v524_v34 }
  0xfc   : > { %v825_v40 = vadd.f32 %v807_v3, %v661_v39 }
  0xfe   : > { %v2812_v44 = vadd.f32 %v979_v53, %v825_v40 }
 0x100   : > { %v528_v48 = vpop.f32.mrf.mxu1  ;;  %v984_v49 = vpop.f32.mrf.mxu0 }
 0x101   : > { %v646_v45 = vpop.f32.mrf.mxu2  ;;  %v529_v50 = vadd.f32 %v528_v48, %v2783_v35  ;;  %v1433_v55 = vpop.f32.mrf.mxu3 }
 0x102   : > { %v662_v12 = vadd.f32 %v646_v45, %v527_v10 }
 0x104   : > { %v826_v46 = vadd.f32 %v810_v17, %v662_v12  ;;  %v1600_v12 = vld [vmem:[%s2830_s13 + $0x1b] sm:$0xff] }
 0x106   : > { %v2815_v33 = vadd.f32 %v982_v42, %v826_v46 }
 0x108   : > { %v531_v23 = vpop.f32.mrf.mxu1  ;;  %v987_v47 = vpop.f32.mrf.mxu0 }
 0x109   : > { %v648_v16 = vpop.f32.mrf.mxu2  ;;  %v532_v11 = vadd.f32 %v531_v23, %v2780_v31  ;;  %v1435_v63 = vpop.f32.mrf.mxu3 }
 0x10a   : > { %v663_v51 = vadd.f32 %v648_v16, %v529_v50 }
 0x10c   : > { %v827_v52 = vadd.f32 %v812_v30, %v663_v51 }
 0x10e   : > { %v2818_v29 = vadd.f32 %v984_v49, %v827_v52 }
 0x110   : > { %v533_v58 = vpop.f32.mrf.mxu1  ;;  %v989_v59 = vpop.f32.mrf.mxu0 }
 0x111   : > { %v651_v43 = vpop.f32.mrf.mxu2  ;;  %v534_v35 = vadd.f32 %v533_v58, %v2786_v38  ;;  %v1438_v8 = vpop.f32.mrf.mxu3 }
 0x112   : > { %v664_v56 = vadd.f32 %v651_v43, %v532_v11 }
 0x114   : > { %v828_v57 = vadd.f32 %v815_v41, %v664_v56 }
 0x116   : > { %v2821_v60 = vadd.f32 %v987_v47, %v828_v57 }
 0x118   : > { %v1097_v1 = vpop.f32.mrf.mxu1  ;;  %v1563_v3 = vpop.f32.mrf.mxu0 }
 0x119   : > { %v653_v61 = vpop.f32.mrf.mxu2  ;;  %v1122_v31 = vadd.f32 %v1097_v1, %v2794_v54  ;;  %v2836_v54 = vld [vmem:[%s2902_s2] ss:$0 sm:$0xff]  ;;  %v1440_v39 = vpop.f32.mrf.mxu3 }
 0x11a   : > { %v665_v62 = vadd.f32 %v653_v61, %v534_v35 }
 0x11c   : > { %v829_v0 = vadd.f32 %v817_v9, %v665_v62 }
 0x11e   : > { %v2825_v14 = vadd.f32 %v989_v59, %v829_v0 }
 0x120   : > { %v1099_v7 = vpop.f32.mrf.mxu1  ;;  %v1565_v17 = vpop.f32.mrf.mxu0 }
 0x121   : > { %v1261_v4 = vpop.f32.mrf.mxu2  ;;  %v1123_v21 = vadd.f32 %v1099_v7, %v2801_v2  ;;  %v1599_v2 = vld [vmem:[%s2830_s13 + $0x13] sm:$0xff]  ;;  %v1443_v51 = vpop.f32.mrf.mxu3 }
 0x122   : > { %v1286_v38 = vadd.f32 %v1261_v4, %v1122_v31 }
 0x124   : > { %v1458_v5 = vadd.f32 %v1433_v55, %v1286_v38  ;;  %v1601_v55 = vld [vmem:[%s2830_s13 + $0x23] sm:$0xff] }
 0x126   : > { %v1588_v19 = vadd.f32 %v1563_v3, %v1458_v5  ;;  %v1602_v3 = vld [vmem:[%s2830_s13 + $0x2b] sm:$0xff] }
 0x128   : > { %v1608_v22 = vadd.f32 %v1598_v6, %v1588_v19  ;;  %v1102_v15 = vpop.f32.mrf.mxu1  ;;  %v1568_v32 = vpop.f32.mrf.mxu0 }
 0x129   : > { %v1263_v25 = vpop.f32.mrf.mxu2  ;;  %v1124_v37 = vadd.f32 %v1102_v15, %v2803_v13 }
 0x12a   : > { %v1622_v26 = vmul.f32 %v2836_v54, %v1608_v22  ;;  %v1287_v28 = vadd.f32 %v1263_v25, %v1123_v21  ;;  %v1603_v22 = vld [vmem:[%s2830_s13 + $0x33] sm:$0xff] }
 0x12c   : > { %v1636_v18 = vadd.f32 %v2842_v24, %v1622_v26  ;;  %v1459_v30 = vadd.f32 %v1435_v63, %v1287_v28  ;;  %v1445_v63 = vpop.f32.mrf.mxu3 }
 0x12e   : > { %v1646_v53 = vmax.f32 %v1636_v18, 0.0  ;;  %v1589_v34 = vadd.f32 %v1565_v17, %v1459_v30 }
 0x130   : > { %1656 = vst [vmem:[%s2850_s23] sm:$0xff] %v1646_v53  ;;  %v1609_v40 = vadd.f32 %v1599_v2, %v1589_v34  ;;  %v1104_v46 = vpop.f32.mrf.mxu1  ;;  %v1570_v48 = vpop.f32.mrf.mxu0 }
 0x131   : > { %v1266_v41 = vpop.f32.mrf.mxu2  ;;  %v1125_v9 = vadd.f32 %v1104_v46, %v2806_v27 }
 0x132   : > { %v1623_v20 = vmul.f32 %v2836_v54, %v1609_v40  ;;  %v1288_v42 = vadd.f32 %v1266_v41, %v1124_v37 }
 0x134   : > { %v1637_v10 = vadd.f32 %v2842_v24, %v1623_v20  ;;  %v1460_v45 = vadd.f32 %v1438_v8, %v1288_v42  ;;  %v1448_v25 = vpop.f32.mrf.mxu3 }
 0x136   : > { %v1647_v49 = vmax.f32 %v1637_v10, 0.0  ;;  %v1590_v50 = vadd.f32 %v1568_v32, %v1460_v45 }
 0x138   : > { %1657 = vst [vmem:[%s2850_s23 + $0x8] sm:$0xff] %v1647_v49  ;;  %v1610_v13 = vadd.f32 %v1600_v12, %v1590_v50  ;;  %v1107_v43 = vpop.f32.mrf.mxu1  ;;  %v1573_v56 = vpop.f32.mrf.mxu0 }
 0x139   : > { %v1268_v16 = vpop.f32.mrf.mxu2  ;;  %v1126_v59 = vadd.f32 %v1107_v43, %v2809_v36 }
 0x13a   : > { %v1624_v52 = vmul.f32 %v2836_v54, %v1610_v13  ;;  %v1289_v23 = vadd.f32 %v1268_v16, %v1125_v9  ;;  %v1605_v9 = vld [vmem:[%s2830_s13 + $0x43] sm:$0xff] }
 0x13c   : > { %v1638_v47 = vadd.f32 %v2842_v24, %v1624_v52  ;;  %v1461_v11 = vadd.f32 %v1440_v39, %v1289_v23  ;;  %v1604_v39 = vld [vmem:[%s2830_s13 + $0x3b] sm:$0xff]  ;;  %v1450_v10 = vpop.f32.mrf.mxu3 }
 0x13e   : > { %v1648_v57 = vmax.f32 %v1638_v47, 0.0  ;;  %v1591_v58 = vadd.f32 %v1570_v48, %v1461_v11 }
 0x140   : > { %1658 = vst [vmem:[%s2850_s23 + $0x10] sm:$0xff] %v1648_v57  ;;  %v1611_v27 = vadd.f32 %v1601_v55, %v1591_v58  ;;  %v1109_v31 = vpop.f32.mrf.mxu1  ;;  %v1575_v4 = vpop.f32.mrf.mxu0  ;;  %v1606_v58 = vld [vmem:[%s2830_s13 + $0x4b] sm:$0xff] }
 0x141   : > { %v1271_v35 = vpop.f32.mrf.mxu2  ;;  %v1127_v8 = vadd.f32 %v1109_v31, %v2812_v44 }
 0x142   : > { %v1625_v61 = vmul.f32 %v2836_v54, %v1611_v27  ;;  %v1290_v62 = vadd.f32 %v1271_v35, %v1126_v59 }
 0x144   : > { %v1639_v0 = vadd.f32 %v2842_v24, %v1625_v61  ;;  %v1462_v1 = vadd.f32 %v1443_v51, %v1290_v62  ;;  %v1453_v23 = vpop.f32.mrf.mxu3 }
 0x146   : > { %v1649_v38 = vmax.f32 %v1639_v0, 0.0  ;;  %v1592_v5 = vadd.f32 %v1573_v56, %v1462_v1 }
 0x148   : > { %1659 = vst [vmem:[%s2850_s23 + $0x18] sm:$0xff] %v1649_v38  ;;  %v1612_v36 = vadd.f32 %v1602_v3, %v1592_v5  ;;  %v1112_v26 = vpop.f32.mrf.mxu1  ;;  %v1578_v2 = vpop.f32.mrf.mxu0  ;;  %v1607_v38 = vld [vmem:[%s2830_s13 + $0x53] sm:$0xff] }
 0x149   : > { %v1273_v6 = vpop.f32.mrf.mxu2  ;;  %v1128_v30 = vadd.f32 %v1112_v26, %v2815_v33 }
 0x14a   : > { %v1626_v7 = vmul.f32 %v2836_v54, %v1612_v36  ;;  %v1291_v17 = vadd.f32 %v1273_v6, %v1127_v8 }
 0x14c   : > { %v1640_v19 = vadd.f32 %v2842_v24, %v1626_v7  ;;  %v1463_v21 = vadd.f32 %v1445_v63, %v1291_v17  ;;  %v1455_v1 = vpop.f32.mrf.mxu3 }
 0x14e   : > { %v1650_v28 = vmax.f32 %v1640_v19, 0.0  ;;  %v1593_v18 = vadd.f32 %v1575_v4, %v1463_v21 }
 0x150   : > { %1660 = vst [vmem:[%s2850_s23 + $0x20] sm:$0xff] %v1650_v28  ;;  %v1613_v44 = vadd.f32 %v1603_v22, %v1593_v18  ;;  %v1114_v40 = vpop.f32.mrf.mxu1  ;;  %v1580_v45 = vpop.f32.mrf.mxu0 }
 0x151   : > { %v1276_v15 = vpop.f32.mrf.mxu2  ;;  %v1129_v42 = vadd.f32 %v1114_v40, %v2818_v29 }
 0x152   : > { %v1627_v32 = vmul.f32 %v2836_v54, %v1613_v44  ;;  %v1292_v53 = vadd.f32 %v1276_v15, %v1128_v30 }
 0x154   : > { %v1641_v34 = vadd.f32 %v2842_v24, %v1627_v32  ;;  %v1464_v37 = vadd.f32 %v1448_v25, %v1292_v53 }
 0x156   : > { %v1651_v41 = vmax.f32 %v1641_v34, 0.0  ;;  %v1594_v20 = vadd.f32 %v1578_v2, %v1464_v37 }
 0x158   : > { %1661 = vst [vmem:[%s2850_s23 + $0x28] sm:$0xff] %v1651_v41  ;;  %v1614_v33 = vadd.f32 %v1604_v39, %v1594_v20  ;;  %v1117_v13 = vpop.f32.mrf.mxu1  ;;  %v1583_v43 = vpop.f32.mrf.mxu0 }
 0x159   : > { %v1278_v12 = vpop.f32.mrf.mxu2  ;;  %v1130_v52 = vadd.f32 %v1117_v13, %v2821_v60 }
 0x15a   : > { %v1628_v46 = vmul.f32 %v2836_v54, %v1614_v33  ;;  %v1293_v48 = vadd.f32 %v1278_v12, %v1129_v42 }
 0x15c   : > { %v1642_v49 = vadd.f32 %v2842_v24, %v1628_v46  ;;  %v1465_v50 = vadd.f32 %v1450_v10, %v1293_v48 }
 0x15e   : > { %v1652_v16 = vmax.f32 %v1642_v49, 0.0  ;;  %v1595_v51 = vadd.f32 %v1580_v45, %v1465_v50 }
 0x160   : > { %1662 = vst [vmem:[%s2850_s23 + $0x30] sm:$0xff] %v1652_v16  ;;  %v1615_v29 = vadd.f32 %v1605_v9, %v1595_v51  ;;  %v1119_v59 = vpop.f32.mrf.mxu1  ;;  %v1585_v4 = vpop.f32.mrf.mxu0 }
 0x161   : > { %v1281_v47 = vpop.f32.mrf.mxu2  ;;  %v1131_v61 = vadd.f32 %v1119_v59, %v2825_v14 }
 0x162   : > { %v1629_v11 = vmul.f32 %v2836_v54, %v1615_v29  ;;  %v1294_v55 = vadd.f32 %v1281_v47, %v1130_v52 }
 0x164   : > { %v1643_v56 = vadd.f32 %v2842_v24, %v1629_v11  ;;  %v1466_v57 = vadd.f32 %v1453_v23, %v1294_v55 }
 0x166   : > { %v1653_v27 = vmax.f32 %v1643_v56, 0.0  ;;  %v1596_v35 = vadd.f32 %v1583_v43, %v1466_v57 }
 0x168   : > { %1663 = vst [vmem:[%s2850_s23 + $0x38] sm:$0xff] %v1653_v27  ;;  %v1616_v60 = vadd.f32 %v1606_v58, %v1596_v35 }
 0x169   : > { %v1283_v62 = vpop.f32.mrf.mxu2 }
 0x16a   : > { %v1630_v63 = vmul.f32 %v2836_v54, %v1616_v60  ;;  %v1295_v0 = vadd.f32 %v1283_v62, %v1131_v61 }
 0x16c   : > { %v1644_v3 = vadd.f32 %v2842_v24, %v1630_v63  ;;  %v1467_v31 = vadd.f32 %v1455_v1, %v1295_v0 }
 0x16e   : > { %v1654_v5 = vmax.f32 %v1644_v3, 0.0  ;;  %v1597_v8 = vadd.f32 %v1585_v4, %v1467_v31 }
 0x170   : > { %1664 = vst [vmem:[%s2850_s23 + $0x40] sm:$0xff] %v1654_v5  ;;  %v1617_v36 = vadd.f32 %v1607_v38, %v1597_v8 }
 0x172   : > { %v1631_v6 = vmul.f32 %v2836_v54, %v1617_v36 }
 0x174   : > { %v1645_v14 = vadd.f32 %v2842_v24, %v1631_v6 }
 0x176   : > { %v1655_v7 = vmax.f32 %v1645_v14, 0.0 }
 0x178   : > { %1665 = vst [vmem:[%s2850_s23 + $0x48] sm:$0xff] %v1655_v7 }
 0x179 PF: > { %s15_s18 = sadd.s32 1, %s2333_s18  }
 0x17a   : > { %p12_p4 = scmp.ge.s32.totalorder %s15_s18, 4  }
 0x17c   :  { %14 = sbr.rel (!%p12_p4) target bundleno = 1 (0x1), region = 81 }

</bundles_post_ra>
